<compile_context>
chip_gen: v6e
topology: v6e:2x2x1
jax: 0.10.0
libtpu: 0.0.40
codegen_flags: <defaults>
</compile_context>

<pallas_src>
import numpy as np
import jax
import jax.numpy as jnp
from jax.experimental import pallas as pl
from jax.experimental.pallas import tpu as pltpu

C1, C2 = 32, 64          # conv1 / conv2 output channels
KH = KW = 3              # 3x3 kernels, stride 1, padding 1


def _pool_select(h_out, w_out, w_pitch, q_of_ij, n_rows, n_cols):
    """0/1 matrix: row p = flat top-left corner of a 2x2 window, col q = q_of_ij(i,j)."""
    s = np.zeros((n_rows, n_cols), np.float32)
    for i in range(h_out):
        for j in range(w_out):
            s[2 * i * w_pitch + 2 * j, q_of_ij(i, j)] = 1.0
    return jnp.asarray(s, dtype=jnp.bfloat16)        # 0/1 entries are exact in bf16


def convnet_forward(x, w1, b1, w2, b2):
    """x: [B, 1, H, W] f32 -> [B, C2 * (H//4) * (W//4)] f32 (PyTorch NCHW flatten order)."""
    B, cin, H, W = x.shape
    assert cin == 1 and H % 4 == 0 and W % 4 == 0

    # ---- static geometry ---------------------------------------------------
    W1P = W + 2                       # padded width, stage 1
    NP1 = (H + 3) * W1P               # padded image (+1 spare row), flattened
    M1 = H * W1P                      # conv1 output positions (cols >= W are junk, unused)
    OFF1 = [di * W1P + dj for di in range(KH) for dj in range(KW)]
    HV1 = (M1 - 1) - W1P              # width after the two neighbour-max slices
    H2, W2 = H // 2, W // 2
    W2P = W2 + 2
    NP2 = (H2 + 3) * W2P
    M2 = H2 * W2P
    OFF2 = [di * W2P + dj for di in range(KH) for dj in range(KW)]
    HV2 = (M2 - 1) - W2P
    H3, W3 = H2 // 2, W2 // 2
    NOUT = H3 * W3                    # spatial outputs per channel after pool2

    # ---- wrapper-side layout plumbing (pad/reshape/cast only, no compute) ---
    xp = jnp.pad(x[:, 0], ((0, 0), (1, 2), (1, 1)))            # [B, H+3, W+2]
    xf = xp.reshape(B, 1, NP1).astype(jnp.float32)             # [B, 1, NP1]

    w1k = w1.reshape(C1, KH * KW).astype(jnp.float32)          # tiny (32x9): keep f32
    b1k = b1.reshape(C1, 1).astype(jnp.float32)
    # [C2, 9*C1]; column k*C1+ci with k = di*3+dj -- matches the stacked slices below.
    w2k = jnp.transpose(w2, (0, 2, 3, 1)).reshape(C2, KH * KW * C1).astype(jnp.bfloat16)
    b2k = b2.reshape(C2, 1).astype(jnp.float32)
    # pool1 selection also scatters into conv2's zero-padded flat layout.
    s1 = _pool_select(H2, W2, W1P, lambda i, j: (i + 1) * W2P + (j + 1), HV1, NP2)
    s2 = _pool_select(H3, W3, W2P, lambda i, j: i * W3 + j, HV2, NOUT)

    def kernel(x_ref, w1_ref, b1_ref, w2_ref, b2_ref, s1_ref, s2_ref, o_ref):
        # ---- conv1 (Cin = 1): 9 broadcast multiply-adds on the VPU, f32 -----
        x1 = x_ref[0]                                          # [1, NP1] f32
        w1v = w1_ref[...]                                      # [C1, 9]  f32
        y1 = jnp.zeros((C1, M1), jnp.float32)
        for k, off in enumerate(OFF1):
            y1 = y1 + w1v[:, k:k + 1] * x1[:, off:off + M1]
        y1 = jnp.maximum(y1 + b1_ref[...], 0.0)                # bias + relu

        # ---- maxpool 2x2/2: neighbour maxima + bf16 selection matmul --------
        hh = jnp.maximum(y1[:, :M1 - 1], y1[:, 1:])
        hv = jnp.maximum(hh[:, :HV1], hh[:, W1P:])
        x2 = jnp.dot(hv.astype(jnp.bfloat16), s1_ref[...],
                     preferred_element_type=jnp.float32)       # [C1, NP2] (padded layout)

        # ---- conv2: stack 9 shifted slices -> one bf16 MXU matmul -----------
        p2 = jnp.concatenate([x2[:, off:off + M2] for off in OFF2],
                             axis=0).astype(jnp.bfloat16)      # [9*C1, M2]
        y2 = jnp.dot(w2_ref[...], p2,
                     preferred_element_type=jnp.float32)       # [C2, M2]
        y2 = jnp.maximum(y2 + b2_ref[...], 0.0)

        # ---- maxpool 2 + flatten to (C2, H3*W3) (= NCHW flatten per image) --
        hh2 = jnp.maximum(y2[:, :M2 - 1], y2[:, 1:])
        hv2 = jnp.maximum(hh2[:, :HV2], hh2[:, W2P:])
        # TODO(synk): NOUT(=49) < 128 lanes -> masked vst on the output store;
        # accepted knowingly, it is 64x49 f32 per image (negligible).
        o_ref[0] = jnp.dot(hv2.astype(jnp.bfloat16), s2_ref[...],
                           preferred_element_type=jnp.float32)  # [C2, NOUT]

    flops = 2 * B * (C1 * 9 * M1 + C1 * HV1 * NP2 + C2 * 9 * C1 * M2 + C2 * HV2 * NOUT)
    bytes_accessed = (B * NP1 * 4 + B * C2 * NOUT * 4
                      + (C1 * 9 + C1 + C2) * 4
                      + (C2 * 9 * C1 + HV1 * NP2 + HV2 * NOUT) * 2)

    out = pl.pallas_call(
        kernel,
        out_shape=jax.ShapeDtypeStruct((B, C2, NOUT), jnp.float32),
        grid=(B,),
        in_specs=[
            pl.BlockSpec((1, 1, NP1), lambda i: (i, 0, 0)),          # per-image input
            pl.BlockSpec((C1, KH * KW), lambda i: (0, 0)),           # w1 (resident)
            pl.BlockSpec((C1, 1), lambda i: (0, 0)),                 # b1
            pl.BlockSpec((C2, KH * KW * C1), lambda i: (0, 0)),      # w2 (bf16, resident)
            pl.BlockSpec((C2, 1), lambda i: (0, 0)),                 # b2
            pl.BlockSpec((HV1, NP2), lambda i: (0, 0)),              # pool1 selection (bf16)
            pl.BlockSpec((HV2, NOUT), lambda i: (0, 0)),             # pool2 selection (bf16)
        ],
        out_specs=pl.BlockSpec((1, C2, NOUT), lambda i: (i, 0, 0)),
        compiler_params=pltpu.CompilerParams(
            dimension_semantics=("parallel",)),
        cost_estimate=pl.CostEstimate(flops=flops, transcendentals=0,
                                      bytes_accessed=bytes_accessed),
    )(xf, w1k, b1k, w2k, b2k, s1, s2)

    # PyTorch x.view(B, -1) on NCHW == channel-major flatten == exactly this reshape.
    return out.reshape(B, C2 * NOUT)


def init_params(key):
    """Match nn.Conv2d default init: U(-1/sqrt(fan_in), 1/sqrt(fan_in)) for weight & bias."""
    k1, k2, k3, k4 = jax.random.split(key, 4)
    lim1 = 1.0 / float(np.sqrt(1 * KH * KW))
    lim2 = 1.0 / float(np.sqrt(C1 * KH * KW))
    w1 = jax.random.uniform(k1, (C1, 1, KH, KW), jnp.float32, -lim1, lim1)
    b1 = jax.random.uniform(k2, (C1,), jnp.float32, -lim1, lim1)
    w2 = jax.random.uniform(k3, (C2, C1, KH, KW), jnp.float32, -lim2, lim2)
    b2 = jax.random.uniform(k4, (C2,), jnp.float32, -lim2, lim2)
    return w1, b1, w2, b2


def convnet_ref(x, w1, b1, w2, b2):
    """Pure-JAX f32 reference matching the PyTorch module (NCHW)."""
    def conv_relu(x, w, b):
        y = jax.lax.conv_general_dilated(
            x, w, window_strides=(1, 1), padding=((1, 1), (1, 1)),
            dimension_numbers=("NCHW", "OIHW", "NCHW"))
        return jax.nn.relu(y + b[None, :, None, None])

    def pool(y):
        b, c, h, w = y.shape
        return y.reshape(b, c, h // 2, 2, w // 2, 2).max(axis=(3, 5))

    y = pool(conv_relu(x, w1, b1))
    y = pool(conv_relu(y, w2, b2))
    return y.reshape(y.shape[0], -1)


if __name__ == "__main__":
    # TODO(synk): the torch.distributed.rpc / multiprocessing dispatch around ConvNet has
    # no Pallas analogue; only the ConvNet forward compute is implemented here.
    key = jax.random.PRNGKey(0)
    kx, kp = jax.random.split(key)

    B, H, W = 2, 28, 28                     # MNIST-sized input, as in the RPC example
    x = jax.random.normal(kx, (B, 1, H, W), jnp.float32)
    w1, b1, w2, b2 = init_params(kp)

    out = jax.jit(convnet_forward)(x, w1, b1, w2, b2)
    out = jax.block_until_ready(out)

    ref = convnet_ref(x, w1, b1, w2, b2)
    assert out.shape == (B, C2 * (H // 4) * (W // 4))
    # bf16 operands feeding the MXU -> looser tolerance vs the f32 reference (expected).
    assert jnp.allclose(out, ref, atol=5e-2, rtol=5e-2), float(jnp.max(jnp.abs(out - ref)))

    print("KERNEL_OK")
</pallas_src>

<mosaic_0001>
module attributes {stable_mosaic.version = 11 : i64} {
  func.func @kernel(%arg0: i32, %arg1: memref<1x1x930xf32, #tpu.memory_space<vmem>>, %arg2: memref<32x9xf32, #tpu.memory_space<vmem>>, %arg3: memref<32x1xf32, #tpu.memory_space<vmem>>, %arg4: memref<64x288xbf16, #tpu.memory_space<vmem>>, %arg5: memref<64x1xf32, #tpu.memory_space<vmem>>, %arg6: memref<809x272xbf16, #tpu.memory_space<vmem>>, %arg7: memref<207x49xbf16, #tpu.memory_space<vmem>>, %arg8: memref<1x64x49xf32, #tpu.memory_space<vmem>>) attributes {dimension_semantics = [#tpu.dimension_semantics<parallel>], iteration_bounds = array<i64: 2>, scalar_prefetch = 0 : i64, scratch_operands = 0 : i64, tpu.core_type = #tpu.core_type<tc>, window_params = [{transform_indices = @transform_0, window_bounds = array<i64: 1, 1, 930>}, {pipeline_mode = #tpu.pipeline_mode<synchronous>, transform_indices = @transform_1, window_bounds = array<i64: 32, 9>}, {pipeline_mode = #tpu.pipeline_mode<synchronous>, transform_indices = @transform_2, window_bounds = array<i64: 32, 1>}, {pipeline_mode = #tpu.pipeline_mode<synchronous>, transform_indices = @transform_3, window_bounds = array<i64: 64, 288>}, {pipeline_mode = #tpu.pipeline_mode<synchronous>, transform_indices = @transform_4, window_bounds = array<i64: 64, 1>}, {pipeline_mode = #tpu.pipeline_mode<synchronous>, transform_indices = @transform_5, window_bounds = array<i64: 809, 272>}, {pipeline_mode = #tpu.pipeline_mode<synchronous>, transform_indices = @transform_6, window_bounds = array<i64: 207, 49>}, {transform_indices = @transform_7, window_bounds = array<i64: 1, 64, 49>}]} {
    %c0 = arith.constant 0 : index
    %c0_0 = arith.constant 0 : index
    %c0_1 = arith.constant 0 : index
    %0 = vector.load %arg1[%c0, %c0_0, %c0_1] : memref<1x1x930xf32, #tpu.memory_space<vmem>>, vector<1x1x930xf32>
    %1 = vector.shape_cast %0 : vector<1x1x930xf32> to vector<1x930xf32>
    %c0_2 = arith.constant 0 : index
    %c0_3 = arith.constant 0 : index
    %2 = vector.load %arg2[%c0_2, %c0_3] : memref<32x9xf32, #tpu.memory_space<vmem>>, vector<32x9xf32>
    %cst = arith.constant 0.000000e+00 : f32
    %3 = vector.broadcast %cst : f32 to vector<32x840xf32>
    %4 = vector.extract_strided_slice %2 {offsets = [0, 0], sizes = [32, 1], strides = [1, 1]} : vector<32x9xf32> to vector<32x1xf32>
    %5 = vector.extract_strided_slice %1 {offsets = [0, 0], sizes = [1, 840], strides = [1, 1]} : vector<1x930xf32> to vector<1x840xf32>
    %6 = vector.broadcast %4 : vector<32x1xf32> to vector<32x840xf32>
    %7 = vector.broadcast %5 : vector<1x840xf32> to vector<32x840xf32>
    %8 = arith.mulf %6, %7 : vector<32x840xf32>
    %9 = arith.addf %3, %8 : vector<32x840xf32>
    %10 = vector.extract_strided_slice %2 {offsets = [0, 1], sizes = [32, 1], strides = [1, 1]} : vector<32x9xf32> to vector<32x1xf32>
    %11 = vector.extract_strided_slice %1 {offsets = [0, 1], sizes = [1, 840], strides = [1, 1]} : vector<1x930xf32> to vector<1x840xf32>
    %12 = vector.broadcast %10 : vector<32x1xf32> to vector<32x840xf32>
    %13 = vector.broadcast %11 : vector<1x840xf32> to vector<32x840xf32>
    %14 = arith.mulf %12, %13 : vector<32x840xf32>
    %15 = arith.addf %9, %14 : vector<32x840xf32>
    %16 = vector.extract_strided_slice %2 {offsets = [0, 2], sizes = [32, 1], strides = [1, 1]} : vector<32x9xf32> to vector<32x1xf32>
    %17 = vector.extract_strided_slice %1 {offsets = [0, 2], sizes = [1, 840], strides = [1, 1]} : vector<1x930xf32> to vector<1x840xf32>
    %18 = vector.broadcast %16 : vector<32x1xf32> to vector<32x840xf32>
    %19 = vector.broadcast %17 : vector<1x840xf32> to vector<32x840xf32>
    %20 = arith.mulf %18, %19 : vector<32x840xf32>
    %21 = arith.addf %15, %20 : vector<32x840xf32>
    %22 = vector.extract_strided_slice %2 {offsets = [0, 3], sizes = [32, 1], strides = [1, 1]} : vector<32x9xf32> to vector<32x1xf32>
    %23 = vector.extract_strided_slice %1 {offsets = [0, 30], sizes = [1, 840], strides = [1, 1]} : vector<1x930xf32> to vector<1x840xf32>
    %24 = vector.broadcast %22 : vector<32x1xf32> to vector<32x840xf32>
    %25 = vector.broadcast %23 : vector<1x840xf32> to vector<32x840xf32>
    %26 = arith.mulf %24, %25 : vector<32x840xf32>
    %27 = arith.addf %21, %26 : vector<32x840xf32>
    %28 = vector.extract_strided_slice %2 {offsets = [0, 4], sizes = [32, 1], strides = [1, 1]} : vector<32x9xf32> to vector<32x1xf32>
    %29 = vector.extract_strided_slice %1 {offsets = [0, 31], sizes = [1, 840], strides = [1, 1]} : vector<1x930xf32> to vector<1x840xf32>
    %30 = vector.broadcast %28 : vector<32x1xf32> to vector<32x840xf32>
    %31 = vector.broadcast %29 : vector<1x840xf32> to vector<32x840xf32>
    %32 = arith.mulf %30, %31 : vector<32x840xf32>
    %33 = arith.addf %27, %32 : vector<32x840xf32>
    %34 = vector.extract_strided_slice %2 {offsets = [0, 5], sizes = [32, 1], strides = [1, 1]} : vector<32x9xf32> to vector<32x1xf32>
    %35 = vector.extract_strided_slice %1 {offsets = [0, 32], sizes = [1, 840], strides = [1, 1]} : vector<1x930xf32> to vector<1x840xf32>
    %36 = vector.broadcast %34 : vector<32x1xf32> to vector<32x840xf32>
    %37 = vector.broadcast %35 : vector<1x840xf32> to vector<32x840xf32>
    %38 = arith.mulf %36, %37 : vector<32x840xf32>
    %39 = arith.addf %33, %38 : vector<32x840xf32>
    %40 = vector.extract_strided_slice %2 {offsets = [0, 6], sizes = [32, 1], strides = [1, 1]} : vector<32x9xf32> to vector<32x1xf32>
    %41 = vector.extract_strided_slice %1 {offsets = [0, 60], sizes = [1, 840], strides = [1, 1]} : vector<1x930xf32> to vector<1x840xf32>
    %42 = vector.broadcast %40 : vector<32x1xf32> to vector<32x840xf32>
    %43 = vector.broadcast %41 : vector<1x840xf32> to vector<32x840xf32>
    %44 = arith.mulf %42, %43 : vector<32x840xf32>
    %45 = arith.addf %39, %44 : vector<32x840xf32>
    %46 = vector.extract_strided_slice %2 {offsets = [0, 7], sizes = [32, 1], strides = [1, 1]} : vector<32x9xf32> to vector<32x1xf32>
    %47 = vector.extract_strided_slice %1 {offsets = [0, 61], sizes = [1, 840], strides = [1, 1]} : vector<1x930xf32> to vector<1x840xf32>
    %48 = vector.broadcast %46 : vector<32x1xf32> to vector<32x840xf32>
    %49 = vector.broadcast %47 : vector<1x840xf32> to vector<32x840xf32>
    %50 = arith.mulf %48, %49 : vector<32x840xf32>
    %51 = arith.addf %45, %50 : vector<32x840xf32>
    %52 = vector.extract_strided_slice %2 {offsets = [0, 8], sizes = [32, 1], strides = [1, 1]} : vector<32x9xf32> to vector<32x1xf32>
    %53 = vector.extract_strided_slice %1 {offsets = [0, 62], sizes = [1, 840], strides = [1, 1]} : vector<1x930xf32> to vector<1x840xf32>
    %54 = vector.broadcast %52 : vector<32x1xf32> to vector<32x840xf32>
    %55 = vector.broadcast %53 : vector<1x840xf32> to vector<32x840xf32>
    %56 = arith.mulf %54, %55 : vector<32x840xf32>
    %57 = arith.addf %51, %56 : vector<32x840xf32>
    %c0_4 = arith.constant 0 : index
    %c0_5 = arith.constant 0 : index
    %58 = vector.load %arg3[%c0_4, %c0_5] : memref<32x1xf32, #tpu.memory_space<vmem>>, vector<32x1xf32>
    %59 = vector.broadcast %58 : vector<32x1xf32> to vector<32x840xf32>
    %60 = arith.addf %57, %59 : vector<32x840xf32>
    %cst_6 = arith.constant 0.000000e+00 : f32
    %61 = vector.broadcast %cst_6 : f32 to vector<32x840xf32>
    %62 = arith.maximumf %60, %61 : vector<32x840xf32>
    %63 = vector.extract_strided_slice %62 {offsets = [0, 0], sizes = [32, 839], strides = [1, 1]} : vector<32x840xf32> to vector<32x839xf32>
    %64 = vector.extract_strided_slice %62 {offsets = [0, 1], sizes = [32, 839], strides = [1, 1]} : vector<32x840xf32> to vector<32x839xf32>
    %65 = arith.maximumf %63, %64 : vector<32x839xf32>
    %66 = vector.extract_strided_slice %65 {offsets = [0, 0], sizes = [32, 809], strides = [1, 1]} : vector<32x839xf32> to vector<32x809xf32>
    %67 = vector.extract_strided_slice %65 {offsets = [0, 30], sizes = [32, 809], strides = [1, 1]} : vector<32x839xf32> to vector<32x809xf32>
    %68 = arith.maximumf %66, %67 : vector<32x809xf32>
    %69 = arith.truncf %68 : vector<32x809xf32> to vector<32x809xbf16>
    %c0_7 = arith.constant 0 : index
    %c0_8 = arith.constant 0 : index
    %70 = vector.load %arg6[%c0_7, %c0_8] : memref<809x272xbf16, #tpu.memory_space<vmem>>, vector<809x272xbf16>
    %cst_9 = arith.constant dense<0.000000e+00> : vector<32x272xf32>
    %71 = tpu.matmul %69, %70, %cst_9 {dimension_numbers = #tpu.dot_dimension_numbers<[1], [0], [0], [1], [0, 0, 1, 1], [], []>} : vector<32x809xbf16>, vector<809x272xbf16>, vector<32x272xf32> -> vector<32x272xf32>
    %72 = vector.extract_strided_slice %71 {offsets = [0, 0], sizes = [32, 224], strides = [1, 1]} : vector<32x272xf32> to vector<32x224xf32>
    %73 = vector.extract_strided_slice %71 {offsets = [0, 1], sizes = [32, 224], strides = [1, 1]} : vector<32x272xf32> to vector<32x224xf32>
    %74 = vector.extract_strided_slice %71 {offsets = [0, 2], sizes = [32, 224], strides = [1, 1]} : vector<32x272xf32> to vector<32x224xf32>
    %75 = vector.extract_strided_slice %71 {offsets = [0, 16], sizes = [32, 224], strides = [1, 1]} : vector<32x272xf32> to vector<32x224xf32>
    %76 = vector.extract_strided_slice %71 {offsets = [0, 17], sizes = [32, 224], strides = [1, 1]} : vector<32x272xf32> to vector<32x224xf32>
    %77 = vector.extract_strided_slice %71 {offsets = [0, 18], sizes = [32, 224], strides = [1, 1]} : vector<32x272xf32> to vector<32x224xf32>
    %78 = vector.extract_strided_slice %71 {offsets = [0, 32], sizes = [32, 224], strides = [1, 1]} : vector<32x272xf32> to vector<32x224xf32>
    %79 = vector.extract_strided_slice %71 {offsets = [0, 33], sizes = [32, 224], strides = [1, 1]} : vector<32x272xf32> to vector<32x224xf32>
    %80 = vector.extract_strided_slice %71 {offsets = [0, 34], sizes = [32, 224], strides = [1, 1]} : vector<32x272xf32> to vector<32x224xf32>
    %81 = tpu.concatenate %72, %73, %74, %75, %76, %77, %78, %79, %80 in 0 : vector<32x224xf32>, vector<32x224xf32>, vector<32x224xf32>, vector<32x224xf32>, vector<32x224xf32>, vector<32x224xf32>, vector<32x224xf32>, vector<32x224xf32>, vector<32x224xf32> -> vector<288x224xf32>
    %82 = arith.truncf %81 : vector<288x224xf32> to vector<288x224xbf16>
    %c0_10 = arith.constant 0 : index
    %c0_11 = arith.constant 0 : index
    %83 = vector.load %arg4[%c0_10, %c0_11] : memref<64x288xbf16, #tpu.memory_space<vmem>>, vector<64x288xbf16>
    %cst_12 = arith.constant dense<0.000000e+00> : vector<64x224xf32>
    %84 = tpu.matmul %83, %82, %cst_12 {dimension_numbers = #tpu.dot_dimension_numbers<[1], [0], [0], [1], [0, 0, 1, 1], [], []>} : vector<64x288xbf16>, vector<288x224xbf16>, vector<64x224xf32> -> vector<64x224xf32>
    %c0_13 = arith.constant 0 : index
    %c0_14 = arith.constant 0 : index
    %85 = vector.load %arg5[%c0_13, %c0_14] : memref<64x1xf32, #tpu.memory_space<vmem>>, vector<64x1xf32>
    %86 = vector.broadcast %85 : vector<64x1xf32> to vector<64x224xf32>
    %87 = arith.addf %84, %86 : vector<64x224xf32>
    %cst_15 = arith.constant 0.000000e+00 : f32
    %88 = vector.broadcast %cst_15 : f32 to vector<64x224xf32>
    %89 = arith.maximumf %87, %88 : vector<64x224xf32>
    %90 = vector.extract_strided_slice %89 {offsets = [0, 0], sizes = [64, 223], strides = [1, 1]} : vector<64x224xf32> to vector<64x223xf32>
    %91 = vector.extract_strided_slice %89 {offsets = [0, 1], sizes = [64, 223], strides = [1, 1]} : vector<64x224xf32> to vector<64x223xf32>
    %92 = arith.maximumf %90, %91 : vector<64x223xf32>
    %93 = vector.extract_strided_slice %92 {offsets = [0, 0], sizes = [64, 207], strides = [1, 1]} : vector<64x223xf32> to vector<64x207xf32>
    %94 = vector.extract_strided_slice %92 {offsets = [0, 16], sizes = [64, 207], strides = [1, 1]} : vector<64x223xf32> to vector<64x207xf32>
    %95 = arith.maximumf %93, %94 : vector<64x207xf32>
    %96 = arith.truncf %95 : vector<64x207xf32> to vector<64x207xbf16>
    %c0_16 = arith.constant 0 : index
    %c0_17 = arith.constant 0 : index
    %97 = vector.load %arg7[%c0_16, %c0_17] : memref<207x49xbf16, #tpu.memory_space<vmem>>, vector<207x49xbf16>
    %cst_18 = arith.constant dense<0.000000e+00> : vector<64x49xf32>
    %98 = tpu.matmul %96, %97, %cst_18 {dimension_numbers = #tpu.dot_dimension_numbers<[1], [0], [0], [1], [0, 0, 1, 1], [], []>} : vector<64x207xbf16>, vector<207x49xbf16>, vector<64x49xf32> -> vector<64x49xf32>
    %c0_19 = arith.constant 0 : index
    %c0_20 = arith.constant 0 : index
    %c0_21 = arith.constant 0 : index
    %99 = vector.load %arg8[%c0_19, %c0_20, %c0_21] : memref<1x64x49xf32, #tpu.memory_space<vmem>>, vector<1x64x49xf32>
    %100 = vector.shape_cast %99 : vector<1x64x49xf32> to vector<64x49xf32>
    %101 = vector.shape_cast %98 : vector<64x49xf32> to vector<1x64x49xf32>
    tpu.vector_store %arg8[%c0_19, %c0_20, %c0_21], %101 {strides = array<i32>} : memref<1x64x49xf32, #tpu.memory_space<vmem>>, vector<1x64x49xf32>,
    return
  }
  func.func @transform_0(%arg0: i32) -> (i32, i32, i32) {
    %c0_i32 = arith.constant 0 : i32
    %c0_i32_0 = arith.constant 0 : i32
    %c0_i32_1 = arith.constant 0 : i32
    return %arg0, %c0_i32, %c0_i32_0 : i32, i32, i32
  }
  func.func @transform_1(%arg0: i32) -> (i32, i32) {
    %c0_i32 = arith.constant 0 : i32
    %c0_i32_0 = arith.constant 0 : i32
    %c0_i32_1 = arith.constant 0 : i32
    return %c0_i32, %c0_i32_0 : i32, i32
  }
  func.func @transform_2(%arg0: i32) -> (i32, i32) {
    %c0_i32 = arith.constant 0 : i32
    %c0_i32_0 = arith.constant 0 : i32
    %c0_i32_1 = arith.constant 0 : i32
    return %c0_i32, %c0_i32_0 : i32, i32
  }
  func.func @transform_3(%arg0: i32) -> (i32, i32) {
    %c0_i32 = arith.constant 0 : i32
    %c0_i32_0 = arith.constant 0 : i32
    %c0_i32_1 = arith.constant 0 : i32
    return %c0_i32, %c0_i32_0 : i32, i32
  }
  func.func @transform_4(%arg0: i32) -> (i32, i32) {
    %c0_i32 = arith.constant 0 : i32
    %c0_i32_0 = arith.constant 0 : i32
    %c0_i32_1 = arith.constant 0 : i32
    return %c0_i32, %c0_i32_0 : i32, i32
  }
  func.func @transform_5(%arg0: i32) -> (i32, i32) {
    %c0_i32 = arith.constant 0 : i32
    %c0_i32_0 = arith.constant 0 : i32
    %c0_i32_1 = arith.constant 0 : i32
    return %c0_i32, %c0_i32_0 : i32, i32
  }
  func.func @transform_6(%arg0: i32) -> (i32, i32) {
    %c0_i32 = arith.constant 0 : i32
    %c0_i32_0 = arith.constant 0 : i32
    %c0_i32_1 = arith.constant 0 : i32
    return %c0_i32, %c0_i32_0 : i32, i32
  }
  func.func @transform_7(%arg0: i32) -> (i32, i32, i32) {
    %c0_i32 = arith.constant 0 : i32
    %c0_i32_0 = arith.constant 0 : i32
    %c0_i32_1 = arith.constant 0 : i32
    return %arg0, %c0_i32, %c0_i32_0 : i32, i32, i32
  }
}

</mosaic_0001>

<bundles_post_ra>
// kernel: convnet_forward.1
= control target key start
LH: loop header
LB: loop body
LE: loop exit
PB: predicated region body
PF: predicated region fallthrough
CT: control target
= control target key end

     0   :  { %12 = vsyncpa [#allocation3], 0  ;;  %s6170_s24 = smov 0   ;;  %s9775_s0 = inlined_call_operand.vmem [shape: f32[2,1,930], index: 0, kind: input, shape index: {}]   ;;  %s9776_s1 = inlined_call_operand.vmem [shape: f32[32,9], index: 1, kind: input, shape index: {}]   ;;  %s9777_s2 = inlined_call_operand.vmem [shape: f32[32,1], index: 2, kind: input, shape index: {}]   ;;  %s9778_s3 = inlined_call_operand.vmem [shape: bf16[64,288], index: 3, kind: input, shape index: {}]   ;;  %s9779_s4 = inlined_call_operand.vmem [shape: f32[64,1], index: 4, kind: input, shape index: {}]   ;;  %s9780_s5 = inlined_call_operand.vmem [shape: bf16[809,272], index: 5, kind: input, shape index: {}]   ;;  %s9781_s6 = inlined_call_operand.hbm [shape: bf16[207,49], index: 6, kind: input, shape index: {}]   ;;  %s9782_s7 = inlined_call_operand.vmem [shape: f32[2,64,49], index: 7, kind: output, shape index: {}]  }
   0x1 LB: > { %s6176_s25 = sadd.s32 4294967295, %s6102_s24   ;;  %p5063_p0 = scmp.ge.s32.totalorder %s6102_s24, 1  ;;  %s6102_s24 = sphi %s6170_s24, %s18_s24  }
   0x2   : > { %p201_p1 = scmp.lt.s32.totalorder %s6102_s24, 3  ;;  %s6104_s26 = smov [#allocation2]  }
   0x3   : > { %s228_s27 = sshll.u32 %s6104_s26, 4  ;;  %p5371_p3 = scmp.eq.s32.totalorder %s6176_s25, 0  ;;  %s229_s27 = int_to_ptr.vmem [resolvable:$true] %s228_s27 }
   0x4   : > { %p6180_p2 = pnand %p5063_p0, %p201_p1  ;;  %s6077_s29 = scalar_lea.vmem %s229_s27, 1664 }
   0x5   : > { %p6078_p7 = scmp.ne.s32.totalorder %s229_s27, %s6077_s29  ;;  %p6085_p10 = scmp.lt.s32.totalorder %s229_s27, %s229_s27 }
   0x6   : > { %p5367_p4 = pneg %p6180_p2  ;;  %p6086_p11 = scmp.lt.s32.totalorder %s6077_s29, %s6077_s29 }
   0x8   : > { %p5368_p5 = pnand %p5371_p3, %p5367_p4  ;;  %p6087_p12 = por %p6086_p11, %p6085_p10 }
   0xa   : > { %p6068_p6 = pneg %p5368_p5 }
   0xc   : > { %p6080_p8 = pnand %p6078_p7, %p6068_p6 }
   0xe   : > { %p6081_p9 = pneg %p6080_p8 }
  0x10   : > { %p6088_p13 = pnand %p6087_p12, %p6081_p9 }
  0x12   : > { %6091 = shalt.err (!%p6088_p13)
}
  0x13   : > { %s6105_s30 = smov 64   ;;  %s6106_s8 = smov 4  }
  0x14   : > { %5370 = dma.hbm_to_vmem [thread:$0]  (!%p5368_p5), %s9781_s6, 1664, %s229_s27, [#allocation3], %s6105_s30, %s6105_s30, %s6106_s8  }
  0x15   : > { %251 = sbr.rel (%p6180_p2) target bundleno = 2111 (0x83f), region = 48 }
  0x1a   : > { %6097 = dma.done.wait (%p5371_p3), [#allocation3], 1664  }
  0x1b   : > { %6099 = vsyncadd (%p5371_p3), [#allocation3], 4294965632  ;;  %v6107_v0 = vmov 3   ;;  %v6108_v1 = vmov 2   ;;  %p282_p0 = scmp.lt.s32.totalorder %s6176_s25, 1  ;;  %v318_v2 = vlaneseq  ;;  %v6212_v4 = vld [vmem:[%s9776_s1] sm:$0xff] }
  0x1c   : > { %5408 = vset.pattern.permute.xlu0 %v6107_v0  ;;  %5407 = vset.pattern.permute.xlu1 %v6108_v1  ;;  %v6224_v9 = vld [vmem:[%s9776_s1 + $0x8] sm:$0xff]  ;;  %v6109_v13 = vmov 6   ;;  %v6110_v14 = vmov 1   ;;  %v295_v15 = vld [vmem:[%s9776_s1 + $0x10] sm:$0xff]  ;;  %v6111_v16 = vmov 4   ;;  %v6112_v17 = vmov 5  }
  0x1d   : > { %s10410_s25 = smov (!%p282_p0, %s6176_s25), 1  ;;  %v6203_v3 = vshrl.u32 %v318_v2, 7  ;;  %828 = vperm.xlu0 %5408, %v6212_v4   ;;  %619 = vperm.xlu1 %5407, %v6212_v4   ;;  %v6248_v18 = vld [vmem:[%s9776_s1 + $0x18] sm:$0xff]  ;;  %v6113_v19 = vmov 7   ;;  %v6114_v20 = vmov 8   ;;  %v9783_v21 = vmov 0  }
  0x1e   : > { %s5068_s11 = sshll.u32 %s10410_s25, 3  ;;  %s6116_s23 = smov 127   ;;  %vm537_vm0 = vcmask 1039360   ;;  %vm746_vm1 = vcmask 1031168   ;;  %vm955_vm2 = vcmask 801792   ;;  %vm1164_vm3 = vcmask 793600  }
  0x1f   : > { %s285_s14 = scalar_lea.vmem %s9775_s0, %s5068_s11  ;;  %v340_v5 = vsub.s32 5, %v6203_v3  ;;  %v344_v6 = vsub.s32 6, %v6203_v3  ;;  %v1472_v8 = vsub.s32 7, %v6203_v3  ;;  %v328_v25 = vsub.s32 2, %v6203_v3  ;;  %s6117_s26 = smov 126  }
  0x20   : > { %v6218_v7 = vld [vmem:[%s285_s14] sm:$0xff]  ;;  %v324_v26 = vsub.s32 1, %v6203_v3  ;;  %v336_v30 = vsub.s32 4, %v6203_v3  ;;  %v332_v31 = vsub.s32 3, %v6203_v3  ;;  %v320_v44 = vsub.s32 0, %v6203_v3  ;;  %s6118_s27 = smov 98  }
  0x21   : > { %v6227_v10 = vrot.slane %v6218_v7, %v340_v5  ;;  %v6230_v11 = vrot.slane %v6218_v7, %v344_v6  ;;  %v6233_v12 = vrot.slane %v6218_v7, %v1472_v8  ;;  %5412 = vset.pattern.permute.xlu0 %v6109_v13  ;;  %623 = vperm.xlu1 %5407, %v6224_v9   ;;  %s6119_s28 = smov 97   ;;  %s6120_s29 = smov 96   ;;  %vm1373_vm4 = vcmask 785408  }
  0x22   : > { %1455 = vperm.xlu0 %5412, %v6212_v4   ;;  %v6282_v28 = vrot.slane %v6218_v7, %v328_v25  ;;  %v6285_v29 = vrot.slane %v6218_v7, %v324_v26  ;;  %v6300_v36 = vrot.slane %v6218_v7, %v336_v30  ;;  %v6303_v37 = vrot.slane %v6218_v7, %v332_v31  ;;  %s6121_s30 = smov 68   ;;  %s6122_s8 = smov 67  }
  0x23   : > { %9974 = vst [vmem:[#allocation5_spill] sm:$0xff] %v6227_v10  ;;  %9975 = vst [vmem:[#allocation6_spill] sm:$0xff] %v6230_v11  ;;  %v6331_v48 = vrot.slane %v6218_v7, %v320_v44  ;;  %s6123_s13 = smov 66   ;;  %vm1603_vm5 = vcmask 556032   ;;  %vm1832_vm6 = vcmask 547840   ;;  %vm2061_vm7 = vcmask 539648  }
  0x24   : > { %9976 = vst [vmem:[#allocation7_spill] sm:$0xff] %v6282_v28  ;;  %9977 = vst [vmem:[#allocation8_spill] sm:$0xff] %v6285_v29  ;;  %vm3592_vm8 = vcmask 1043456   ;;  %vm3593_vm9 = vcmask 1044480   ;;  %vm3585_vm10 = vcmask 334848   ;;  %s6125_s10 = smov 112  }
  0x25   : > { %5409 = vset.pattern.permute.xlu1 %v6107_v0  ;;  %9978 = vst [vmem:[#allocation9_spill] sm:$0xff] %v6300_v36  ;;  %9979 = vst [vmem:[#allocation10_spill] sm:$0xff] %v6303_v37  ;;  %s6126_s11 = smov 95   ;;  %s6128_s12 = smov 111   ;;  %vm4093_vm11 = vcmask 916480   ;;  %vm4220_vm12 = vcmask 777216  }
  0x26   : > { %5413 = vset.pattern.permute.xlu0 %v6110_v14  ;;  %832 = vperm.xlu1 %5409, %v6224_v9   ;;  %9980 = vst [vmem:[#allocation11_spill] sm:$0xff] %v6331_v48  ;;  %vm4151_vm13 = vcmask 900096   ;;  %vm4261_vm14 = vcmask 769024   ;;  %vm4122_vm15 = vcmask 908288  }
  0x27   : > { %410 = vperm.xlu0 %5413, %v6212_v4  }
  0x2a   : > { %5410 = vset.pattern.permute.xlu1 %v6111_v16 }
  0x2b   : > { %414 = vperm.xlu0 %5413, %v6224_v9   ;;  %1037 = vperm.xlu1 %5410, %v6212_v4  }
  0x2f   : > { %418 = vperm.xlu0 %5413, %v295_v15   ;;  %5411 = vset.pattern.permute.xlu1 %v6112_v17 }
  0x30   : > { %1246 = vperm.xlu1 %5411, %v6212_v4  }
  0x33   : > { %5419 = vset.pattern.permute.xlu0 %v6108_v1 }
  0x34   : > { %1250 = vperm.xlu1 %5411, %v6224_v9   ;;  %631 = vperm.xlu0 %5419, %v6248_v18  }
  0x38   : > { %5414 = vset.pattern.permute.xlu1 %v6109_v13  ;;  %5420 = vset.pattern.permute.xlu0 %v6111_v16 }
  0x39   : > { %1459 = vperm.xlu1 %5414, %v6224_v9   ;;  %1041 = vperm.xlu0 %5420, %v6224_v9  }
  0x3d   : > { %5415 = vset.pattern.permute.xlu1 %v6113_v19  ;;  %1045 = vperm.xlu0 %5420, %v295_v15  }
  0x3e   : > { %1689 = vperm.xlu1 %5415, %v6212_v4  }
  0x41   : > { %5424 = vset.pattern.permute.xlu0 %v6112_v17 }
  0x42   : > { %5416 = vset.pattern.permute.xlu1 %v6114_v20  ;;  %1258 = vperm.xlu0 %5424, %v6248_v18  }
  0x43   : > { %1918 = vperm.xlu1 %5416, %v6212_v4  }
  0x46   : > { %5425 = vset.pattern.permute.xlu0 %v6113_v19 }
  0x47   : > { %1922 = vperm.xlu1 %5416, %v6224_v9   ;;  %1693 = vperm.xlu0 %5425, %v6224_v9  }
  0x4b   : > { %5417 = vset.pattern.permute.xlu1 %v6110_v14  ;;  %1697 = vperm.xlu0 %5425, %v295_v15  }
  0x4c   : > { %422 = vperm.xlu1 %5417, %v6248_v18  }
  0x4f   : > { %5429 = vset.pattern.permute.xlu0 %v6114_v20 }
  0x50   : > { %5418 = vset.pattern.permute.xlu1 %v6108_v1  ;;  %1930 = vperm.xlu0 %5429, %v6248_v18  }
  0x51   : > { %627 = vperm.xlu1 %5418, %v295_v15  }
  0x54   : > { %5431 = vset.pattern.permute.xlu0 %v9783_v21 }
  0x55   : > { %5421 = vset.pattern.permute.xlu1 %v6107_v0 }
  0x56   : > { %836 = vperm.xlu1 %5421, %v295_v15  }
  0x5a   : > { %840 = vperm.xlu1 %5421, %v6248_v18  }
  0x5e   : > { %5422 = vset.pattern.permute.xlu1 %v6111_v16 }
  0x5f   : > { %1049 = vperm.xlu1 %5422, %v6248_v18  }
  0x63   : > { %5423 = vset.pattern.permute.xlu1 %v6112_v17 }
  0x64   : > { %1254 = vperm.xlu1 %5423, %v295_v15  }
  0x68   : > { %5426 = vset.pattern.permute.xlu1 %v6109_v13 }
  0x69   : > { %1463 = vperm.xlu1 %5426, %v295_v15  }
  0x6d   : > { %1467 = vperm.xlu1 %5426, %v6248_v18  }
  0x71   : > { %5427 = vset.pattern.permute.xlu1 %v6113_v19 }
  0x72   : > { %1701 = vperm.xlu1 %5427, %v6248_v18  }
  0x76   : > { %5428 = vset.pattern.permute.xlu1 %v6114_v20 }
  0x77   : > { %1926 = vperm.xlu1 %5428, %v295_v15  }
  0x7b   : > { %5430 = vset.pattern.permute.xlu1 %v9783_v21 }
  0x7c   : > { %299 = vperm.xlu1 %5430, %v6212_v4  }
  0x80   : > { %304 = vperm.xlu1 %5430, %v6224_v9  }
  0x98   : > { %v6271_v22 = vpop.permute.xlu0 %828  ;;  %v6273_v23 = vpop.permute.xlu1 %619 }
  0x99   : > { %v636_v51 = vmul.f32 %v6273_v23, %v6282_v28  ;;  %v635_v52 = vmul.f32 %v6273_v23, %v6285_v29  ;;  %v638_v55 = vmul.f32 %v6273_v23, %v6300_v36  ;;  %v637_v56 = vmul.f32 %v6273_v23, %v6303_v37 }
  0x9a   : > { %v634_v0 = vmul.f32 %v6273_v23, %v6331_v48  ;;  %v845_v1 = vmul.f32 %v6271_v22, %v6282_v28  ;;  %v844_v2 = vmul.f32 %v6271_v22, %v6285_v29  ;;  %v847_v4 = vmul.f32 %v6271_v22, %v6300_v36 }
  0x9b   : > { %v846_v5 = vmul.f32 %v6271_v22, %v6303_v37  ;;  %v843_v17 = vmul.f32 %v6271_v22, %v6331_v48 }
  0x9c   : > { %v6279_v27 = vpop.permute.xlu1 %623 }
  0x9d   : > { %v6275_v24 = vpop.permute.xlu0 %1455  ;;  %v643_v57 = vmul.f32 %v6279_v27, %v6282_v28  ;;  %v642_v58 = vmul.f32 %v6279_v27, %v6285_v29  ;;  %v645_v60 = vmul.f32 %v6279_v27, %v6300_v36  ;;  %v644_v61 = vmul.f32 %v6279_v27, %v6303_v37 }
  0x9e   : > { %v641_v63 = vmul.f32 %v6279_v27, %v6331_v48 }
  0xa1   : > { %v6295_v35 = vpop.permute.xlu1 %832 }
  0xa2   : > { %v6289_v32 = vpop.permute.xlu0 %410  ;;  %v852_v7 = vmul.f32 %v6295_v35, %v6282_v28  ;;  %v851_v8 = vmul.f32 %v6295_v35, %v6285_v29  ;;  %v854_v13 = vmul.f32 %v6295_v35, %v6300_v36  ;;  %v853_v14 = vmul.f32 %v6295_v35, %v6303_v37 }
  0xa3   : > { %v427_v33 = vmul.f32 %v6289_v32, %v6282_v28  ;;  %v426_v34 = vmul.f32 %v6289_v32, %v6285_v29  ;;  %v429_v38 = vmul.f32 %v6289_v32, %v6300_v36  ;;  %v428_v39 = vmul.f32 %v6289_v32, %v6303_v37 }
  0xa4   : > { %v425_v50 = vmul.f32 %v6289_v32, %v6331_v48  ;;  %v850_v16 = vmul.f32 %v6295_v35, %v6331_v48 }
  0xa5   : > { %485 = vrot.lane.b32.xlu1 %v427_v33, %s6116_s23  ;;  %483 = vrot.lane.b32.xlu0 %v426_v34, %s6116_s23 }
  0xa6   : > { %v6309_v40 = vpop.permute.xlu0 %414  ;;  %v6313_v41 = vpop.permute.xlu1 %1037 }
  0xa7   : > { %v434_v42 = vmul.f32 %v6309_v40, %v6282_v28  ;;  %v433_v43 = vmul.f32 %v6309_v40, %v6285_v29  ;;  %v436_v45 = vmul.f32 %v6309_v40, %v6300_v36  ;;  %v435_v46 = vmul.f32 %v6309_v40, %v6303_v37 }
  0xa8   : > { %v432_v49 = vmul.f32 %v6309_v40, %v6331_v48  ;;  %v1054_v25 = vmul.f32 %v6313_v41, %v6282_v28  ;;  %v1053_v26 = vmul.f32 %v6313_v41, %v6285_v29  ;;  %v1056_v31 = vmul.f32 %v6313_v41, %v6300_v36 }
  0xa9   : > { %489 = vrot.lane.b32.xlu1 %v429_v38, %s6116_s23  ;;  %487 = vrot.lane.b32.xlu0 %v428_v39, %s6116_s23  ;;  %v1055_v33 = vmul.f32 %v6313_v41, %v6303_v37 }
  0xaa   : > { %v6407_v15 = vpop.permute.xlu0 %418 }
  0xab   : > { %v6326_v47 = vpop.permute.xlu1 %1246 }
  0xad   : > { %499 = vrot.lane.b32.xlu1 %v434_v42, %s6116_s23  ;;  %497 = vrot.lane.b32.xlu0 %v433_v43, %s6116_s23 }
  0xaf   : > { %v6343_v53 = vpop.permute.xlu1 %1250  ;;  %v6417_v20 = vpop.permute.xlu0 %631 }
  0xb1   : > { %503 = vrot.lane.b32.xlu1 %v436_v45, %s6116_s23  ;;  %501 = vrot.lane.b32.xlu0 %v435_v46, %s6116_s23 }
  0xb4   : > { %v6347_v54 = vpop.permute.xlu1 %1459  ;;  %v6431_v34 = vpop.permute.xlu0 %1041 }
  0xb5   : > { %495 = vrot.lane.b32.xlu1 %v432_v49, %s6116_s23  ;;  %481 = vrot.lane.b32.xlu0 %v425_v50, %s6116_s23  ;;  %v1061_v38 = vmul.f32 %v6431_v34, %v6282_v28  ;;  %v1060_v39 = vmul.f32 %v6431_v34, %v6285_v29  ;;  %v1063_v43 = vmul.f32 %v6431_v34, %v6300_v36 }
  0xb6   : > { %v1062_v44 = vmul.f32 %v6431_v34, %v6303_v37  ;;  %v1059_v46 = vmul.f32 %v6431_v34, %v6331_v48  ;;  %v1052_v49 = vmul.f32 %v6313_v41, %v6331_v48  ;;  %v1263_v50 = vmul.f32 %v6326_v47, %v6282_v28 }
  0xb9   : > { %694 = vrot.lane.b32.xlu1 %v636_v51, %s6117_s26  ;;  %692 = vrot.lane.b32.xlu0 %v635_v52, %s6117_s26  ;;  %v6359_v59 = vpop.permute.xlu1 %1689  ;;  %v1262_v51 = vmul.f32 %v6326_v47, %v6285_v29 }
  0xbd   : > { %698 = vrot.lane.b32.xlu1 %v638_v55, %s6117_s26  ;;  %696 = vrot.lane.b32.xlu0 %v637_v56, %s6117_s26  ;;  %v1265_v55 = vmul.f32 %v6326_v47, %v6300_v36  ;;  %v1264_v56 = vmul.f32 %v6326_v47, %v6303_v37 }
  0xbe   : > { %v6369_v62 = vpop.permute.xlu1 %1918 }
  0xc1   : > { %708 = vrot.lane.b32.xlu1 %v643_v57, %s6117_s26  ;;  %706 = vrot.lane.b32.xlu0 %v642_v58, %s6117_s26  ;;  %v6473_v58 = vpop.permute.xlu0 %1045 }
  0xc2   : > { %v6381_v3 = vpop.permute.xlu1 %1922 }
  0xc5   : > { %712 = vrot.lane.b32.xlu1 %v645_v60, %s6117_s26  ;;  %710 = vrot.lane.b32.xlu0 %v644_v61, %s6117_s26  ;;  %v1270_v60 = vmul.f32 %v6343_v53, %v6282_v28  ;;  %v1269_v61 = vmul.f32 %v6343_v53, %v6285_v29 }
  0xc7   : > { %v6389_v6 = vpop.permute.xlu1 %422 }
  0xc9   : > { %704 = vrot.lane.b32.xlu1 %v641_v63, %s6117_s26  ;;  %690 = vrot.lane.b32.xlu0 %v634_v0, %s6117_s26  ;;  %v1272_v63 = vmul.f32 %v6343_v53, %v6300_v36  ;;  %v1271_v0 = vmul.f32 %v6343_v53, %v6303_v37 }
  0xcc   : > { %v6399_v9 = vpop.permute.xlu1 %627 }
  0xcd   : > { %903 = vrot.lane.b32.xlu1 %v845_v1, %s6118_s27  ;;  %901 = vrot.lane.b32.xlu0 %v844_v2, %s6118_s27  ;;  %v6485_v1 = vpop.permute.xlu0 %1258 }
  0xd1   : > { %907 = vrot.lane.b32.xlu1 %v847_v4, %s6118_s27  ;;  %905 = vrot.lane.b32.xlu0 %v846_v5, %s6118_s27  ;;  %v6413_v19 = vpop.permute.xlu1 %836  ;;  %v1268_v4 = vmul.f32 %v6343_v53, %v6331_v48  ;;  %v1261_v5 = vmul.f32 %v6326_v47, %v6331_v48 }
  0xd5   : > { %917 = vrot.lane.b32.xlu1 %v852_v7, %s6118_s27  ;;  %915 = vrot.lane.b32.xlu0 %v851_v8, %s6118_s27  ;;  %v6425_v30 = vpop.permute.xlu1 %840  ;;  %v6497_v7 = vpop.permute.xlu0 %1693 }
  0xd9   : > { %921 = vrot.lane.b32.xlu1 %v854_v13, %s6118_s27  ;;  %919 = vrot.lane.b32.xlu0 %v853_v14, %s6118_s27  ;;  %v1477_v13 = vmul.f32 %v6275_v24, %v6282_v28  ;;  %v1476_v14 = vmul.f32 %v6275_v24, %v6285_v29 }
  0xda   : > { %v6439_v42 = vpop.permute.xlu1 %1049 }
  0xdd   : > { %913 = vrot.lane.b32.xlu1 %v850_v16, %s6118_s27  ;;  %899 = vrot.lane.b32.xlu0 %v843_v17, %s6118_s27  ;;  %v1479_v16 = vmul.f32 %v6275_v24, %v6300_v36  ;;  %v1478_v17 = vmul.f32 %v6275_v24, %v6303_v37 }
  0xdf   : > { %v6449_v45 = vpop.permute.xlu1 %1254 }
  0xe1   : > { %1112 = vrot.lane.b32.xlu1 %v1054_v25, %s6119_s28  ;;  %1110 = vrot.lane.b32.xlu0 %v1053_v26, %s6119_s28  ;;  %v6511_v25 = vpop.permute.xlu0 %1697 }
  0xe4   : > { %v6461_v52 = vpop.permute.xlu1 %1463 }
  0xe5   : > { %1116 = vrot.lane.b32.xlu1 %v1056_v31, %s6119_s28  ;;  %1114 = vrot.lane.b32.xlu0 %v1055_v33, %s6119_s28  ;;  %v1485_v31 = vmul.f32 %v6347_v54, %v6282_v28  ;;  %v1484_v33 = vmul.f32 %v6347_v54, %v6285_v29 }
  0xe8   : > { %v6471_v57 = vpop.permute.xlu1 %1467 }
  0xe9   : > { %1126 = vrot.lane.b32.xlu1 %v1061_v38, %s6119_s28  ;;  %1124 = vrot.lane.b32.xlu0 %v1060_v39, %s6119_s28  ;;  %v6523_v38 = vpop.permute.xlu0 %1930 }
  0xed   : > { %1130 = vrot.lane.b32.xlu1 %v1063_v43, %s6119_s28  ;;  %1128 = vrot.lane.b32.xlu0 %v1062_v44, %s6119_s28  ;;  %v6487_v2 = vpop.permute.xlu1 %1701  ;;  %v1487_v43 = vmul.f32 %v6347_v54, %v6300_v36  ;;  %v1486_v44 = vmul.f32 %v6347_v54, %v6303_v37 }
  0xf1   : > { %1122 = vrot.lane.b32.xlu1 %v1059_v46, %s6119_s28  ;;  %1108 = vrot.lane.b32.xlu0 %v1052_v49, %s6119_s28 }
  0xf2   : > { %v6499_v8 = vpop.permute.xlu1 %1926 }
  0xf5   : > { %1321 = vrot.lane.b32.xlu1 %v1263_v50, %s6120_s29  ;;  %1319 = vrot.lane.b32.xlu0 %v1262_v51, %s6120_s29  ;;  %v1483_v50 = vmul.f32 %v6347_v54, %v6331_v48  ;;  %v1475_v51 = vmul.f32 %v6275_v24, %v6331_v48 }
  0xf7   : > { %v6513_v26 = vpop.permute.xlu1 %299 }
  0xf8   : > { %9981 = vst [vmem:[#allocation12_spill] sm:$0xff] %v6513_v26 }
  0xf9   : > { %1325 = vrot.lane.b32.xlu1 %v1265_v55, %s6120_s29  ;;  %1323 = vrot.lane.b32.xlu0 %v1264_v56, %s6120_s29 }
  0xfb   : > { %v6525_v39 = vpop.permute.xlu1 %304 }
  0xfc   : > { %9982 = vst [vmem:[#allocation13_spill] sm:$0xff] %v6525_v39 }
  0xfd   : > { %1335 = vrot.lane.b32.xlu1 %v1270_v60, %s6120_s29  ;;  %1333 = vrot.lane.b32.xlu0 %v1269_v61, %s6120_s29  ;;  %v1706_v60 = vmul.f32 %v6359_v59, %v6282_v28  ;;  %v1705_v61 = vmul.f32 %v6359_v59, %v6285_v29 }
 0x101   : > { %1339 = vrot.lane.b32.xlu1 %v1272_v63, %s6120_s29  ;;  %1337 = vrot.lane.b32.xlu0 %v1271_v0, %s6120_s29 }
 0x105   : > { %1331 = vrot.lane.b32.xlu1 %v1268_v4, %s6120_s29  ;;  %1317 = vrot.lane.b32.xlu0 %v1261_v5, %s6120_s29  ;;  %v1708_v4 = vmul.f32 %v6359_v59, %v6300_v36  ;;  %v1707_v5 = vmul.f32 %v6359_v59, %v6303_v37 }
 0x109   : > { %1543 = vrot.lane.b32.xlu1 %v1477_v13, %s6121_s30  ;;  %1541 = vrot.lane.b32.xlu0 %v1476_v14, %s6121_s30 }
 0x10d   : > { %1547 = vrot.lane.b32.xlu1 %v1479_v16, %s6121_s30  ;;  %1545 = vrot.lane.b32.xlu0 %v1478_v17, %s6121_s30  ;;  %v1714_v16 = vmul.f32 %v6497_v7, %v6282_v28  ;;  %v1713_v17 = vmul.f32 %v6497_v7, %v6285_v29 }
 0x111   : > { %1559 = vrot.lane.b32.xlu1 %v1485_v31, %s6121_s30  ;;  %1557 = vrot.lane.b32.xlu0 %v1484_v33, %s6121_s30 }
 0x115   : > { %1563 = vrot.lane.b32.xlu1 %v1487_v43, %s6121_s30  ;;  %1561 = vrot.lane.b32.xlu0 %v1486_v44, %s6121_s30  ;;  %v1716_v43 = vmul.f32 %v6497_v7, %v6300_v36  ;;  %v1715_v44 = vmul.f32 %v6497_v7, %v6303_v37 }
 0x117   : > { %v6533_v46 = vpop.permute.xlu1 %485  ;;  %v6535_v49 = vpop.permute.xlu0 %483 }
 0x119   : > { %1555 = vrot.lane.b32.xlu1 %v1483_v50, %s6121_s30  ;;  %1539 = vrot.lane.b32.xlu0 %v1475_v51, %s6121_s30  ;;  %v2147_v50 = vld [vmem:[%s9777_s2 + $0x8] sm:$0xff]  ;;  %v2146_v51 = vld [vmem:[%s9777_s2] sm:$0xff] }
 0x11b   : > { %v6543_v55 = vpop.permute.xlu1 %489  ;;  %v6545_v56 = vpop.permute.xlu0 %487 }
 0x11c   : > { %9983 = vst [vmem:[#allocation14_spill] sm:$0xff] %v6543_v55 }
 0x11d   : > { %1772 = vrot.lane.b32.xlu1 %v1706_v60, %s6122_s8  ;;  %1770 = vrot.lane.b32.xlu0 %v1705_v61, %s6122_s8 }
 0x11f   : > { %v6553_v63 = vpop.permute.xlu1 %499  ;;  %v6555_v0 = vpop.permute.xlu0 %497 }
 0x121   : > { %1776 = vrot.lane.b32.xlu1 %v1708_v4, %s6122_s8  ;;  %1774 = vrot.lane.b32.xlu0 %v1707_v5, %s6122_s8 }
 0x123   : > { %v6563_v13 = vpop.permute.xlu1 %503  ;;  %v6565_v14 = vpop.permute.xlu0 %501 }
 0x125   : > { %1788 = vrot.lane.b32.xlu1 %v1714_v16, %s6122_s8  ;;  %1786 = vrot.lane.b32.xlu0 %v1713_v17, %s6122_s8  ;;  %v1704_v16 = vmul.f32 %v6359_v59, %v6331_v48  ;;  %v1712_v17 = vmul.f32 %v6497_v7, %v6331_v48 }
 0x127   : > { %v6573_v31 = vpop.permute.xlu1 %495  ;;  %v6575_v33 = vpop.permute.xlu0 %481 }
 0x129   : > { %1792 = vrot.lane.b32.xlu1 %v1716_v43, %s6122_s8  ;;  %1790 = vrot.lane.b32.xlu0 %v1715_v44, %s6122_s8 }
 0x12b   : > { %v6589_v60 = vpop.permute.xlu1 %694  ;;  %v6591_v61 = vpop.permute.xlu0 %692 }
 0x12d   : > { %2157 = vperm.xlu1 %5430, %v2147_v50   ;;  %2152 = vperm.xlu0 %5431, %v2146_v51   ;;  %v430_v50 = vmul.f32 %v6289_v32, %v6227_v10  ;;  %v431_v51 = vmul.f32 %v6289_v32, %v6230_v11 }
 0x12f   : > { %v6593_v4 = vpop.permute.xlu1 %698  ;;  %v6595_v5 = vpop.permute.xlu0 %696 }
 0x130   : > { %9984 = vst [vmem:[#allocation15_spill] sm:$0xff] %v6593_v4 }
 0x131   : > { %1768 = vrot.lane.b32.xlu1 %v1704_v16, %s6122_s8  ;;  %1784 = vrot.lane.b32.xlu0 %v1712_v17, %s6122_s8  ;;  %v437_v16 = vmul.f32 %v6309_v40, %v6227_v10  ;;  %v438_v17 = vmul.f32 %v6309_v40, %v6230_v11 }
 0x133   : > { %v6603_v43 = vpop.permute.xlu1 %708  ;;  %v6605_v44 = vpop.permute.xlu0 %706 }
 0x134   : > { %9985 = vst [vmem:[#allocation16_spill] sm:$0xff] %v6605_v44 }
 0x135   : > { %491 = vrot.lane.b32.xlu1 %v430_v50, %s6116_s23  ;;  %493 = vrot.lane.b32.xlu0 %v431_v51, %s6116_s23  ;;  %v1934_v50 = vmul.f32 %v6369_v62, %v6285_v29  ;;  %v1935_v51 = vmul.f32 %v6369_v62, %v6282_v28 }
 0x137   : > { %v6613_v21 = vpop.permute.xlu1 %712  ;;  %v6615_v4 = vpop.permute.xlu0 %710 }
 0x138   : > { %9986 = vst [vmem:[#allocation17_spill] sm:$0xff] %v6613_v21 }
 0x139   : > { %505 = vrot.lane.b32.xlu1 %v437_v16, %s6116_s23  ;;  %507 = vrot.lane.b32.xlu0 %v438_v17, %s6116_s23  ;;  %v1936_v17 = vmul.f32 %v6369_v62, %v6303_v37 }
 0x13b   : > { %v6623_v44 = vpop.permute.xlu1 %704  ;;  %v6625_v32 = vpop.permute.xlu0 %690 }
 0x13c   : > { %9987 = vst [vmem:[#allocation18_spill] sm:$0xff] %v6623_v44  ;;  %9988 = vst [vmem:[#allocation19_spill] sm:$0xff] %v6625_v32  ;;  %v1937_v32 = vmul.f32 %v6369_v62, %v6300_v36 }
 0x13d   : > { %1999 = vrot.lane.b32.xlu1 %v1934_v50, %s6123_s13  ;;  %2001 = vrot.lane.b32.xlu0 %v1935_v51, %s6123_s13  ;;  %v1942_v50 = vmul.f32 %v6381_v3, %v6285_v29  ;;  %v1943_v51 = vmul.f32 %v6381_v3, %v6282_v28 }
 0x13f   : > { %v6633_v40 = vpop.permute.xlu1 %903  ;;  %v6635_v16 = vpop.permute.xlu0 %901 }
 0x140   : > { %9989 = vst [vmem:[#allocation20_spill] sm:$0xff] %v6633_v40  ;;  %9990 = vst [vmem:[#allocation21_spill] sm:$0xff] %v6635_v16 }
 0x141   : > { %2003 = vrot.lane.b32.xlu1 %v1936_v17, %s6123_s13  ;;  %2005 = vrot.lane.b32.xlu0 %v1937_v32, %s6123_s13  ;;  %v1944_v32 = vmul.f32 %v6381_v3, %v6303_v37  ;;  %v1945_v17 = vmul.f32 %v6381_v3, %v6300_v36 }
 0x143   : > { %v6643_v44 = vpop.permute.xlu1 %907  ;;  %v6645_v21 = vpop.permute.xlu0 %905 }
 0x144   : > { %9991 = vst [vmem:[#allocation22_spill] sm:$0xff] %v6643_v44  ;;  %9992 = vst [vmem:[#allocation23_spill] sm:$0xff] %v6645_v21 }
 0x145   : > { %2015 = vrot.lane.b32.xlu1 %v1942_v50, %s6123_s13  ;;  %2017 = vrot.lane.b32.xlu0 %v1943_v51, %s6123_s13  ;;  %v1933_v50 = vmul.f32 %v6369_v62, %v6331_v48  ;;  %v1941_v51 = vmul.f32 %v6381_v3, %v6331_v48 }
 0x147   : > { %v6653_v16 = vpop.permute.xlu1 %917  ;;  %v6655_v40 = vpop.permute.xlu0 %915 }
 0x148   : > { %9993 = vst [vmem:[#allocation24_spill] sm:$0xff] %v6653_v16  ;;  %9994 = vst [vmem:[#allocation25_spill] sm:$0xff] %v6655_v40 }
 0x149   : > { %2019 = vrot.lane.b32.xlu1 %v1944_v32, %s6123_s13  ;;  %2021 = vrot.lane.b32.xlu0 %v1945_v17, %s6123_s13  ;;  %v6065_v32 = vld [vmem:[%s9776_s1 + $0x10] sm:$0xff] }
 0x14b   : > { %v6663_v44 = vpop.permute.xlu1 %921  ;;  %v6665_v21 = vpop.permute.xlu0 %919 }
 0x14c   : > { %9995 = vst [vmem:[#allocation26_spill] sm:$0xff] %v6663_v44 }
 0x14d   : > { %1997 = vrot.lane.b32.xlu1 %v1933_v50, %s6123_s13  ;;  %2013 = vrot.lane.b32.xlu0 %v1941_v51, %s6123_s13  ;;  %v639_v50 = vmul.f32 %v6273_v23, %v6227_v10  ;;  %v640_v51 = vmul.f32 %v6273_v23, %v6230_v11 }
 0x14f   : > { %v6673_v40 = vpop.permute.xlu1 %913  ;;  %v6675_v16 = vpop.permute.xlu0 %899 }
 0x150   : > { %9996 = vst [vmem:[#allocation27_spill] sm:$0xff] %v6673_v40  ;;  %9997 = vst [vmem:[#allocation28_spill] sm:$0xff] %v6675_v16 }
 0x151   : > { %309 = vperm.xlu1 %5430, %v6065_v32   ;;  %314 = vperm.xlu0 %5431, %v6248_v18   ;;  %v646_v18 = vmul.f32 %v6279_v27, %v6227_v10  ;;  %v647_v32 = vmul.f32 %v6279_v27, %v6230_v11 }
 0x153   : > { %v6681_v17 = vpop.permute.xlu1 %1112  ;;  %v6683_v44 = vpop.permute.xlu0 %1110 }
 0x154   : > { %9998 = vst [vmem:[#allocation29_spill] sm:$0xff] %v6683_v44 }
 0x155   : > { %700 = vrot.lane.b32.xlu1 %v639_v50, %s6117_s26  ;;  %702 = vrot.lane.b32.xlu0 %v640_v51, %s6117_s26  ;;  %v848_v50 = vmul.f32 %v6271_v22, %v6227_v10  ;;  %v849_v51 = vmul.f32 %v6271_v22, %v6230_v11 }
 0x157   : > { %v6691_v16 = vpop.permute.xlu1 %1116  ;;  %v6693_v40 = vpop.permute.xlu0 %1114 }
 0x158   : > { %9999 = vst [vmem:[#allocation30_spill] sm:$0xff] %v6691_v16 }
 0x159   : > { %714 = vrot.lane.b32.xlu1 %v646_v18, %s6117_s26  ;;  %716 = vrot.lane.b32.xlu0 %v647_v32, %s6117_s26  ;;  %v855_v18 = vmul.f32 %v6295_v35, %v6227_v10  ;;  %v856_v32 = vmul.f32 %v6295_v35, %v6230_v11 }
 0x15b   : > { %v6701_v44 = vpop.permute.xlu1 %1126  ;;  %v6703_v23 = vpop.permute.xlu0 %1124 }
 0x15c   : > { %10000 = vst [vmem:[#allocation31_spill] sm:$0xff] %v6703_v23 }
 0x15d   : > { %909 = vrot.lane.b32.xlu1 %v848_v50, %s6118_s27  ;;  %911 = vrot.lane.b32.xlu0 %v849_v51, %s6118_s27  ;;  %v1057_v50 = vmul.f32 %v6313_v41, %v6227_v10  ;;  %v1058_v51 = vmul.f32 %v6313_v41, %v6230_v11 }
 0x15f   : > { %v6711_v16 = vpop.permute.xlu1 %1130  ;;  %v6713_v27 = vpop.permute.xlu0 %1128 }
 0x160   : > { %10001 = vst [vmem:[#allocation32_spill] sm:$0xff] %v6711_v16 }
 0x161   : > { %923 = vrot.lane.b32.xlu1 %v855_v18, %s6118_s27  ;;  %925 = vrot.lane.b32.xlu0 %v856_v32, %s6118_s27  ;;  %v1064_v18 = vmul.f32 %v6431_v34, %v6227_v10  ;;  %v1065_v32 = vmul.f32 %v6431_v34, %v6230_v11 }
 0x163   : > { %v6721_v23 = vpop.permute.xlu1 %1122  ;;  %v6723_v22 = vpop.permute.xlu0 %1108 }
 0x164   : > { %10002 = vst [vmem:[#allocation33_spill] sm:$0xff] %v6723_v22 }
 0x165   : > { %1118 = vrot.lane.b32.xlu1 %v1057_v50, %s6119_s28  ;;  %1120 = vrot.lane.b32.xlu0 %v1058_v51, %s6119_s28  ;;  %v442_v50 = vmul.f32 %v6407_v15, %v6303_v37  ;;  %v443_v51 = vmul.f32 %v6407_v15, %v6300_v36 }
 0x167   : > { %v6731_v16 = vpop.permute.xlu1 %1321  ;;  %v6733_v35 = vpop.permute.xlu0 %1319 }
 0x168   : > { %10003 = vst [vmem:[#allocation34_spill] sm:$0xff] %v6733_v35 }
 0x169   : > { %1132 = vrot.lane.b32.xlu1 %v1064_v18, %s6119_s28  ;;  %1134 = vrot.lane.b32.xlu0 %v1065_v32, %s6119_s28  ;;  %v444_v18 = vmul.f32 %v6407_v15, %v6227_v10  ;;  %v445_v32 = vmul.f32 %v6407_v15, %v6230_v11 }
 0x16b   : > { %v6741_v22 = vpop.permute.xlu1 %1325  ;;  %v6743_v41 = vpop.permute.xlu0 %1323 }
 0x16c   : > { %10004 = vst [vmem:[#allocation35_spill] sm:$0xff] %v6741_v22  ;;  %10005 = vst [vmem:[#allocation36_spill] sm:$0xff] %v6743_v41 }
 0x16d   : > { %515 = vrot.lane.b32.xlu1 %v442_v50, %s6116_s23  ;;  %517 = vrot.lane.b32.xlu0 %v443_v51, %s6116_s23  ;;  %v449_v50 = vmul.f32 %v6389_v6, %v6303_v37  ;;  %v450_v51 = vmul.f32 %v6389_v6, %v6300_v36 }
 0x16f   : > { %v6751_v35 = vpop.permute.xlu1 %1335  ;;  %v6753_v34 = vpop.permute.xlu0 %1333 }
 0x170   : > { %10006 = vst [vmem:[#allocation37_spill] sm:$0xff] %v6751_v35  ;;  %10007 = vst [vmem:[#allocation38_spill] sm:$0xff] %v6753_v34 }
 0x171   : > { %519 = vrot.lane.b32.xlu1 %v444_v18, %s6116_s23  ;;  %521 = vrot.lane.b32.xlu0 %v445_v32, %s6116_s23  ;;  %v451_v18 = vmul.f32 %v6389_v6, %v6227_v10  ;;  %v452_v32 = vmul.f32 %v6389_v6, %v6230_v11 }
 0x173   : > { %v6761_v22 = vpop.permute.xlu1 %1339  ;;  %v6763_v41 = vpop.permute.xlu0 %1337 }
 0x174   : > { %10008 = vst [vmem:[#allocation39_spill] sm:$0xff] %v6761_v22  ;;  %10009 = vst [vmem:[#allocation40_spill] sm:$0xff] %v6763_v41 }
 0x175   : > { %529 = vrot.lane.b32.xlu1 %v449_v50, %s6116_s23  ;;  %531 = vrot.lane.b32.xlu0 %v450_v51, %s6116_s23  ;;  %v1266_v50 = vmul.f32 %v6326_v47, %v6227_v10  ;;  %v1267_v51 = vmul.f32 %v6326_v47, %v6230_v11 }
 0x177   : > { %v6771_v34 = vpop.permute.xlu1 %1331  ;;  %v6773_v35 = vpop.permute.xlu0 %1317 }
 0x178   : > { %10010 = vst [vmem:[#allocation41_spill] sm:$0xff] %v6771_v34  ;;  %10011 = vst [vmem:[#allocation42_spill] sm:$0xff] %v6773_v35 }
 0x179   : > { %533 = vrot.lane.b32.xlu1 %v451_v18, %s6116_s23  ;;  %535 = vrot.lane.b32.xlu0 %v452_v32, %s6116_s23  ;;  %v1273_v18 = vmul.f32 %v6343_v53, %v6227_v10  ;;  %v1274_v32 = vmul.f32 %v6343_v53, %v6230_v11 }
 0x17b   : > { %v6781_v22 = vpop.permute.xlu1 %1543  ;;  %v6783_v41 = vpop.permute.xlu0 %1541 }
 0x17c   : > { %10012 = vst [vmem:[#allocation43_spill] sm:$0xff] %v6783_v41 }
 0x17d   : > { %1327 = vrot.lane.b32.xlu1 %v1266_v50, %s6120_s29  ;;  %1329 = vrot.lane.b32.xlu0 %v1267_v51, %s6120_s29  ;;  %v441_v50 = vmul.f32 %v6407_v15, %v6282_v28  ;;  %v448_v51 = vmul.f32 %v6389_v6, %v6282_v28 }
 0x17f   : > { %v6791_v35 = vpop.permute.xlu1 %1547  ;;  %v6793_v34 = vpop.permute.xlu0 %1545 }
 0x180   : > { %10013 = vst [vmem:[#allocation44_spill] sm:$0xff] %v6791_v35 }
 0x181   : > { %1341 = vrot.lane.b32.xlu1 %v1273_v18, %s6120_s29  ;;  %1343 = vrot.lane.b32.xlu0 %v1274_v32, %s6120_s29  ;;  %v651_v18 = vmul.f32 %v6399_v9, %v6303_v37  ;;  %v652_v32 = vmul.f32 %v6399_v9, %v6300_v36 }
 0x183   : > { %v6801_v41 = vpop.permute.xlu1 %1559  ;;  %v6803_v47 = vpop.permute.xlu0 %1557 }
 0x184   : > { %10014 = vst [vmem:[#allocation45_spill] sm:$0xff] %v6801_v41  ;;  %10015 = vst [vmem:[#allocation46_spill] sm:$0xff] %v6803_v47  ;;  %v653_v47 = vmul.f32 %v6399_v9, %v6227_v10 }
 0x185   : > { %513 = vrot.lane.b32.xlu1 %v441_v50, %s6116_s23  ;;  %527 = vrot.lane.b32.xlu0 %v448_v51, %s6116_s23  ;;  %v654_v50 = vmul.f32 %v6399_v9, %v6230_v11 }
 0x187   : > { %v6811_v35 = vpop.permute.xlu1 %1563  ;;  %v6813_v53 = vpop.permute.xlu0 %1561 }
 0x188   : > { %10016 = vst [vmem:[#allocation47_spill] sm:$0xff] %v6811_v35  ;;  %10017 = vst [vmem:[#allocation48_spill] sm:$0xff] %v6813_v53  ;;  %v658_v53 = vmul.f32 %v6417_v20, %v6303_v37 }
 0x189   : > { %724 = vrot.lane.b32.xlu1 %v651_v18, %s6117_s26  ;;  %726 = vrot.lane.b32.xlu0 %v652_v32, %s6117_s26  ;;  %v659_v18 = vmul.f32 %v6417_v20, %v6300_v36 }
 0x18b   : > { %v6825_v51 = vpop.permute.xlu1 %1555  ;;  %v6827_v35 = vpop.permute.xlu0 %1539 }
 0x18c   : > { %10018 = vst [vmem:[#allocation49_spill] sm:$0xff] %v6825_v51  ;;  %10019 = vst [vmem:[#allocation50_spill] sm:$0xff] %v6827_v35  ;;  %v660_v35 = vmul.f32 %v6417_v20, %v6227_v10 }
 0x18d   : > { %728 = vrot.lane.b32.xlu1 %v653_v47, %s6117_s26  ;;  %730 = vrot.lane.b32.xlu0 %v654_v50, %s6117_s26  ;;  %v661_v47 = vmul.f32 %v6417_v20, %v6230_v11  ;;  %v1480_v50 = vmul.f32 %v6275_v24, %v6227_v10 }
 0x18f   : > { %v6837_v32 = vpop.permute.xlu1 %1772  ;;  %v6839_v41 = vpop.permute.xlu0 %1770 }
 0x190   : > { %10020 = vst [vmem:[#allocation51_spill] sm:$0xff] %v6837_v32  ;;  %10021 = vst [vmem:[#allocation52_spill] sm:$0xff] %v6839_v41  ;;  %v1488_v41 = vmul.f32 %v6347_v54, %v6227_v10 }
 0x191   : > { %738 = vrot.lane.b32.xlu1 %v658_v53, %s6117_s26  ;;  %740 = vrot.lane.b32.xlu0 %v659_v18, %s6117_s26  ;;  %v1481_v53 = vmul.f32 %v6275_v24, %v6230_v11 }
 0x193   : > { %v6851_v18 = vpop.permute.xlu1 %1776  ;;  %v6853_v51 = vpop.permute.xlu0 %1774 }
 0x194   : > { %10022 = vst [vmem:[#allocation53_spill] sm:$0xff] %v6851_v18  ;;  %10023 = vst [vmem:[#allocation54_spill] sm:$0xff] %v6853_v51  ;;  %v650_v18 = vmul.f32 %v6399_v9, %v6282_v28 }
 0x195   : > { %742 = vrot.lane.b32.xlu1 %v660_v35, %s6117_s26  ;;  %744 = vrot.lane.b32.xlu0 %v661_v47, %s6117_s26  ;;  %v1489_v35 = vmul.f32 %v6347_v54, %v6230_v11 }
 0x197   : > { %v6863_v47 = vpop.permute.xlu1 %1788  ;;  %v6865_v32 = vpop.permute.xlu0 %1786 }
 0x198   : > { %10024 = vst [vmem:[#allocation55_spill] sm:$0xff] %v6863_v47  ;;  %10025 = vst [vmem:[#allocation56_spill] sm:$0xff] %v6865_v32  ;;  %v862_v32 = vmul.f32 %v6413_v19, %v6227_v10 }
 0x199   : > { %1549 = vrot.lane.b32.xlu1 %v1480_v50, %s6121_s30  ;;  %1551 = vrot.lane.b32.xlu0 %v1481_v53, %s6121_s30  ;;  %v657_v50 = vmul.f32 %v6417_v20, %v6282_v28  ;;  %v860_v53 = vmul.f32 %v6413_v19, %v6303_v37 }
 0x19b   : > { %v6879_v47 = vpop.permute.xlu0 %1790 }
 0x19c   : > { %10027 = vst [vmem:[#allocation58_spill] sm:$0xff] %v6879_v47 }
 0x19d   : > { %1565 = vrot.lane.b32.xlu1 %v1488_v41, %s6121_s30  ;;  %1567 = vrot.lane.b32.xlu0 %v1489_v35, %s6121_s30  ;;  %v861_v41 = vmul.f32 %v6413_v19, %v6300_v36  ;;  %v6877_v35 = vpop.permute.xlu1 %1792 }
 0x19e   : > { %10026 = vst [vmem:[#allocation57_spill] sm:$0xff] %v6877_v35  ;;  %v867_v35 = vmul.f32 %v6425_v30, %v6303_v37 }
 0x1a1   : > { %722 = vrot.lane.b32.xlu1 %v650_v18, %s6117_s26  ;;  %736 = vrot.lane.b32.xlu0 %v657_v50, %s6117_s26  ;;  %v863_v18 = vmul.f32 %v6413_v19, %v6230_v11 }
 0x1a5   : > { %933 = vrot.lane.b32.xlu1 %v860_v53, %s6118_s27  ;;  %935 = vrot.lane.b32.xlu0 %v861_v41, %s6118_s27  ;;  %v868_v53 = vmul.f32 %v6425_v30, %v6300_v36 }
 0x1a8   : > { %v6887_v50 = vpop.permute.xlu1 %2157  ;;  %v6889_v51 = vpop.permute.xlu0 %2152 }
 0x1a9   : > { %10028 = vst [vmem:[#allocation59_spill] sm:$0xff] %v6887_v50  ;;  %10029 = vst [vmem:[#allocation60_spill] sm:$0xff] %v6889_v51  ;;  %937 = vrot.lane.b32.xlu1 %v862_v32, %s6118_s27  ;;  %939 = vrot.lane.b32.xlu0 %v863_v18, %s6118_s27  ;;  %v869_v50 = vmul.f32 %v6425_v30, %v6227_v10  ;;  %v870_v32 = vmul.f32 %v6425_v30, %v6230_v11 }
 0x1ac   : > { %v6897_v41 = vpop.permute.xlu1 %1768  ;;  %v6899_v47 = vpop.permute.xlu0 %1784 }
 0x1ad   : > { %10030 = vst [vmem:[#allocation61_spill] sm:$0xff] %v6897_v41  ;;  %10031 = vst [vmem:[#allocation62_spill] sm:$0xff] %v6899_v47  ;;  %947 = vrot.lane.b32.xlu1 %v867_v35, %s6118_s27  ;;  %949 = vrot.lane.b32.xlu0 %v868_v53, %s6118_s27  ;;  %v1709_v47 = vmul.f32 %v6359_v59, %v6227_v10  ;;  %v1710_v35 = vmul.f32 %v6359_v59, %v6230_v11 }
 0x1b0   : > { %v6907_v18 = vpop.permute.xlu1 %491  ;;  %v6909_v51 = vpop.permute.xlu0 %493 }
 0x1b1   : > { %10032 = vst [vmem:[#allocation63_spill] sm:$0xff] %v6907_v18  ;;  %10033 = vst [vmem:[#allocation64_spill] sm:$0xff] %v6909_v51  ;;  %951 = vrot.lane.b32.xlu1 %v869_v50, %s6118_s27  ;;  %953 = vrot.lane.b32.xlu0 %v870_v32, %s6118_s27  ;;  %v1717_v51 = vmul.f32 %v6497_v7, %v6227_v10  ;;  %v1718_v50 = vmul.f32 %v6497_v7, %v6230_v11 }
 0x1b4   : > { %v6917_v53 = vpop.permute.xlu1 %505  ;;  %v6919_v41 = vpop.permute.xlu0 %507 }
 0x1b5   : > { %10034 = vst [vmem:[#allocation65_spill] sm:$0xff] %v6917_v53  ;;  %10035 = vst [vmem:[#allocation66_spill] sm:$0xff] %v6919_v41  ;;  %1778 = vrot.lane.b32.xlu1 %v1709_v47, %s6122_s8  ;;  %1780 = vrot.lane.b32.xlu0 %v1710_v35, %s6122_s8  ;;  %v859_v41 = vmul.f32 %v6413_v19, %v6282_v28  ;;  %v866_v47 = vmul.f32 %v6425_v30, %v6282_v28 }
 0x1b8   : > { %v6927_v32 = vpop.permute.xlu1 %1999  ;;  %v6929_v18 = vpop.permute.xlu0 %2001 }
 0x1b9   : > { %10036 = vst [vmem:[#allocation67_spill] sm:$0xff] %v6927_v32  ;;  %10037 = vst [vmem:[#allocation68_spill] sm:$0xff] %v6929_v18  ;;  %1794 = vrot.lane.b32.xlu1 %v1717_v51, %s6122_s8  ;;  %1796 = vrot.lane.b32.xlu0 %v1718_v50, %s6122_s8  ;;  %v1069_v32 = vmul.f32 %v6473_v58, %v6303_v37  ;;  %v1070_v51 = vmul.f32 %v6473_v58, %v6300_v36 }
 0x1bc   : > { %v6937_v35 = vpop.permute.xlu1 %2003  ;;  %v6939_v53 = vpop.permute.xlu0 %2005 }
 0x1bd   : > { %10038 = vst [vmem:[#allocation69_spill] sm:$0xff] %v6937_v35  ;;  %10039 = vst [vmem:[#allocation70_spill] sm:$0xff] %v6939_v53  ;;  %931 = vrot.lane.b32.xlu1 %v859_v41, %s6118_s27  ;;  %945 = vrot.lane.b32.xlu0 %v866_v47, %s6118_s27  ;;  %v1071_v53 = vmul.f32 %v6473_v58, %v6227_v10  ;;  %v1072_v41 = vmul.f32 %v6473_v58, %v6230_v11 }
 0x1c0   : > { %v6947_v50 = vpop.permute.xlu1 %2015  ;;  %v6949_v18 = vpop.permute.xlu0 %2017 }
 0x1c1   : > { %10040 = vst [vmem:[#allocation71_spill] sm:$0xff] %v6947_v50  ;;  %10041 = vst [vmem:[#allocation72_spill] sm:$0xff] %v6949_v18  ;;  %1142 = vrot.lane.b32.xlu1 %v1069_v32, %s6119_s28  ;;  %1144 = vrot.lane.b32.xlu0 %v1070_v51, %s6119_s28  ;;  %v1076_v50 = vmul.f32 %v6439_v42, %v6303_v37  ;;  %v1077_v32 = vmul.f32 %v6439_v42, %v6300_v36 }
 0x1c4   : > { %v6957_v47 = vpop.permute.xlu1 %2019  ;;  %v6959_v35 = vpop.permute.xlu0 %2021 }
 0x1c5   : > { %10042 = vst [vmem:[#allocation73_spill] sm:$0xff] %v6957_v47  ;;  %10043 = vst [vmem:[#allocation74_spill] sm:$0xff] %v6959_v35  ;;  %1146 = vrot.lane.b32.xlu1 %v1071_v53, %s6119_s28  ;;  %1148 = vrot.lane.b32.xlu0 %v1072_v41, %s6119_s28  ;;  %v1078_v35 = vmul.f32 %v6439_v42, %v6227_v10  ;;  %v1079_v53 = vmul.f32 %v6439_v42, %v6230_v11 }
 0x1c8   : > { %v6967_v51 = vpop.permute.xlu1 %1997  ;;  %v6969_v18 = vpop.permute.xlu0 %2013 }
 0x1c9   : > { %10044 = vst [vmem:[#allocation75_spill] sm:$0xff] %v6967_v51  ;;  %10045 = vst [vmem:[#allocation76_spill] sm:$0xff] %v6969_v18  ;;  %1156 = vrot.lane.b32.xlu1 %v1076_v50, %s6119_s28  ;;  %1158 = vrot.lane.b32.xlu0 %v1077_v32, %s6119_s28  ;;  %v1938_v18 = vmul.f32 %v6369_v62, %v6227_v10  ;;  %v1939_v50 = vmul.f32 %v6369_v62, %v6230_v11 }
 0x1cc   : > { %v6977_v41 = vpop.permute.xlu1 %309  ;;  %v6979_v47 = vpop.permute.xlu0 %314 }
 0x1cd   : > { %10046 = vst [vmem:[#allocation77_spill] sm:$0xff] %v6977_v41  ;;  %10047 = vst [vmem:[#allocation78_spill] sm:$0xff] %v6979_v47  ;;  %1160 = vrot.lane.b32.xlu1 %v1078_v35, %s6119_s28  ;;  %1162 = vrot.lane.b32.xlu0 %v1079_v53, %s6119_s28  ;;  %v1946_v47 = vmul.f32 %v6381_v3, %v6227_v10  ;;  %v1947_v35 = vmul.f32 %v6381_v3, %v6230_v11 }
 0x1d0   : > { %v6987_v32 = vpop.permute.xlu1 %700  ;;  %v6989_v51 = vpop.permute.xlu0 %702 }
 0x1d1   : > { %10048 = vst [vmem:[#allocation79_spill] sm:$0xff] %v6987_v32  ;;  %10049 = vst [vmem:[#allocation80_spill] sm:$0xff] %v6989_v51  ;;  %2007 = vrot.lane.b32.xlu1 %v1938_v18, %s6123_s13  ;;  %2009 = vrot.lane.b32.xlu0 %v1939_v50, %s6123_s13  ;;  %v1068_v51 = vmul.f32 %v6473_v58, %v6282_v28  ;;  %v1075_v18 = vmul.f32 %v6439_v42, %v6282_v28 }
 0x1d4   : > { %v6997_v53 = vpop.permute.xlu1 %714  ;;  %v6999_v41 = vpop.permute.xlu0 %716 }
 0x1d5   : > { %10050 = vst [vmem:[#allocation81_spill] sm:$0xff] %v6997_v53  ;;  %10051 = vst [vmem:[#allocation82_spill] sm:$0xff] %v6999_v41  ;;  %2023 = vrot.lane.b32.xlu1 %v1946_v47, %s6123_s13  ;;  %2025 = vrot.lane.b32.xlu0 %v1947_v35, %s6123_s13  ;;  %v1278_v41 = vmul.f32 %v6449_v45, %v6303_v37  ;;  %v1279_v47 = vmul.f32 %v6449_v45, %v6300_v36 }
 0x1d8   : > { %v7007_v50 = vpop.permute.xlu1 %909  ;;  %v7009_v32 = vpop.permute.xlu0 %911 }
 0x1d9   : > { %10052 = vst [vmem:[#allocation83_spill] sm:$0xff] %v7007_v50  ;;  %10053 = vst [vmem:[#allocation84_spill] sm:$0xff] %v7009_v32  ;;  %1140 = vrot.lane.b32.xlu1 %v1068_v51, %s6119_s28  ;;  %1154 = vrot.lane.b32.xlu0 %v1075_v18, %s6119_s28  ;;  %v1280_v32 = vmul.f32 %v6449_v45, %v6227_v10  ;;  %v1281_v51 = vmul.f32 %v6449_v45, %v6230_v11 }
 0x1dc   : > { %v7017_v35 = vpop.permute.xlu1 %923  ;;  %v7019_v53 = vpop.permute.xlu0 %925 }
 0x1dd   : > { %10054 = vst [vmem:[#allocation85_spill] sm:$0xff] %v7017_v35  ;;  %10055 = vst [vmem:[#allocation86_spill] sm:$0xff] %v7019_v53  ;;  %1351 = vrot.lane.b32.xlu1 %v1278_v41, %s6120_s29  ;;  %1353 = vrot.lane.b32.xlu0 %v1279_v47, %s6120_s29  ;;  %v1285_v53 = vmul.f32 %v6485_v1, %v6303_v37  ;;  %v1286_v41 = vmul.f32 %v6485_v1, %v6300_v36 }
 0x1e0   : > { %v7027_v18 = vpop.permute.xlu1 %1118  ;;  %v7029_v50 = vpop.permute.xlu0 %1120 }
 0x1e1   : > { %10056 = vst [vmem:[#allocation87_spill] sm:$0xff] %v7027_v18  ;;  %10057 = vst [vmem:[#allocation88_spill] sm:$0xff] %v7029_v50  ;;  %1355 = vrot.lane.b32.xlu1 %v1280_v32, %s6120_s29  ;;  %1357 = vrot.lane.b32.xlu0 %v1281_v51, %s6120_s29  ;;  %v1287_v50 = vmul.f32 %v6485_v1, %v6227_v10  ;;  %v1288_v32 = vmul.f32 %v6485_v1, %v6230_v11 }
 0x1e4   : > { %v7037_v47 = vpop.permute.xlu1 %1132  ;;  %v7039_v35 = vpop.permute.xlu0 %1134 }
 0x1e5   : > { %10058 = vst [vmem:[#allocation89_spill] sm:$0xff] %v7037_v47  ;;  %10059 = vst [vmem:[#allocation90_spill] sm:$0xff] %v7039_v35  ;;  %1365 = vrot.lane.b32.xlu1 %v1285_v53, %s6120_s29  ;;  %1367 = vrot.lane.b32.xlu0 %v1286_v41, %s6120_s29  ;;  %v1277_v35 = vmul.f32 %v6449_v45, %v6282_v28  ;;  %v1284_v53 = vmul.f32 %v6485_v1, %v6282_v28 }
 0x1e8   : > { %v7047_v51 = vpop.permute.xlu1 %515  ;;  %v7049_v18 = vpop.permute.xlu0 %517 }
 0x1e9   : > { %10060 = vst [vmem:[#allocation91_spill] sm:$0xff] %v7047_v51  ;;  %10061 = vst [vmem:[#allocation92_spill] sm:$0xff] %v7049_v18  ;;  %1369 = vrot.lane.b32.xlu1 %v1287_v50, %s6120_s29  ;;  %1371 = vrot.lane.b32.xlu0 %v1288_v32, %s6120_s29  ;;  %v1494_v51 = vmul.f32 %v6461_v52, %v6303_v37  ;;  %v1495_v50 = vmul.f32 %v6461_v52, %v6300_v36 }
 0x1ec   : > { %v7057_v41 = vpop.permute.xlu1 %519  ;;  %v7059_v47 = vpop.permute.xlu0 %521 }
 0x1ed   : > { %10062 = vst [vmem:[#allocation93_spill] sm:$0xff] %v7057_v41  ;;  %10063 = vst [vmem:[#allocation94_spill] sm:$0xff] %v7059_v47  ;;  %1349 = vrot.lane.b32.xlu1 %v1277_v35, %s6120_s29  ;;  %1363 = vrot.lane.b32.xlu0 %v1284_v53, %s6120_s29  ;;  %v1496_v47 = vmul.f32 %v6461_v52, %v6227_v10  ;;  %v1497_v35 = vmul.f32 %v6461_v52, %v6230_v11 }
 0x1f0   : > { %v7067_v32 = vpop.permute.xlu1 %529  ;;  %v7069_v18 = vpop.permute.xlu0 %531 }
 0x1f1   : > { %10064 = vst [vmem:[#allocation95_spill] sm:$0xff] %v7067_v32  ;;  %10065 = vst [vmem:[#allocation96_spill] sm:$0xff] %v7069_v18  ;;  %1577 = vrot.lane.b32.xlu1 %v1494_v51, %s6121_s30  ;;  %1579 = vrot.lane.b32.xlu0 %v1495_v50, %s6121_s30  ;;  %v1502_v32 = vmul.f32 %v6471_v57, %v6303_v37  ;;  %v1503_v51 = vmul.f32 %v6471_v57, %v6300_v36 }
 0x1f4   : > { %v7077_v53 = vpop.permute.xlu1 %533  ;;  %v7079_v41 = vpop.permute.xlu0 %535 }
 0x1f5   : > { %10066 = vst [vmem:[#allocation97_spill] sm:$0xff] %v7077_v53  ;;  %10067 = vst [vmem:[#allocation98_spill] sm:$0xff] %v7079_v41  ;;  %1581 = vrot.lane.b32.xlu1 %v1496_v47, %s6121_s30  ;;  %1583 = vrot.lane.b32.xlu0 %v1497_v35, %s6121_s30  ;;  %v1504_v41 = vmul.f32 %v6471_v57, %v6227_v10  ;;  %v1505_v47 = vmul.f32 %v6471_v57, %v6230_v11 }
 0x1f8   : > { %v7087_v50 = vpop.permute.xlu1 %1327  ;;  %v7089_v18 = vpop.permute.xlu0 %1329 }
 0x1f9   : > { %10068 = vst [vmem:[#allocation99_spill] sm:$0xff] %v7087_v50  ;;  %10069 = vst [vmem:[#allocation100_spill] sm:$0xff] %v7089_v18  ;;  %1593 = vrot.lane.b32.xlu1 %v1502_v32, %s6121_s30  ;;  %1595 = vrot.lane.b32.xlu0 %v1503_v51, %s6121_s30  ;;  %v1493_v18 = vmul.f32 %v6461_v52, %v6282_v28  ;;  %v1501_v32 = vmul.f32 %v6471_v57, %v6282_v28 }
 0x1fc   : > { %v7097_v35 = vpop.permute.xlu1 %1341  ;;  %v7099_v53 = vpop.permute.xlu0 %1343 }
 0x1fd   : > { %10070 = vst [vmem:[#allocation101_spill] sm:$0xff] %v7097_v35  ;;  %10071 = vst [vmem:[#allocation102_spill] sm:$0xff] %v7099_v53  ;;  %1597 = vrot.lane.b32.xlu1 %v1504_v41, %s6121_s30  ;;  %1599 = vrot.lane.b32.xlu0 %v1505_v47, %s6121_s30  ;;  %v1723_v53 = vmul.f32 %v6511_v25, %v6303_v37  ;;  %v1724_v41 = vmul.f32 %v6511_v25, %v6300_v36 }
 0x200   : > { %v7107_v51 = vpop.permute.xlu1 %513  ;;  %v7109_v50 = vpop.permute.xlu0 %527 }
 0x201   : > { %10072 = vst [vmem:[#allocation103_spill] sm:$0xff] %v7107_v51  ;;  %10073 = vst [vmem:[#allocation104_spill] sm:$0xff] %v7109_v50  ;;  %1575 = vrot.lane.b32.xlu1 %v1493_v18, %s6121_s30  ;;  %1591 = vrot.lane.b32.xlu0 %v1501_v32, %s6121_s30  ;;  %v1725_v50 = vmul.f32 %v6511_v25, %v6227_v10  ;;  %v1726_v18 = vmul.f32 %v6511_v25, %v6230_v11 }
 0x204   : > { %v7117_v47 = vpop.permute.xlu1 %724  ;;  %v7119_v35 = vpop.permute.xlu0 %726 }
 0x205   : > { %10074 = vst [vmem:[#allocation105_spill] sm:$0xff] %v7117_v47  ;;  %10075 = vst [vmem:[#allocation106_spill] sm:$0xff] %v7119_v35  ;;  %1806 = vrot.lane.b32.xlu1 %v1723_v53, %s6122_s8  ;;  %1808 = vrot.lane.b32.xlu0 %v1724_v41, %s6122_s8  ;;  %v1731_v47 = vmul.f32 %v6487_v2, %v6303_v37  ;;  %v1732_v53 = vmul.f32 %v6487_v2, %v6300_v36 }
 0x208   : > { %v7127_v32 = vpop.permute.xlu1 %728  ;;  %v7129_v51 = vpop.permute.xlu0 %730 }
 0x209   : > { %10076 = vst [vmem:[#allocation107_spill] sm:$0xff] %v7127_v32  ;;  %10077 = vst [vmem:[#allocation108_spill] sm:$0xff] %v7129_v51  ;;  %1810 = vrot.lane.b32.xlu1 %v1725_v50, %s6122_s8  ;;  %1812 = vrot.lane.b32.xlu0 %v1726_v18, %s6122_s8  ;;  %v1733_v51 = vmul.f32 %v6487_v2, %v6227_v10  ;;  %v1734_v50 = vmul.f32 %v6487_v2, %v6230_v11 }
 0x20c   : > { %v7137_v41 = vpop.permute.xlu1 %738  ;;  %v7139_v35 = vpop.permute.xlu0 %740 }
 0x20d   : > { %10078 = vst [vmem:[#allocation109_spill] sm:$0xff] %v7137_v41  ;;  %10079 = vst [vmem:[#allocation110_spill] sm:$0xff] %v7139_v35  ;;  %1822 = vrot.lane.b32.xlu1 %v1731_v47, %s6122_s8  ;;  %1824 = vrot.lane.b32.xlu0 %v1732_v53, %s6122_s8  ;;  %v2148_v47 = vld [vmem:[%s9777_s2 + $0x10] sm:$0xff]  ;;  %v2149_v53 = vld [vmem:[%s9777_s2 + $0x18] sm:$0xff] }
 0x210   : > { %v7147_v18 = vpop.permute.xlu1 %742  ;;  %v7149_v32 = vpop.permute.xlu0 %744 }
 0x211   : > { %10080 = vst [vmem:[#allocation111_spill] sm:$0xff] %v7147_v18  ;;  %10081 = vst [vmem:[#allocation112_spill] sm:$0xff] %v7149_v32  ;;  %1826 = vrot.lane.b32.xlu1 %v1733_v51, %s6122_s8  ;;  %1828 = vrot.lane.b32.xlu0 %v1734_v50, %s6122_s8  ;;  %v1722_v32 = vmul.f32 %v6511_v25, %v6282_v28  ;;  %v1730_v51 = vmul.f32 %v6487_v2, %v6282_v28 }
 0x214   : > { %v7159_v41 = vpop.permute.xlu1 %1549  ;;  %v7161_v35 = vpop.permute.xlu0 %1551 }
 0x215   : > { %10082 = vst [vmem:[#allocation113_spill] sm:$0xff] %v7159_v41  ;;  %10083 = vst [vmem:[#allocation114_spill] sm:$0xff] %v7161_v35  ;;  %2162 = vperm.xlu1 %5430, %v2148_v47   ;;  %2167 = vperm.xlu0 %5431, %v2149_v53   ;;  %v1952_v41 = vmul.f32 %v6499_v8, %v6303_v37  ;;  %v1953_v47 = vmul.f32 %v6499_v8, %v6300_v36 }
 0x218   : > { %v7167_v50 = vpop.permute.xlu1 %1565  ;;  %v7169_v18 = vpop.permute.xlu0 %1567 }
 0x219   : > { %10084 = vst [vmem:[#allocation115_spill] sm:$0xff] %v7167_v50  ;;  %10085 = vst [vmem:[#allocation116_spill] sm:$0xff] %v7169_v18  ;;  %1804 = vrot.lane.b32.xlu1 %v1722_v32, %s6122_s8  ;;  %1820 = vrot.lane.b32.xlu0 %v1730_v51, %s6122_s8  ;;  %v1954_v18 = vmul.f32 %v6499_v8, %v6227_v10  ;;  %v1955_v32 = vmul.f32 %v6499_v8, %v6230_v11 }
 0x21c   : > { %v7177_v53 = vpop.permute.xlu1 %722  ;;  %v7179_v35 = vpop.permute.xlu0 %736 }
 0x21d   : > { %10086 = vst [vmem:[#allocation117_spill] sm:$0xff] %v7177_v53  ;;  %10087 = vst [vmem:[#allocation118_spill] sm:$0xff] %v7179_v35  ;;  %2035 = vrot.lane.b32.xlu1 %v1952_v41, %s6123_s13  ;;  %2037 = vrot.lane.b32.xlu0 %v1953_v47, %s6123_s13  ;;  %v1960_v35 = vmul.f32 %v6523_v38, %v6303_v37  ;;  %v1961_v41 = vmul.f32 %v6523_v38, %v6300_v36 }
 0x220   : > { %v7187_v51 = vpop.permute.xlu1 %933  ;;  %v7189_v50 = vpop.permute.xlu0 %935 }
 0x221   : > { %10088 = vst [vmem:[#allocation119_spill] sm:$0xff] %v7187_v51  ;;  %10089 = vst [vmem:[#allocation120_spill] sm:$0xff] %v7189_v50  ;;  %2039 = vrot.lane.b32.xlu1 %v1954_v18, %s6123_s13  ;;  %2041 = vrot.lane.b32.xlu0 %v1955_v32, %s6123_s13  ;;  %v1962_v51 = vmul.f32 %v6523_v38, %v6227_v10  ;;  %v1963_v18 = vmul.f32 %v6523_v38, %v6230_v11 }
 0x222   : > { %v361_v11 = vmul.f32 %v6285_v29, %v6525_v39  ;;  %v541_v10 = vsel %vm537_vm0, %v6545_v56, %v6543_v55  ;;  %v547_v55 = vsel %vm537_vm0, %v6565_v14, %v6563_v13 }
 0x224   : > { %v7197_v47 = vpop.permute.xlu1 %937  ;;  %v7199_v53 = vpop.permute.xlu0 %939 }
 0x225   : > { %10090 = vst [vmem:[#allocation121_spill] sm:$0xff] %v7197_v47  ;;  %10091 = vst [vmem:[#allocation122_spill] sm:$0xff] %v7199_v53  ;;  %2051 = vrot.lane.b32.xlu1 %v1960_v35, %s6123_s13  ;;  %2053 = vrot.lane.b32.xlu0 %v1961_v41, %s6123_s13  ;;  %v1951_v53 = vmul.f32 %v6499_v8, %v6282_v28  ;;  %v1959_v35 = vmul.f32 %v6523_v38, %v6282_v28 }
 0x228   : > { %v7207_v32 = vpop.permute.xlu1 %947  ;;  %v7209_v50 = vpop.permute.xlu0 %949 }
 0x229   : > { %10092 = vst [vmem:[#allocation123_spill] sm:$0xff] %v7207_v32  ;;  %10093 = vst [vmem:[#allocation124_spill] sm:$0xff] %v7209_v50  ;;  %2055 = vrot.lane.b32.xlu1 %v1962_v51, %s6123_s13  ;;  %2057 = vrot.lane.b32.xlu0 %v1963_v18, %s6123_s13  ;;  %v1482_v32 = vmul.f32 %v6233_v12, %v6275_v24  ;;  %v1490_v51 = vmul.f32 %v6233_v12, %v6347_v54 }
 0x22a   : > { %v1940_v54 = vmul.f32 %v6369_v62, %v6233_v12  ;;  %v447_v62 = vmul.f32 %v6389_v6, %v6285_v29 }
 0x22c   : > { %v7217_v41 = vpop.permute.xlu1 %951  ;;  %v7219_v47 = vpop.permute.xlu0 %953 }
 0x22d   : > { %10094 = vst [vmem:[#allocation125_spill] sm:$0xff] %v7217_v41  ;;  %10095 = vst [vmem:[#allocation126_spill] sm:$0xff] %v7219_v47  ;;  %2033 = vrot.lane.b32.xlu1 %v1951_v53, %s6123_s13  ;;  %2049 = vrot.lane.b32.xlu0 %v1959_v35, %s6123_s13  ;;  %v1711_v47 = vmul.f32 %v6359_v59, %v6233_v12  ;;  %v1719_v53 = vmul.f32 %v6497_v7, %v6233_v12 }
 0x22e   : > { %v440_v7 = vmul.f32 %v6407_v15, %v6285_v29  ;;  %v7281_v41 = vmul.f32 %v6485_v1, %v6285_v29 }
 0x230   : > { %v7227_v18 = vpop.permute.xlu1 %1778  ;;  %v7229_v50 = vpop.permute.xlu0 %1780 }
 0x231   : > { %10096 = vst [vmem:[#allocation127_spill] sm:$0xff] %v7227_v18  ;;  %10097 = vst [vmem:[#allocation128_spill] sm:$0xff] %v7229_v50  ;;  %1553 = vrot.lane.b32.xlu1 %v1482_v32, %s6121_s30  ;;  %1569 = vrot.lane.b32.xlu0 %v1490_v51, %s6121_s30  ;;  %v1948_v32 = vmul.f32 %v6381_v3, %v6233_v12  ;;  %v656_v3 = vmul.f32 %v6417_v20, %v6285_v29 }
 0x232   : > { %v7339_v18 = vmul.f32 %v6439_v42, %v6285_v29 }
 0x234   : > { %v7237_v35 = vpop.permute.xlu1 %1794  ;;  %v7239_v24 = vpop.permute.xlu0 %1796 }
 0x235   : > { %10098 = vst [vmem:[#allocation129_spill] sm:$0xff] %v7237_v35  ;;  %10099 = vst [vmem:[#allocation130_spill] sm:$0xff] %v7239_v24  ;;  %1782 = vrot.lane.b32.xlu1 %v1711_v47, %s6122_s8  ;;  %1798 = vrot.lane.b32.xlu0 %v1719_v53, %s6122_s8  ;;  %v439_v47 = vmul.f32 %v6407_v15, %v6331_v48  ;;  %v7263_v53 = vmul.f32 %v6417_v20, %v6331_v48 }
 0x236   : > { %v446_v15 = vmul.f32 %v6389_v6, %v6331_v48  ;;  %v7285_v20 = vmul.f32 %v6485_v1, %v6331_v48  ;;  %v7291_v6 = vmul.f32 %v6511_v25, %v6285_v29  ;;  %v649_v1 = vmul.f32 %v6399_v9, %v6285_v29 }
 0x237   : > { %v7315_v24 = vmul.f32 %v6413_v19, %v6285_v29  ;;  %v7323_v35 = vmul.f32 %v6413_v19, %v6331_v48  ;;  %v7343_v19 = vmul.f32 %v6439_v42, %v6331_v48  ;;  %v7361_v42 = vmul.f32 %v6461_v52, %v6331_v48 }
 0x238   : > { %v7247_v51 = vpop.permute.xlu1 %931  ;;  %v7249_v59 = vpop.permute.xlu0 %945  ;;  %10104 = vst [vmem:[#allocation135_spill] sm:$0xff] %v7291_v6  ;;  %v539_v6 = vsel %vm537_vm0, %v6535_v49, %v6533_v46 }
 0x239   : > { %10100 = vst [vmem:[#allocation131_spill] sm:$0xff] %v7247_v51  ;;  %10101 = vst [vmem:[#allocation132_spill] sm:$0xff] %v7249_v59  ;;  %2011 = vrot.lane.b32.xlu1 %v1940_v54, %s6123_s13  ;;  %2027 = vrot.lane.b32.xlu0 %v1948_v32, %s6123_s13  ;;  %v7267_v54 = vmul.f32 %v6473_v58, %v6285_v29  ;;  %v7277_v51 = vmul.f32 %v6473_v58, %v6331_v48 }
 0x23a   : > { %v7295_v58 = vmul.f32 %v6511_v25, %v6331_v48  ;;  %10112 = vst [vmem:[#allocation143_spill] sm:$0xff] %v7361_v42 }
 0x23c   : > { %v7269_v32 = vpop.permute.xlu1 %1142  ;;  %v7271_v59 = vpop.permute.xlu0 %1144  ;;  %10105 = vst [vmem:[#allocation136_spill] sm:$0xff] %v7295_v58  ;;  %v7385_v58 = vmul.f32 %v6487_v2, %v6285_v29 }
 0x23d   : > { %10102 = vst [vmem:[#allocation133_spill] sm:$0xff] %v7269_v32  ;;  %10103 = vst [vmem:[#allocation134_spill] sm:$0xff] %v7271_v59  ;;  %511 = vrot.lane.b32.xlu1 %v440_v7, %s6116_s23  ;;  %525 = vrot.lane.b32.xlu0 %v447_v62, %s6116_s23  ;;  %v7299_v32 = vmul.f32 %v6511_v25, %v6233_v12  ;;  %v648_v7 = vmul.f32 %v6399_v9, %v6331_v48 }
 0x23e   : > { %v7307_v62 = vmul.f32 %v6523_v38, %v6285_v29  ;;  %v7311_v59 = vmul.f32 %v6523_v38, %v6331_v48  ;;  %v7319_v25 = vmul.f32 %v6425_v30, %v6285_v29  ;;  %v7327_v9 = vmul.f32 %v6523_v38, %v6233_v12  ;;  %10116 = vst [vmem:[#allocation147_spill] sm:$0xff] %v7385_v58 }
 0x23f   : > { %10106 = vst [vmem:[#allocation137_spill] sm:$0xff] %v7299_v32  ;;  %v7347_v38 = vmul.f32 %v6449_v45, %v6285_v29  ;;  %v355_v32 = vmul.f32 %v6282_v28, %v6513_v26 }
 0x240   : > { %10107 = vst [vmem:[#allocation138_spill] sm:$0xff] %v7307_v62  ;;  %10108 = vst [vmem:[#allocation139_spill] sm:$0xff] %v7311_v59  ;;  %v7329_v50 = vpop.permute.xlu1 %1146  ;;  %v7331_v62 = vpop.permute.xlu0 %1148  ;;  %v7335_v59 = vmul.f32 %v6425_v30, %v6331_v48  ;;  %v7353_v30 = vmul.f32 %v6449_v45, %v6331_v48  ;;  %v7373_v45 = vmul.f32 %v6471_v57, %v6331_v48 }
 0x241   : > { %10109 = vst [vmem:[#allocation140_spill] sm:$0xff] %v7327_v9  ;;  %10110 = vst [vmem:[#allocation141_spill] sm:$0xff] %v7329_v50  ;;  %509 = vrot.lane.b32.xlu1 %v439_v47, %s6116_s23  ;;  %523 = vrot.lane.b32.xlu0 %v446_v15, %s6116_s23  ;;  %v7365_v50 = vmul.f32 %v6471_v57, %v6285_v29  ;;  %v7369_v47 = vmul.f32 %v6233_v12, %v6461_v52 }
 0x242   : > { %10111 = vst [vmem:[#allocation142_spill] sm:$0xff] %v7331_v62  ;;  %v7357_v62 = vmul.f32 %v6461_v52, %v6285_v29  ;;  %10114 = vst [vmem:[#allocation145_spill] sm:$0xff] %v7373_v45  ;;  %v7377_v15 = vmul.f32 %v6233_v12, %v6471_v57  ;;  %v354_v9 = vmul.f32 %v6285_v29, %v6513_v26 }
 0x243   : > { %10113 = vst [vmem:[#allocation144_spill] sm:$0xff] %v7369_v47  ;;  %v7389_v52 = vmul.f32 %v6487_v2, %v6331_v48  ;;  %v356_v57 = vmul.f32 %v6303_v37, %v6513_v26  ;;  %v545_v47 = vsel %vm537_vm0, %v6555_v0, %v6553_v63 }
 0x244   : > { %10115 = vst [vmem:[#allocation146_spill] sm:$0xff] %v7377_v15  ;;  %v353_v15 = vmul.f32 %v6331_v48, %v6513_v26  ;;  %v7400_v45 = vpop.permute.xlu1 %1156  ;;  %v7402_v58 = vpop.permute.xlu0 %1158 }
 0x245   : > { %10117 = vst [vmem:[#allocation148_spill] sm:$0xff] %v7389_v52  ;;  %10118 = vst [vmem:[#allocation149_spill] sm:$0xff] %v7400_v45  ;;  %v540_v52 = vsel %vm537_vm0, %v6533_v46, %v6545_v56  ;;  %720 = vrot.lane.b32.xlu1 %v649_v1, %s6117_s26  ;;  %734 = vrot.lane.b32.xlu0 %v656_v3, %s6117_s26  ;;  %v362_v45 = vmul.f32 %v6282_v28, %v6525_v39 }
 0x246   : > { %10119 = vst [vmem:[#allocation150_spill] sm:$0xff] %v7402_v58  ;;  %v363_v58 = vmul.f32 %v6303_v37, %v6525_v39  ;;  %v546_v46 = vsel %vm537_vm0, %v6553_v63, %v6565_v14  ;;  %v360_v56 = vmul.f32 %v6331_v48, %v6525_v39  ;;  %v544_v3 = vsel %vm537_vm0, %v6573_v31, %v6555_v0  ;;  %v10122_v31 = vld [vmem:[#allocation15_spill] sm:$0xff] }
 0x247   : > { %v538_v1 = vsel %vm537_vm0, %v6575_v33, %v6535_v49  ;;  %v748_v28 = vsel %vm746_vm1, %v6591_v61, %v6589_v60  ;;  %v591_v63 = vadd.f32 %v539_v6, %v354_v9  ;;  %v592_v37 = vadd.f32 %v540_v52, %v355_v32  ;;  %v10123_v6 = vld [vmem:[#allocation16_spill] sm:$0xff]  ;;  %v10128_v52 = vld [vmem:[#allocation21_spill] sm:$0xff] }
 0x248   : > { %v593_v42 = vadd.f32 %v541_v10, %v356_v57  ;;  %v598_v39 = vadd.f32 %v545_v47, %v361_v11  ;;  %v7436_v36 = vpop.permute.xlu1 %1160  ;;  %v7438_v26 = vpop.permute.xlu0 %1162  ;;  %v599_v14 = vadd.f32 %v546_v46, %v362_v45  ;;  %v749_v0 = vsel %vm746_vm1, %v6589_v60, %v6595_v5  ;;  %v10124_v47 = vld [vmem:[#allocation17_spill] sm:$0xff] }
 0x249   : > { %10120 = vst [vmem:[#allocation151_spill] sm:$0xff] %v7436_v36  ;;  %10121 = vst [vmem:[#allocation152_spill] sm:$0xff] %v7438_v26  ;;  %v750_v49 = vsel %vm746_vm1, %v6595_v5, %v10122_v31  ;;  %718 = vrot.lane.b32.xlu1 %v648_v7, %s6117_s26  ;;  %732 = vrot.lane.b32.xlu0 %v7263_v53, %s6117_s26  ;;  %v600_v10 = vadd.f32 %v547_v55, %v363_v58  ;;  %v10125_v7 = vld [vmem:[#allocation18_spill] sm:$0xff]  ;;  %v10135_v26 = vld [vmem:[#allocation27_spill] sm:$0xff] }
 0x24a   : > { %v597_v11 = vadd.f32 %v544_v3, %v360_v56  ;;  %v590_v33 = vadd.f32 %v538_v1, %v353_v15  ;;  %v800_v32 = vadd.f32 %v748_v28, %v591_v63  ;;  %v754_v9 = vsel %vm746_vm1, %v10123_v6, %v6603_v43  ;;  %v10126_v28 = vld [vmem:[#allocation19_spill] sm:$0xff]  ;;  %v10127_v15 = vld [vmem:[#allocation20_spill] sm:$0xff]  ;;  %v10131_v3 = vld [vmem:[#allocation22_spill] sm:$0xff] }
 0x24b   : > { %v755_v60 = vsel %vm746_vm1, %v6603_v43, %v6615_v4  ;;  %v756_v5 = vsel %vm746_vm1, %v6615_v4, %v10124_v47  ;;  %v753_v53 = vsel %vm746_vm1, %v10125_v7, %v10123_v6  ;;  %v801_v55 = vadd.f32 %v749_v0, %v592_v37  ;;  %v10130_v56 = vld [vmem:[#allocation23_spill] sm:$0xff]  ;;  %v10133_v1 = vld [vmem:[#allocation25_spill] sm:$0xff] }
 0x24c   : > { %v802_v58 = vadd.f32 %v750_v49, %v593_v42  ;;  %v747_v45 = vsel %vm746_vm1, %v10126_v28, %v6591_v61  ;;  %v957_v57 = vsel %vm955_vm2, %v10128_v52, %v10127_v15  ;;  %v7467_v46 = vpop.permute.xlu1 %2007  ;;  %v7469_v43 = vpop.permute.xlu0 %2009  ;;  %v958_v4 = vsel %vm955_vm2, %v10127_v15, %v10130_v56  ;;  %v10132_v42 = vld [vmem:[#allocation24_spill] sm:$0xff]  ;;  %v10134_v15 = vld [vmem:[#allocation26_spill] sm:$0xff] }
 0x24d   : > { %10129 = vst [vmem:[#allocation15_spill] sm:$0xff] %v7469_v43  ;;  %v959_v37 = vsel %vm955_vm2, %v10130_v56, %v10131_v3  ;;  %v963_v61 = vsel %vm955_vm2, %v10133_v1, %v10132_v42  ;;  %929 = vrot.lane.b32.xlu1 %v7315_v24, %s6118_s27  ;;  %943 = vrot.lane.b32.xlu0 %v7319_v25, %s6118_s27 }
 0x24e   : > { %v807_v63 = vadd.f32 %v754_v9, %v598_v39  ;;  %v808_v0 = vadd.f32 %v755_v60, %v599_v14  ;;  %v809_v49 = vadd.f32 %v756_v5, %v600_v10  ;;  %v806_v6 = vadd.f32 %v753_v53, %v597_v11  ;;  %v10137_v11 = vld [vmem:[#allocation28_spill] sm:$0xff]  ;;  %v10138_v9 = vld [vmem:[#allocation29_spill] sm:$0xff]  ;;  %v10139_v53 = vld [vmem:[#allocation30_spill] sm:$0xff] }
 0x24f   : > { %v799_v7 = vadd.f32 %v747_v45, %v590_v33  ;;  %v964_v28 = vsel %vm955_vm2, %v10132_v42, %v6665_v21  ;;  %v965_v56 = vsel %vm955_vm2, %v6665_v21, %v10134_v15  ;;  %v962_v24 = vsel %vm955_vm2, %v10135_v26, %v10133_v1 }
 0x250   : > { %v1009_v36 = vadd.f32 %v957_v57, %v800_v32  ;;  %v1010_v43 = vadd.f32 %v958_v4, %v801_v55  ;;  %v1011_v25 = vadd.f32 %v959_v37, %v802_v58  ;;  %v1016_v39 = vadd.f32 %v963_v61, %v807_v63  ;;  %v7493_v14 = vpop.permute.xlu1 %2023  ;;  %v7495_v10 = vpop.permute.xlu0 %2025  ;;  %v10140_v58 = vld [vmem:[#allocation31_spill] sm:$0xff]  ;;  %v10144_v63 = vld [vmem:[#allocation34_spill] sm:$0xff] }
 0x251   : > { %10136 = vst [vmem:[#allocation16_spill] sm:$0xff] %v7495_v10  ;;  %v956_v33 = vsel %vm955_vm2, %v10137_v11, %v10128_v52  ;;  %v1166_v21 = vsel %vm1164_vm3, %v10138_v9, %v6681_v17  ;;  %v1167_v26 = vsel %vm1164_vm3, %v6681_v17, %v6693_v40  ;;  %927 = vrot.lane.b32.xlu1 %v7323_v35, %s6118_s27  ;;  %v10141_v52 = vld [vmem:[#allocation32_spill] sm:$0xff] }
 0x252   : > { %941 = vrot.lane.b32.xlu0 %v7335_v59, %s6118_s27  ;;  %v1017_v32 = vadd.f32 %v964_v28, %v808_v0  ;;  %v1018_v60 = vadd.f32 %v965_v56, %v809_v49  ;;  %v1015_v5 = vadd.f32 %v962_v24, %v806_v6  ;;  %v1168_v55 = vsel %vm1164_vm3, %v6693_v40, %v10139_v53  ;;  %v10142_v40 = vld [vmem:[#allocation33_spill] sm:$0xff]  ;;  %v10145_v0 = vld [vmem:[#allocation36_spill] sm:$0xff]  ;;  %v10146_v28 = vld [vmem:[#allocation35_spill] sm:$0xff] }
 0x253   : > { %v1172_v45 = vsel %vm1164_vm3, %v10140_v58, %v6701_v44  ;;  %v1173_v17 = vsel %vm1164_vm3, %v6701_v44, %v6713_v27  ;;  %v1174_v35 = vsel %vm1164_vm3, %v6713_v27, %v10141_v52  ;;  %v1171_v59 = vsel %vm1164_vm3, %v6721_v23, %v10140_v58  ;;  %v10147_v24 = vld [vmem:[#allocation37_spill] sm:$0xff]  ;;  %v10149_v11 = vld [vmem:[#allocation40_spill] sm:$0xff]  ;;  %v10153_v58 = vld [vmem:[#allocation43_spill] sm:$0xff] }
 0x254   : > { %v1008_v57 = vadd.f32 %v956_v33, %v799_v7  ;;  %v1218_v4 = vadd.f32 %v1166_v21, %v1009_v36  ;;  %v1219_v37 = vadd.f32 %v1167_v26, %v1010_v43  ;;  %v1165_v42 = vsel %vm1164_vm3, %v10142_v40, %v10138_v9  ;;  %v7528_v1 = vpop.permute.xlu1 %1140  ;;  %v7530_v61 = vpop.permute.xlu0 %1154  ;;  %v10151_v21 = vld [vmem:[#allocation41_spill] sm:$0xff] }
 0x255   : > { %10143 = vst [vmem:[#allocation17_spill] sm:$0xff] %v7530_v61  ;;  %v1220_v44 = vadd.f32 %v1168_v55, %v1011_v25  ;;  %v1375_v27 = vsel %vm1373_vm4, %v10144_v63, %v6731_v16  ;;  %v1376_v23 = vsel %vm1373_vm4, %v6731_v16, %v10145_v0  ;;  %1138 = vrot.lane.b32.xlu1 %v7267_v54, %s6119_s28  ;;  %v10148_v25 = vld [vmem:[#allocation38_spill] sm:$0xff] }
 0x256   : > { %1152 = vrot.lane.b32.xlu0 %v7339_v18, %s6119_s28  ;;  %v1225_v36 = vadd.f32 %v1172_v45, %v1016_v39  ;;  %v1226_v43 = vadd.f32 %v1173_v17, %v1017_v32  ;;  %v1227_v49 = vadd.f32 %v1174_v35, %v1018_v60  ;;  %v1224_v6 = vadd.f32 %v1171_v59, %v1015_v5  ;;  %v10150_v18 = vld [vmem:[#allocation39_spill] sm:$0xff]  ;;  %v10152_v5 = vld [vmem:[#allocation42_spill] sm:$0xff] }
 0x257   : > { %v1217_v7 = vadd.f32 %v1165_v42, %v1008_v57  ;;  %v1377_v56 = vsel %vm1373_vm4, %v10145_v0, %v10146_v28  ;;  %v1381_v16 = vsel %vm1373_vm4, %v10148_v25, %v10147_v24  ;;  %v1382_v54 = vsel %vm1373_vm4, %v10147_v24, %v10149_v11  ;;  %v10155_v42 = vld [vmem:[#allocation45_spill] sm:$0xff]  ;;  %v10160_v24 = vld [vmem:[#allocation51_spill] sm:$0xff] }
 0x258   : > { %v1427_v33 = vadd.f32 %v1375_v27, %v1218_v4  ;;  %v1428_v9 = vadd.f32 %v1376_v23, %v1219_v37  ;;  %v1383_v39 = vsel %vm1373_vm4, %v10149_v11, %v10150_v18  ;;  %v1380_v26 = vsel %vm1373_vm4, %v10151_v21, %v10148_v25  ;;  %v7557_v32 = vpop.permute.xlu1 %1351  ;;  %v7559_v60 = vpop.permute.xlu0 %1353  ;;  %v10154_v4 = vld [vmem:[#allocation44_spill] sm:$0xff]  ;;  %v10162_v11 = vld [vmem:[#allocation54_spill] sm:$0xff]  ;;  %v10164_v21 = vld [vmem:[#allocation53_spill] sm:$0xff] }
 0x259   : > { %v1374_v55 = vsel %vm1373_vm4, %v10152_v5, %v10144_v63  ;;  %v1605_v45 = vsel %vm1603_vm5, %v10153_v58, %v6781_v22  ;;  %v1606_v17 = vsel %vm1603_vm5, %v6781_v22, %v6793_v34  ;;  %1136 = vrot.lane.b32.xlu1 %v7277_v51, %s6119_s28  ;;  %v1429_v35 = vadd.f32 %v1377_v56, %v1220_v44  ;;  %v10156_v63 = vld [vmem:[#allocation46_spill] sm:$0xff]  ;;  %v10157_v22 = vld [vmem:[#allocation48_spill] sm:$0xff]  ;;  %v10158_v51 = vld [vmem:[#allocation47_spill] sm:$0xff] }
 0x25a   : > { %1150 = vrot.lane.b32.xlu0 %v7343_v19, %s6119_s28  ;;  %v1434_v59 = vadd.f32 %v1381_v16, %v1225_v36  ;;  %v1435_v57 = vadd.f32 %v1382_v54, %v1226_v43  ;;  %v1607_v37 = vsel %vm1603_vm5, %v6793_v34, %v10154_v4  ;;  %v1436_v40 = vadd.f32 %v1383_v39, %v1227_v49  ;;  %v10161_v25 = vld [vmem:[#allocation52_spill] sm:$0xff]  ;;  %v10165_v5 = vld [vmem:[#allocation55_spill] sm:$0xff] }
 0x25b   : > { %v1612_v27 = vsel %vm1603_vm5, %v10156_v63, %v10155_v42  ;;  %v1613_v0 = vsel %vm1603_vm5, %v10155_v42, %v10157_v22  ;;  %v1614_v19 = vsel %vm1603_vm5, %v10157_v22, %v10158_v51  ;;  %v1433_v44 = vadd.f32 %v1380_v26, %v1224_v6  ;;  %v10170_v42 = vld [vmem:[#allocation69_spill] sm:$0xff] }
 0x25c   : > { %v1426_v23 = vadd.f32 %v1374_v55, %v1217_v7  ;;  %v1661_v36 = vadd.f32 %v1605_v45, %v1427_v33  ;;  %v1662_v43 = vadd.f32 %v1606_v17, %v1428_v9  ;;  %v7586_v56 = vpop.permute.xlu1 %1355  ;;  %v7588_v34 = vpop.permute.xlu0 %1357  ;;  %v1663_v49 = vadd.f32 %v1607_v37, %v1429_v35  ;;  %v10163_v9 = vld [vmem:[#allocation49_spill] sm:$0xff]  ;;  %v10166_v55 = vld [vmem:[#allocation56_spill] sm:$0xff]  ;;  %v10167_v17 = vld [vmem:[#allocation58_spill] sm:$0xff] }
 0x25d   : > { %10159 = vst [vmem:[#allocation18_spill] sm:$0xff] %v7588_v34  ;;  %v1834_v16 = vsel %vm1832_vm6, %v10161_v25, %v10160_v24  ;;  %v1835_v54 = vsel %vm1832_vm6, %v10160_v24, %v10162_v11  ;;  %1347 = vrot.lane.b32.xlu1 %v7347_v38, %s6120_s29  ;;  %v1668_v6 = vadd.f32 %v1612_v27, %v1434_v59  ;;  %v10169_v59 = vld [vmem:[#allocation50_spill] sm:$0xff]  ;;  %v10175_v24 = vld [vmem:[#allocation71_spill] sm:$0xff] }
 0x25e   : > { %1361 = vrot.lane.b32.xlu0 %v7281_v41, %s6120_s29  ;;  %v1669_v7 = vadd.f32 %v1613_v0, %v1435_v57  ;;  %v1670_v33 = vadd.f32 %v1614_v19, %v1436_v40  ;;  %v1611_v39 = vsel %vm1603_vm5, %v10163_v9, %v10156_v63  ;;  %v1836_v26 = vsel %vm1832_vm6, %v10162_v11, %v10164_v21  ;;  %v10168_v41 = vld [vmem:[#allocation57_spill] sm:$0xff]  ;;  %v10171_v63 = vld [vmem:[#allocation68_spill] sm:$0xff] }
 0x25f   : > { %v1841_v45 = vsel %vm1832_vm6, %v10166_v55, %v10165_v5  ;;  %v1842_v38 = vsel %vm1832_vm6, %v10165_v5, %v10167_v17  ;;  %v1843_v35 = vsel %vm1832_vm6, %v10167_v17, %v10168_v41  ;;  %v1604_v57 = vsel %vm1603_vm5, %v10169_v59, %v10153_v58  ;;  %v10174_v19 = vld [vmem:[#allocation72_spill] sm:$0xff]  ;;  %v10176_v9 = vld [vmem:[#allocation73_spill] sm:$0xff]  ;;  %v10177_v17 = vld [vmem:[#allocation74_spill] sm:$0xff] }
 0x260   : > { %v1890_v37 = vadd.f32 %v1834_v16, %v1661_v36  ;;  %v1891_v40 = vadd.f32 %v1835_v54, %v1662_v43  ;;  %v2064_v27 = vsel %vm2061_vm7, %v10171_v63, %v10170_v42  ;;  %v7621_v22 = vpop.permute.xlu1 %1365  ;;  %v7623_v0 = vpop.permute.xlu0 %1367  ;;  %v2070_v11 = vsel %vm2061_vm7, %v10175_v24, %v10174_v19  ;;  %v10178_v59 = vld [vmem:[#allocation61_spill] sm:$0xff] }
 0x261   : > { %10172 = vst [vmem:[#allocation19_spill] sm:$0xff] %v7621_v22  ;;  %10173 = vst [vmem:[#allocation20_spill] sm:$0xff] %v7623_v0  ;;  %v2071_v5 = vsel %vm2061_vm7, %v10174_v19, %v10176_v9  ;;  %v2072_v58 = vsel %vm2061_vm7, %v10176_v9, %v10177_v17  ;;  %1345 = vrot.lane.b32.xlu1 %v7353_v30, %s6120_s29  ;;  %v1892_v36 = vadd.f32 %v1836_v26, %v1663_v49  ;;  %v10179_v19 = vld [vmem:[#allocation62_spill] sm:$0xff]  ;;  %v10180_v9 = vld [vmem:[#allocation67_spill] sm:$0xff] }
 0x262   : > { %1359 = vrot.lane.b32.xlu0 %v7285_v20, %s6120_s29  ;;  %v1897_v43 = vadd.f32 %v1841_v45, %v1668_v6  ;;  %v1898_v16 = vadd.f32 %v1842_v38, %v1669_v7  ;;  %v1899_v54 = vadd.f32 %v1843_v35, %v1670_v33  ;;  %v1833_v22 = vsel %vm1832_vm6, %v10178_v59, %v10161_v25  ;;  %v10181_v30 = vld [vmem:[#allocation70_spill] sm:$0xff] }
 0x263   : > { %v1840_v0 = vsel %vm1832_vm6, %v10179_v19, %v10166_v55  ;;  %v2063_v61 = vsel %vm2061_vm7, %v10180_v9, %v10171_v63  ;;  %v2065_v20 = vsel %vm2061_vm7, %v10170_v42, %v10181_v30  ;;  %v2120_v49 = vadd.f32 %v2064_v27, %v1891_v40  ;;  %v10184_v42 = vld [vmem:[#allocation75_spill] sm:$0xff]  ;;  %v10198_v19 = vld [vmem:[#allocation5_spill] sm:$0xff] }
 0x264   : > { %v2126_v6 = vadd.f32 %v2070_v11, %v1897_v43  ;;  %v2127_v7 = vadd.f32 %v2071_v5, %v1898_v16  ;;  %v2128_v33 = vadd.f32 %v2072_v58, %v1899_v54  ;;  %v7650_v26 = vpop.permute.xlu1 %1369  ;;  %v7652_v45 = vpop.permute.xlu0 %1371  ;;  %v1667_v25 = vadd.f32 %v1611_v39, %v1433_v44  ;;  %v10195_v58 = vld [vmem:[#allocation9_spill] sm:$0xff]  ;;  %v10196_v16 = vld [vmem:[#allocation143_spill] sm:$0xff]  ;;  %v10197_v54 = vld [vmem:[#allocation144_spill] sm:$0xff] }
 0x265   : > { %10182 = vst [vmem:[#allocation21_spill] sm:$0xff] %v7650_v26  ;;  %10183 = vst [vmem:[#allocation23_spill] sm:$0xff] %v7652_v45  ;;  %v1660_v38 = vadd.f32 %v1604_v57, %v1426_v23  ;;  %1573 = vrot.lane.b32.xlu1 %v7357_v62, %s6121_s30  ;;  %v7660_v55 = vmul.f32 %v6487_v2, %v6233_v12  ;;  %v2119_v35 = vadd.f32 %v2063_v61, %v1890_v37  ;;  %v10185_v62 = vld [vmem:[#allocation76_spill] sm:$0xff]  ;;  %v10188_v37 = vld [vmem:[#allocation59_spill] sm:$0xff] }
 0x266   : > { %1589 = vrot.lane.b32.xlu0 %v7365_v50, %s6121_s30  ;;  %v2121_v40 = vadd.f32 %v2065_v20, %v1892_v36  ;;  %v2062_v63 = vsel %vm2061_vm7, %v10184_v42, %v10180_v9  ;;  %v7667_v44 = vmul.f32 %v6499_v8, %v6285_v29  ;;  %v1896_v39 = vadd.f32 %v1840_v0, %v1667_v25  ;;  %v10186_v61 = vld [vmem:[#allocation60_spill] sm:$0xff]  ;;  %v10234_v26 = vld [vmem:[#allocation86_spill] sm:$0xff] }
 0x267   : > { %v1889_v23 = vadd.f32 %v1833_v22, %v1660_v38  ;;  %v2069_v50 = vsel %vm2061_vm7, %v10185_v62, %v10175_v24  ;;  %v7674_v2 = vmul.f32 %v6499_v8, %v6331_v48  ;;  %v7677_v57 = vadd.f32 %v10186_v61, %v2120_v49  ;;  %v10194_v24 = vld [vmem:[#allocation12_spill] sm:$0xff]  ;;  %v10210_v62 = vld [vmem:[#allocation6_spill] sm:$0xff] }
 0x268   : > { %v7680_v27 = vadd.f32 %v10188_v37, %v2126_v6  ;;  %v7683_v11 = vadd.f32 %v10188_v37, %v2127_v7  ;;  %v7686_v22 = vadd.f32 %v10188_v37, %v2128_v33  ;;  %v7688_v0 = vpop.permute.xlu1 %1349  ;;  %v7690_v5 = vpop.permute.xlu0 %1363  ;;  %v357_v36 = vmul.f32 %v10195_v58, %v10194_v24  ;;  %v10201_v7 = vld [vmem:[#allocation63_spill] sm:$0xff]  ;;  %v10202_v33 = vld [vmem:[#allocation14_spill] sm:$0xff]  ;;  %v10203_v38 = vld [vmem:[#allocation64_spill] sm:$0xff] }
 0x269   : > { %10187 = vst [vmem:[#allocation22_spill] sm:$0xff] %v7677_v57  ;;  %10192 = vst [vmem:[#allocation27_spill] sm:$0xff] %v7688_v0  ;;  %v2118_v43 = vadd.f32 %v2062_v63, %v1889_v23  ;;  %1571 = vrot.lane.b32.xlu1 %v10196_v16, %s6121_s30  ;;  %v7700_v59 = vmul.f32 %v6499_v8, %v6233_v12  ;;  %v358_v9 = vmul.f32 %v10198_v19, %v10194_v24  ;;  %v10204_v12 = vld [vmem:[#allocation65_spill] sm:$0xff]  ;;  %v10205_v63 = vld [vmem:[#allocation66_spill] sm:$0xff] }
 0x26a   : > { %10189 = vst [vmem:[#allocation24_spill] sm:$0xff] %v7680_v27  ;;  %10190 = vst [vmem:[#allocation25_spill] sm:$0xff] %v7683_v11  ;;  %1585 = vrot.lane.b32.xlu0 %v10197_v54, %s6121_s30  ;;  %v7705_v20 = vadd.f32 %v10186_v61, %v2119_v35  ;;  %v7708_v49 = vadd.f32 %v10186_v61, %v2121_v40  ;;  %v2125_v6 = vadd.f32 %v2069_v50, %v1896_v39  ;;  %v10206_v54 = vld [vmem:[#allocation13_spill] sm:$0xff]  ;;  %v10209_v39 = vld [vmem:[#allocation146_spill] sm:$0xff] }
 0x26b   : > { %10191 = vst [vmem:[#allocation26_spill] sm:$0xff] %v7686_v22  ;;  %10193 = vst [vmem:[#allocation28_spill] sm:$0xff] %v7690_v5  ;;  %v542_v25 = vsel %vm537_vm0, %v10202_v33, %v10201_v7  ;;  %v543_v42 = vsel %vm537_vm0, %v10201_v7, %v10203_v38  ;;  %v548_v8 = vsel %vm537_vm0, %v6563_v13, %v10204_v12  ;;  %v10213_v5 = vld [vmem:[#allocation77_spill] sm:$0xff] }
 0x26c   : > { %10199 = vst [vmem:[#allocation29_spill] sm:$0xff] %v7705_v20  ;;  %10200 = vst [vmem:[#allocation30_spill] sm:$0xff] %v7708_v49  ;;  %v549_v35 = vsel %vm537_vm0, %v10204_v12, %v10205_v63  ;;  %v7726_v50 = vpop.permute.xlu1 %1577  ;;  %v7728_v16 = vpop.permute.xlu0 %1579  ;;  %v364_v7 = vmul.f32 %v10195_v58, %v10206_v54  ;;  %v365_v13 = vmul.f32 %v10198_v19, %v10206_v54  ;;  %v10208_v12 = vld [vmem:[#allocation145_spill] sm:$0xff]  ;;  %v9925_v40 = vmax.f32 %v7705_v20, 0.0  ;;  %v10229_v20 = vld [vmem:[#allocation83_spill] sm:$0xff] }
 0x26d   : > { %v7735_v33 = vadd.f32 %v10186_v61, %v2118_v43  ;;  %1587 = vrot.lane.b32.xlu1 %v10208_v12, %s6121_s30  ;;  %v7743_v23 = vmul.f32 %v10210_v62, %v10194_v24  ;;  %v7748_v29 = vadd.f32 %v10188_v37, %v2125_v6  ;;  %v594_v63 = vadd.f32 %v542_v25, %v357_v36  ;;  %v10214_v12 = vld [vmem:[#allocation10_spill] sm:$0xff] }
 0x26e   : > { %1601 = vrot.lane.b32.xlu0 %v10209_v39, %s6121_s30  ;;  %v595_v43 = vadd.f32 %v543_v42, %v358_v9  ;;  %v601_v38 = vadd.f32 %v548_v8, %v364_v7  ;;  %v602_v54 = vadd.f32 %v549_v35, %v365_v13  ;;  %v7752_v0 = vmul.f32 %v10214_v12, %v10213_v5  ;;  %v10221_v7 = vld [vmem:[#allocation79_spill] sm:$0xff]  ;;  %v10225_v35 = vld [vmem:[#allocation81_spill] sm:$0xff] }
 0x26f   : > { %10207 = vst [vmem:[#allocation31_spill] sm:$0xff] %v7735_v33  ;;  %10211 = vst [vmem:[#allocation32_spill] sm:$0xff] %v7743_v23  ;;  %v10216_v24 = vmax.f32 %v7677_v57, 0.0  ;;  %v10217_v6 = vmax.f32 %v7708_v49, 0.0  ;;  %v10218_v36 = vmax.f32 %v7680_v27, 0.0  ;;  %v10219_v25 = vmax.f32 %v7683_v11, 0.0 }
 0x270   : > { %10212 = vst [vmem:[#allocation33_spill] sm:$0xff] %v7748_v29  ;;  %v7754_v39 = vpop.permute.xlu1 %1581  ;;  %v7756_v45 = vpop.permute.xlu0 %1583  ;;  %v10220_v42 = vmax.f32 %v7686_v22, 0.0  ;;  %v751_v13 = vsel %vm746_vm1, %v10122_v31, %v10221_v7  ;;  %v757_v22 = vsel %vm746_vm1, %v10124_v47, %v10225_v35  ;;  %v10226_v49 = vld [vmem:[#allocation78_spill] sm:$0xff] }
 0x271   : > { %10215 = vst [vmem:[#allocation34_spill] sm:$0xff] %v7756_v45  ;;  %v7762_v48 = vpack.i.bf16 %v10216_v24, %v9925_v40  ;;  %v7768_v9 = vpack.i.bf16 %v10218_v36, %v10217_v6  ;;  %v7782_v24 = vmul.f32 %v10195_v58, %v10213_v5  ;;  %v7786_v6 = vmul.f32 %v10198_v19, %v10213_v5  ;;  %v10222_v36 = vld [vmem:[#allocation135_spill] sm:$0xff]  ;;  %v10224_v40 = vld [vmem:[#allocation80_spill] sm:$0xff]  ;;  %v10227_v27 = vld [vmem:[#allocation82_spill] sm:$0xff] }
 0x272   : > { %v7774_v8 = vpack.i.bf16 %v10220_v42, %v10219_v25  ;;  %1802 = vrot.lane.b32.xlu1 %v10222_v36, %s6122_s8  ;;  %v10223_v25 = vld [vmem:[#allocation147_spill] sm:$0xff]  ;;  %v752_v31 = vsel %vm746_vm1, %v10221_v7, %v10224_v40  ;;  %v7801_v11 = vmul.f32 %v10214_v12, %v10226_v49  ;;  %v758_v36 = vsel %vm746_vm1, %v10225_v35, %v10227_v27  ;;  %v10230_v40 = vld [vmem:[#allocation84_spill] sm:$0xff]  ;;  %v10231_v27 = vld [vmem:[#allocation85_spill] sm:$0xff] }
 0x273   : > { %1818 = vrot.lane.b32.xlu0 %v10223_v25, %s6122_s8  ;;  %v7808_v25 = vmul.f32 %v10195_v58, %v10226_v49  ;;  %v7812_v42 = vmul.f32 %v10198_v19, %v10226_v49  ;;  %v10228_v7 = vld [vmem:[#allocation7_spill] sm:$0xff]  ;;  %v803_v47 = vadd.f32 %v751_v13, %v594_v63  ;;  %v960_v12 = vsel %vm955_vm2, %v10131_v3, %v10229_v20  ;;  %v10235_v3 = vld [vmem:[#allocation136_spill] sm:$0xff]  ;;  %v10236_v13 = vld [vmem:[#allocation137_spill] sm:$0xff] }
 0x274   : > { %v7816_v57 = vmul.f32 %v10228_v7, %v10213_v5  ;;  %v961_v35 = vsel %vm955_vm2, %v10229_v20, %v10230_v40  ;;  %v966_v58 = vsel %vm955_vm2, %v10134_v15, %v10231_v27  ;;  %v7827_v23 = vpop.permute.xlu1 %1593  ;;  %v7829_v19 = vpop.permute.xlu0 %1595  ;;  %v804_v62 = vadd.f32 %v752_v31, %v595_v43  ;;  %v10237_v40 = vld [vmem:[#allocation87_spill] sm:$0xff] }
 0x275   : > { %10232 = vst [vmem:[#allocation36_spill] sm:$0xff] %v7827_v23  ;;  %10233 = vst [vmem:[#allocation35_spill] sm:$0xff] %v7829_v19  ;;  %v810_v5 = vadd.f32 %v757_v22, %v601_v38  ;;  %v967_v63 = vsel %vm955_vm2, %v10231_v27, %v10234_v26  ;;  %v811_v20 = vadd.f32 %v758_v36, %v602_v54  ;;  %v10238_v23 = vld [vmem:[#allocation88_spill] sm:$0xff]  ;;  %v10239_v22 = vld [vmem:[#allocation89_spill] sm:$0xff]  ;;  %v10241_v54 = vmax.f32 %v7735_v33, 0.0 }
 0x276   : > { %1800 = vrot.lane.b32.xlu1 %v10235_v3, %s6122_s8  ;;  %v1169_v15 = vsel %vm1164_vm3, %v10139_v53, %v10237_v40  ;;  %v1170_v43 = vsel %vm1164_vm3, %v10237_v40, %v10238_v23  ;;  %v1175_v38 = vsel %vm1164_vm3, %v10141_v52, %v10239_v22  ;;  %v1012_v27 = vadd.f32 %v960_v12, %v803_v47  ;;  %v10240_v3 = vld [vmem:[#allocation90_spill] sm:$0xff]  ;;  %v10243_v45 = vld [vmem:[#allocation99_spill] sm:$0xff]  ;;  %v10244_v23 = vld [vmem:[#allocation100_spill] sm:$0xff] }
 0x277   : > { %1814 = vrot.lane.b32.xlu0 %v10236_v13, %s6122_s8  ;;  %v1013_v31 = vadd.f32 %v961_v35, %v804_v62  ;;  %v1019_v26 = vadd.f32 %v966_v58, %v810_v5  ;;  %v1176_v13 = vsel %vm1164_vm3, %v10239_v22, %v10240_v3  ;;  %v10242_v36 = vmax.f32 %v7748_v29, 0.0  ;;  %v10245_v58 = vld [vmem:[#allocation148_spill] sm:$0xff]  ;;  %v10247_v22 = vld [vmem:[#allocation102_spill] sm:$0xff]  ;;  %v10255_v33 = vld [vmem:[#allocation127_spill] sm:$0xff] }
 0x278   : > { %v1020_v19 = vadd.f32 %v967_v63, %v811_v20  ;;  %v1378_v40 = vsel %vm1373_vm4, %v10146_v28, %v10243_v45  ;;  %v1379_v52 = vsel %vm1373_vm4, %v10243_v45, %v10244_v23  ;;  %v7862_v5 = vpop.permute.xlu1 %1597  ;;  %v7864_v62 = vpop.permute.xlu0 %1599  ;;  %v1221_v47 = vadd.f32 %v1169_v15, %v1012_v27  ;;  %v10246_v20 = vld [vmem:[#allocation101_spill] sm:$0xff] }
 0x279   : > { %v7854_v53 = vpack.i.bf16 %v10242_v36, %v10241_v54  ;;  %v1222_v12 = vadd.f32 %v1170_v43, %v1013_v31  ;;  %v1228_v35 = vadd.f32 %v1175_v38, %v1019_v26  ;;  %v1384_v28 = vsel %vm1373_vm4, %v10150_v18, %v10246_v20  ;;  %v10248_v54 = vld [vmem:[#allocation113_spill] sm:$0xff]  ;;  %v10249_v26 = vld [vmem:[#allocation92_spill] sm:$0xff]  ;;  %v10250_v43 = vld [vmem:[#allocation91_spill] sm:$0xff] }
 0x27a   : > { %1816 = vrot.lane.b32.xlu1 %v10245_v58, %s6122_s8  ;;  %v1229_v63 = vadd.f32 %v1176_v13, %v1020_v19  ;;  %v1385_v45 = vsel %vm1373_vm4, %v10246_v20, %v10247_v22  ;;  %v1608_v15 = vsel %vm1603_vm5, %v10154_v4, %v10248_v54  ;;  %v553_v38 = vsel %vm537_vm0, %v10250_v43, %v10249_v26  ;;  %v10251_v27 = vld [vmem:[#allocation93_spill] sm:$0xff]  ;;  %v10252_v13 = vld [vmem:[#allocation114_spill] sm:$0xff]  ;;  %v10253_v36 = vld [vmem:[#allocation115_spill] sm:$0xff] }
 0x27b   : > { %1830 = vrot.lane.b32.xlu0 %v7660_v55, %s6122_s8  ;;  %v554_v55 = vsel %vm537_vm0, %v10249_v26, %v10251_v27  ;;  %v1430_v19 = vadd.f32 %v1378_v40, %v1221_v47  ;;  %v1431_v31 = vadd.f32 %v1379_v52, %v1222_v12  ;;  %v1609_v18 = vsel %vm1603_vm5, %v10248_v54, %v10252_v13  ;;  %v10254_v20 = vld [vmem:[#allocation116_spill] sm:$0xff]  ;;  %v10257_v54 = vld [vmem:[#allocation94_spill] sm:$0xff]  ;;  %v10259_v23 = vld [vmem:[#allocation129_spill] sm:$0xff] }
 0x27c   : > { %v1615_v58 = vsel %vm1603_vm5, %v10158_v51, %v10253_v36  ;;  %v1616_v4 = vsel %vm1603_vm5, %v10253_v36, %v10254_v20  ;;  %v1837_v29 = vsel %vm1832_vm6, %v10164_v21, %v10255_v33  ;;  %v7897_v22 = vpop.permute.xlu1 %1575  ;;  %v7899_v40 = vpop.permute.xlu0 %1591  ;;  %v1437_v52 = vadd.f32 %v1384_v28, %v1228_v35  ;;  %v10256_v51 = vld [vmem:[#allocation138_spill] sm:$0xff]  ;;  %v10258_v36 = vld [vmem:[#allocation128_spill] sm:$0xff] }
 0x27d   : > { %v1438_v47 = vadd.f32 %v1385_v45, %v1229_v63  ;;  %v1664_v12 = vadd.f32 %v1608_v15, %v1430_v19  ;;  %v555_v26 = vsel %vm537_vm0, %v10251_v27, %v10257_v54  ;;  %v1838_v21 = vsel %vm1832_vm6, %v10255_v33, %v10258_v36  ;;  %v10260_v63 = vld [vmem:[#allocation130_spill] sm:$0xff] }
 0x27e   : > { %2031 = vrot.lane.b32.xlu1 %v7667_v44, %s6123_s13  ;;  %v1844_v35 = vsel %vm1832_vm6, %v10168_v41, %v10259_v23  ;;  %v1845_v28 = vsel %vm1832_vm6, %v10259_v23, %v10260_v63  ;;  %v1665_v44 = vadd.f32 %v1609_v18, %v1431_v31  ;;  %v1671_v45 = vadd.f32 %v1615_v58, %v1437_v52  ;;  %v10264_v52 = vld [vmem:[#allocation97_spill] sm:$0xff] }
 0x27f   : > { %2047 = vrot.lane.b32.xlu0 %v10256_v51, %s6123_s13  ;;  %v1672_v15 = vadd.f32 %v1616_v4, %v1438_v47  ;;  %v1893_v19 = vadd.f32 %v1837_v29, %v1664_v12  ;;  %v2066_v27 = vsel %vm2061_vm7, %v10181_v30, %v7467_v46  ;;  %v10261_v51 = vld [vmem:[#allocation15_spill] sm:$0xff]  ;;  %v2073_v41 = vsel %vm2061_vm7, %v10177_v17, %v7493_v14  ;;  %v10265_v47 = vld [vmem:[#allocation98_spill] sm:$0xff] }
 0x280   : > { %v2067_v33 = vsel %vm2061_vm7, %v7467_v46, %v10261_v51  ;;  %v2074_v23 = vsel %vm2061_vm7, %v7493_v14, %v7495_v10  ;;  %v7929_v31 = vpop.permute.xlu1 %1806  ;;  %v7931_v18 = vpop.permute.xlu0 %1808  ;;  %v1894_v29 = vadd.f32 %v1838_v21, %v1665_v44  ;;  %v1900_v58 = vadd.f32 %v1844_v35, %v1671_v45  ;;  %v10262_v46 = vld [vmem:[#allocation96_spill] sm:$0xff]  ;;  %v10263_v30 = vld [vmem:[#allocation95_spill] sm:$0xff] }
 0x281   : > { %v1901_v4 = vadd.f32 %v1845_v28, %v1672_v15  ;;  %v559_v17 = vsel %vm537_vm0, %v10263_v30, %v10262_v46  ;;  %v560_v14 = vsel %vm537_vm0, %v10262_v46, %v10264_v52  ;;  %v561_v12 = vsel %vm537_vm0, %v10264_v52, %v10265_v47  ;;  %v10266_v21 = vld [vmem:[#allocation103_spill] sm:$0xff]  ;;  %v10268_v47 = vld [vmem:[#allocation104_spill] sm:$0xff] }
 0x282   : > { %2029 = vrot.lane.b32.xlu1 %v7674_v2, %s6123_s13  ;;  %v552_v35 = vsel %vm537_vm0, %v10266_v21, %v10250_v43  ;;  %v2122_v2 = vadd.f32 %v2066_v27, %v1893_v19  ;;  %v2123_v28 = vadd.f32 %v2067_v33, %v1894_v29  ;;  %v2129_v44 = vadd.f32 %v2073_v41, %v1900_v58  ;;  %v10269_v19 = vld [vmem:[#allocation106_spill] sm:$0xff]  ;;  %v10270_v27 = vld [vmem:[#allocation105_spill] sm:$0xff] }
 0x283   : > { %2043 = vrot.lane.b32.xlu0 %v7700_v59, %s6123_s13  ;;  %v2130_v59 = vadd.f32 %v2074_v23, %v1901_v4  ;;  %v607_v45 = vadd.f32 %v553_v38, %v7752_v0  ;;  %v608_v15 = vadd.f32 %v554_v55, %v7782_v24  ;;  %v609_v54 = vadd.f32 %v555_v26, %v7786_v6  ;;  %v10271_v0 = vld [vmem:[#allocation107_spill] sm:$0xff]  ;;  %v10288_v21 = vld [vmem:[#allocation122_spill] sm:$0xff] }
 0x284   : > { %v376_v46 = vmul.f32 %v10228_v7, %v10226_v49  ;;  %v7954_v10 = vpop.permute.xlu1 %1810  ;;  %v7956_v52 = vpop.permute.xlu0 %1812  ;;  %v558_v43 = vsel %vm537_vm0, %v10268_v47, %v10263_v30  ;;  %v762_v33 = vsel %vm746_vm1, %v10270_v27, %v10269_v19  ;;  %v763_v24 = vsel %vm746_vm1, %v10269_v19, %v10271_v0  ;;  %v10272_v6 = vld [vmem:[#allocation139_spill] sm:$0xff]  ;;  %v10273_v7 = vld [vmem:[#allocation140_spill] sm:$0xff]  ;;  %v10291_v49 = vld [vmem:[#allocation125_spill] sm:$0xff] }
 0x285   : > { %10267 = vst [vmem:[#allocation37_spill] sm:$0xff] %v7956_v52  ;;  %v614_v38 = vadd.f32 %v559_v17, %v7801_v11  ;;  %v615_v55 = vadd.f32 %v560_v14, %v7808_v25  ;;  %v616_v26 = vadd.f32 %v561_v12, %v7812_v42  ;;  %v606_v41 = vadd.f32 %v552_v35, %v7816_v57  ;;  %v10278_v25 = vld [vmem:[#allocation108_spill] sm:$0xff]  ;;  %v10279_v12 = vld [vmem:[#allocation110_spill] sm:$0xff]  ;;  %v10280_v35 = vld [vmem:[#allocation109_spill] sm:$0xff] }
 0x286   : > { %2045 = vrot.lane.b32.xlu1 %v10272_v6, %s6123_s13  ;;  %v7976_v23 = vadd.f32 %v10186_v61, %v2122_v2  ;;  %v7979_v29 = vadd.f32 %v10186_v61, %v2123_v28  ;;  %v7982_v58 = vadd.f32 %v10188_v37, %v2129_v44  ;;  %v7985_v4 = vadd.f32 %v10188_v37, %v2130_v59  ;;  %v10281_v28 = vld [vmem:[#allocation111_spill] sm:$0xff]  ;;  %v10282_v59 = vld [vmem:[#allocation112_spill] sm:$0xff]  ;;  %v10287_v6 = vld [vmem:[#allocation121_spill] sm:$0xff] }
 0x287   : > { %2059 = vrot.lane.b32.xlu0 %v10273_v7, %s6123_s13  ;;  %v613_v30 = vadd.f32 %v558_v43, %v376_v46  ;;  %v816_v11 = vadd.f32 %v762_v33, %v607_v45  ;;  %v817_v17 = vadd.f32 %v763_v24, %v608_v15  ;;  %v764_v42 = vsel %vm746_vm1, %v10271_v0, %v10278_v25  ;;  %v10283_v15 = vld [vmem:[#allocation117_spill] sm:$0xff]  ;;  %v10284_v43 = vld [vmem:[#allocation118_spill] sm:$0xff]  ;;  %v10285_v33 = vld [vmem:[#allocation120_spill] sm:$0xff]  ;;  %s6129_s13 = smov 94  }
 0x288   : > { %10274 = vst [vmem:[#allocation38_spill] sm:$0xff] %v7976_v23  ;;  %10275 = vst [vmem:[#allocation40_spill] sm:$0xff] %v7979_v29  ;;  %v7990_v57 = vpop.permute.xlu1 %1822  ;;  %v7992_v14 = vpop.permute.xlu0 %1824  ;;  %v768_v2 = vsel %vm746_vm1, %v10280_v35, %v10279_v12  ;;  %v769_v44 = vsel %vm746_vm1, %v10279_v12, %v10281_v28  ;;  %v770_v45 = vsel %vm746_vm1, %v10281_v28, %v10282_v59  ;;  %v10286_v0 = vld [vmem:[#allocation119_spill] sm:$0xff]  ;;  %v10289_v25 = vld [vmem:[#allocation124_spill] sm:$0xff]  ;;  %v10296_v12 = vmax.f32 %v7979_v29, 0.0 }
 0x289   : > { %10276 = vst [vmem:[#allocation39_spill] sm:$0xff] %v7982_v58  ;;  %10277 = vst [vmem:[#allocation41_spill] sm:$0xff] %v7985_v4  ;;  %v761_v46 = vsel %vm746_vm1, %v10283_v15, %v10270_v27  ;;  %v767_v19 = vsel %vm746_vm1, %v10284_v43, %v10280_v35  ;;  %v971_v24 = vsel %vm955_vm2, %v10286_v0, %v10285_v33  ;;  %v10308_v29 = vld [vmem:[#allocation152_spill] sm:$0xff] }
 0x28a   : > { %5433 = vrot.lane.b32.xlu1 %v7762_v48, %s6116_s23  ;;  %v972_v7 = vsel %vm955_vm2, %v10285_v33, %v10287_v6  ;;  %v818_v28 = vadd.f32 %v764_v42, %v609_v54  ;;  %v823_v15 = vadd.f32 %v768_v2, %v614_v38  ;;  %v824_v59 = vadd.f32 %v769_v44, %v615_v55  ;;  %v10290_v48 = vld [vmem:[#allocation123_spill] sm:$0xff]  ;;  %v10292_v42 = vld [vmem:[#allocation126_spill] sm:$0xff] }
 0x28b   : > { %5438 = vrot.lane.b32.xlu0 %v7768_v9, %s6116_s23  ;;  %v825_v35 = vadd.f32 %v770_v45, %v616_v26  ;;  %v973_v33 = vsel %vm955_vm2, %v10287_v6, %v10288_v21  ;;  %v977_v9 = vsel %vm955_vm2, %v10290_v48, %v10289_v25  ;;  %v978_v27 = vsel %vm955_vm2, %v10289_v25, %v10291_v49  ;;  %v10293_v44 = vld [vmem:[#allocation134_spill] sm:$0xff]  ;;  %v10294_v45 = vld [vmem:[#allocation133_spill] sm:$0xff] }
 0x28c   : > { %v8023_v43 = vpop.permute.xlu1 %1826  ;;  %v8025_v47 = vpop.permute.xlu0 %1828  ;;  %v815_v54 = vadd.f32 %v761_v46, %v606_v41  ;;  %v822_v38 = vadd.f32 %v767_v19, %v613_v30  ;;  %v1025_v55 = vadd.f32 %v971_v24, %v816_v11  ;;  %v1026_v26 = vadd.f32 %v972_v7, %v817_v17  ;;  %v10299_v46 = vld [vmem:[#allocation131_spill] sm:$0xff]  ;;  %v10302_v7 = vld [vmem:[#allocation132_spill] sm:$0xff] }
 0x28d   : > { %v979_v2 = vsel %vm955_vm2, %v10291_v49, %v10292_v42  ;;  %v1180_v6 = vsel %vm1164_vm3, %v10294_v45, %v10293_v44  ;;  %v10295_v25 = vmax.f32 %v7976_v23, 0.0  ;;  %v10297_v21 = vmax.f32 %v7982_v58, 0.0  ;;  %v10314_v58 = vld [vmem:[#allocation35_spill] sm:$0xff] }
 0x28e   : > { %5443 = vrot.lane.b32.xlu1 %v7774_v8, %s6116_s23  ;;  %v1027_v30 = vadd.f32 %v973_v33, %v818_v28  ;;  %v1032_v11 = vadd.f32 %v977_v9, %v823_v15  ;;  %v1033_v17 = vadd.f32 %v978_v27, %v824_v59  ;;  %v970_v49 = vsel %vm955_vm2, %v10299_v46, %v10286_v0  ;;  %v10304_v0 = vld [vmem:[#allocation142_spill] sm:$0xff] }
 0x28f   : > { %5448 = vrot.lane.b32.xlu0 %v7854_v53, %s6116_s23  ;;  %v5452_v8 = vpack.i.bf16 %v10296_v12, %v10295_v25  ;;  %v10298_v53 = vmax.f32 %v7985_v4, 0.0  ;;  %v976_v12 = vsel %vm955_vm2, %v10302_v7, %v10290_v48  ;;  %v10303_v25 = vld [vmem:[#allocation141_spill] sm:$0xff]  ;;  %v1034_v59 = vadd.f32 %v979_v2, %v825_v35  ;;  %v10305_v27 = vld [vmem:[#allocation150_spill] sm:$0xff] }
 0x290   : > { %v8057_v19 = vpop.permute.xlu1 %2162  ;;  %v8059_v24 = vpop.permute.xlu0 %2167  ;;  %v1181_v4 = vsel %vm1164_vm3, %v10293_v44, %v10303_v25  ;;  %v1234_v15 = vadd.f32 %v1180_v6, %v1025_v55  ;;  %v1182_v9 = vsel %vm1164_vm3, %v10303_v25, %v10304_v0  ;;  %v10306_v48 = vld [vmem:[#allocation149_spill] sm:$0xff]  ;;  %v1024_v33 = vadd.f32 %v970_v49, %v815_v54  ;;  %v10307_v44 = vld [vmem:[#allocation151_spill] sm:$0xff] }
 0x291   : > { %v5457_v41 = vpack.i.bf16 %v10298_v53, %v10297_v21  ;;  %10300 = vst [vmem:[#allocation42_spill] sm:$0xff] %v8057_v19  ;;  %10301 = vst [vmem:[#allocation43_spill] sm:$0xff] %v8059_v24  ;;  %v1389_v21 = vsel %vm1373_vm4, %v7557_v32, %v7559_v60  ;;  %v1186_v28 = vsel %vm1164_vm3, %v10306_v48, %v10305_v27 }
 0x292   : > { %5453 = vrot.lane.b32.xlu1 %v5452_v8, %s6116_s23  ;;  %v1187_v53 = vsel %vm1164_vm3, %v10305_v27, %v10307_v44  ;;  %v1188_v8 = vsel %vm1164_vm3, %v10307_v44, %v10308_v29  ;;  %v1621_v35 = vsel %vm1603_vm5, %v7726_v50, %v7728_v16  ;;  %v1031_v55 = vadd.f32 %v976_v12, %v822_v38 }
 0x293   : > { %5458 = vrot.lane.b32.xlu0 %v5457_v41, %s6116_s23  ;;  %v1235_v2 = vadd.f32 %v1181_v4, %v1026_v26  ;;  %v1443_v6 = vadd.f32 %v1389_v21, %v1234_v15  ;;  %v1390_v41 = vsel %vm1373_vm4, %v7559_v60, %v7586_v56  ;;  %v1236_v25 = vadd.f32 %v1182_v9, %v1027_v30  ;;  %v10309_v21 = vld [vmem:[#allocation17_spill] sm:$0xff]  ;;  %v10310_v15 = vld [vmem:[#allocation34_spill] sm:$0xff] }
 0x294   : > { %v8090_v54 = vpop.permute.xlu1 %1804  ;;  %v8092_v49 = vpop.permute.xlu0 %1820  ;;  %v1241_v27 = vadd.f32 %v1186_v28, %v1032_v11  ;;  %v1391_v44 = vsel %vm1373_vm4, %v7586_v56, %v7588_v34  ;;  %v1850_v38 = vsel %vm1832_vm6, %v7929_v31, %v7931_v18  ;;  %v1242_v4 = vadd.f32 %v1187_v53, %v1033_v17  ;;  %v10312_v28 = vld [vmem:[#allocation19_spill] sm:$0xff] }
 0x295   : > { %v1243_v26 = vadd.f32 %v1188_v8, %v1034_v59  ;;  %v1179_v60 = vsel %vm1164_vm3, %v7528_v1, %v10294_v45  ;;  %v1677_v12 = vadd.f32 %v1621_v35, %v1443_v6  ;;  %v1185_v30 = vsel %vm1164_vm3, %v10309_v21, %v10306_v48  ;;  %v10311_v59 = vld [vmem:[#allocation20_spill] sm:$0xff]  ;;  %v10313_v45 = vld [vmem:[#allocation21_spill] sm:$0xff]  ;;  %v10317_v34 = vld [vmem:[#allocation27_spill] sm:$0xff] }
 0x296   : > { %v1444_v11 = vadd.f32 %v1390_v41, %v1235_v2  ;;  %v1622_v56 = vsel %vm1603_vm5, %v7728_v16, %v7754_v39  ;;  %v1623_v9 = vsel %vm1603_vm5, %v7754_v39, %v10310_v15  ;;  %v1445_v17 = vadd.f32 %v1391_v44, %v1236_v25  ;;  %v10316_v15 = vld [vmem:[#allocation23_spill] sm:$0xff] }
 0x297   : > { %v1395_v53 = vsel %vm1373_vm4, %v10312_v28, %v10311_v59  ;;  %v1396_v8 = vsel %vm1373_vm4, %v10311_v59, %v10313_v45  ;;  %v1906_v35 = vadd.f32 %v1850_v38, %v1677_v12  ;;  %v1233_v6 = vadd.f32 %v1179_v60, %v1024_v33  ;;  %v10315_v59 = vld [vmem:[#allocation36_spill] sm:$0xff] }
 0x298   : > { %v8118_v48 = vpop.permute.xlu1 %2035  ;;  %v2038_v2 = vpop.permute.xlu0 %2037  ;;  %v1851_v16 = vsel %vm1832_vm6, %v7931_v18, %v7954_v10  ;;  %v1852_v39 = vsel %vm1832_vm6, %v7954_v10, %v7956_v52  ;;  %v1678_v25 = vadd.f32 %v1622_v56, %v1444_v11  ;;  %v1679_v44 = vadd.f32 %v1623_v9, %v1445_v17 }
 0x299   : > { %v2079_v41 = vsel %vm2061_vm7, %v8118_v48, %v2038_v2  ;;  %v1628_v38 = vsel %vm1603_vm5, %v10315_v59, %v10314_v58  ;;  %v1240_v23 = vadd.f32 %v1185_v30, %v1031_v55  ;;  %v1450_v33 = vadd.f32 %v1395_v53, %v1241_v27 }
 0x29a   : > { %v2135_v12 = vadd.f32 %v2079_v41, %v1906_v35  ;;  %v1451_v60 = vadd.f32 %v1396_v8, %v1242_v4  ;;  %v1397_v18 = vsel %vm1373_vm4, %v10313_v45, %v10316_v15  ;;  %v1388_v10 = vsel %vm1373_vm4, %v10317_v34, %v7557_v32 }
 0x29b   : > { %v1629_v11 = vsel %vm1603_vm5, %v10314_v58, %v7862_v5  ;;  %v1907_v56 = vadd.f32 %v1851_v16, %v1678_v25  ;;  %v1908_v9 = vadd.f32 %v1852_v39, %v1679_v44  ;;  %v1684_v55 = vadd.f32 %v1628_v38, %v1450_v33  ;;  %v10320_v16 = vld [vmem:[#allocation28_spill] sm:$0xff] }
 0x29c   : > { %v2040_v17 = vpop.permute.xlu1 %2039  ;;  %v8140_v52 = vpop.permute.xlu0 %2041  ;;  %v1857_v27 = vsel %vm1832_vm6, %v7990_v57, %v7992_v14  ;;  %v1630_v32 = vsel %vm1603_vm5, %v7862_v5, %v7864_v62  ;;  %v8152_v58 = vadd.f32 %v8057_v19, %v2135_v12  ;;  %v1452_v8 = vadd.f32 %v1397_v18, %v1243_v26 }
 0x29d   : > { %10318 = vst [vmem:[#allocation44_spill] sm:$0xff] %v8140_v52  ;;  %v2080_v4 = vsel %vm2061_vm7, %v2038_v2, %v2040_v17  ;;  %v2081_v30 = vsel %vm2061_vm7, %v2040_v17, %v8140_v52  ;;  %v1442_v35 = vadd.f32 %v1388_v10, %v1233_v6  ;;  %v1394_v39 = vsel %vm1373_vm4, %v10320_v16, %v10312_v28  ;;  %v10323_v10 = vld [vmem:[#allocation13_spill] sm:$0xff] }
 0x29e   : > { %10319 = vst [vmem:[#allocation45_spill] sm:$0xff] %v8152_v58  ;;  %v2136_v53 = vadd.f32 %v2080_v4, %v1907_v56  ;;  %v2137_v45 = vadd.f32 %v2081_v30, %v1908_v9  ;;  %v1685_v41 = vadd.f32 %v1629_v11, %v1451_v60  ;;  %v1620_v2 = vsel %vm1603_vm5, %v7897_v22, %v7726_v50  ;;  %v10324_v11 = vld [vmem:[#allocation6_spill] sm:$0xff] }
 0x29f   : > { %v1913_v25 = vadd.f32 %v1857_v27, %v1684_v55  ;;  %v1858_v5 = vsel %vm1832_vm6, %v7992_v14, %v8023_v43  ;;  %v1686_v6 = vadd.f32 %v1630_v32, %v1452_v8  ;;  %v1627_v28 = vsel %vm1603_vm5, %v7899_v40, %v10315_v59 }
 0x2a0   : > { %v8164_v44 = vadd.f32 %v8057_v19, %v2136_v53  ;;  %v2052_v38 = vpop.permute.xlu1 %2051  ;;  %v2054_v26 = vpop.permute.xlu0 %2053  ;;  %v1859_v12 = vsel %vm1832_vm6, %v8023_v43, %v8025_v47  ;;  %v9956_v33 = vmax.f32 %v8152_v58, 0.0  ;;  %v8176_v60 = vadd.f32 %v8057_v19, %v2137_v45  ;;  %v10351_v58 = vld [vmem:[#allocation104_spill] sm:$0xff] }
 0x2a1   : > { %v2086_v50 = vsel %vm2061_vm7, %v2052_v38, %v2054_v26  ;;  %v366_v56 = vmul.f32 %v10324_v11, %v10323_v10  ;;  %v1449_v9 = vadd.f32 %v1394_v39, %v1240_v23  ;;  %v1676_v17 = vadd.f32 %v1620_v2, %v1442_v35  ;;  %v10327_v2 = vld [vmem:[#allocation32_spill] sm:$0xff] }
 0x2a2   : > { %10321 = vst [vmem:[#allocation46_spill] sm:$0xff] %v8164_v44  ;;  %v9955_v14 = vmax.f32 %v8164_v44, 0.0  ;;  %10322 = vst [vmem:[#allocation48_spill] sm:$0xff] %v8176_v60  ;;  %v2142_v18 = vadd.f32 %v2086_v50, %v1913_v25  ;;  %v1914_v59 = vadd.f32 %v1858_v5, %v1685_v41  ;;  %v1915_v55 = vadd.f32 %v1859_v12, %v1686_v6  ;;  %v10328_v25 = vld [vmem:[#allocation64_spill] sm:$0xff]  ;;  %v10329_v6 = vld [vmem:[#allocation66_spill] sm:$0xff] }
 0x2a3   : > { %v1849_v43 = vsel %vm1832_vm6, %v8090_v54, %v7929_v31  ;;  %v1683_v53 = vadd.f32 %v1627_v28, %v1449_v9  ;;  %v1856_v23 = vsel %vm1832_vm6, %v8092_v49, %v7990_v57  ;;  %v9947_v8 = vmax.f32 %v8176_v60, 0.0  ;;  %v10345_v60 = vld [vmem:[#allocation78_spill] sm:$0xff] }
 0x2a4   : > { %v8184_v27 = vadd.f32 %v8059_v24, %v2142_v18  ;;  %v2056_v4 = vpop.permute.xlu1 %2055  ;;  %v8186_v30 = vpop.permute.xlu0 %2057  ;;  %v5462_v32 = vpack.i.bf16 %v9955_v14, %v9956_v33  ;;  %v596_v5 = vadd.f32 %v10328_v25, %v10327_v2  ;;  %v603_v28 = vadd.f32 %v10329_v6, %v366_v56  ;;  %v10333_v56 = vld [vmem:[#allocation82_spill] sm:$0xff]  ;;  %v10344_v14 = vld [vmem:[#allocation77_spill] sm:$0xff] }
 0x2a5   : > { %10326 = vst [vmem:[#allocation51_spill] sm:$0xff] %v8186_v30  ;;  %v2087_v45 = vsel %vm2061_vm7, %v2054_v26, %v2056_v4  ;;  %v2088_v31 = vsel %vm2061_vm7, %v2056_v4, %v8186_v30  ;;  %v1905_v12 = vadd.f32 %v1849_v43, %v1676_v17  ;;  %v1912_v57 = vadd.f32 %v1856_v23, %v1683_v53 }
 0x2a6   : > { %10325 = vst [vmem:[#allocation47_spill] sm:$0xff] %v8184_v27  ;;  %v9954_v35 = vmax.f32 %v8184_v27, 0.0  ;;  %v2143_v39 = vadd.f32 %v2087_v45, %v1914_v59  ;;  %v2144_v41 = vadd.f32 %v2088_v31, %v1915_v55  ;;  %5463 = vrot.lane.b32.xlu1 %v5462_v32, %s6116_s23  ;;  %v10332_v59 = vld [vmem:[#allocation80_spill] sm:$0xff]  ;;  %v812_v17 = vadd.f32 %v10333_v56, %v603_v28  ;;  %v10350_v27 = vld [vmem:[#allocation103_spill] sm:$0xff] }
 0x2a7   : > { %v805_v55 = vadd.f32 %v10332_v59, %v596_v5  ;;  %v10334_v31 = vld [vmem:[#allocation84_spill] sm:$0xff]  ;;  %v373_v33 = vmul.f32 %v10324_v11, %v10344_v14 }
 0x2a8   : > { %v8205_v26 = vadd.f32 %v8059_v24, %v2143_v39  ;;  %v8208_v50 = vadd.f32 %v8059_v24, %v2144_v41  ;;  %v8210_v18 = vpop.permute.xlu1 %2033  ;;  %v8212_v10 = vpop.permute.xlu0 %2049  ;;  %v5467_v9 = vpack.i.bf16 %v9954_v35, %v9947_v8  ;;  %v10335_v41 = vld [vmem:[#allocation86_spill] sm:$0xff]  ;;  %v10338_v28 = vld [vmem:[#allocation88_spill] sm:$0xff] }
 0x2a9   : > { %v2078_v43 = vsel %vm2061_vm7, %v8210_v18, %v8118_v48  ;;  %v2085_v4 = vsel %vm2061_vm7, %v8212_v10, %v2052_v38  ;;  %v1014_v39 = vadd.f32 %v10334_v31, %v805_v55  ;;  %v1021_v2 = vadd.f32 %v10335_v41, %v812_v17  ;;  %v10339_v17 = vld [vmem:[#allocation100_spill] sm:$0xff] }
 0x2aa   : > { %10330 = vst [vmem:[#allocation52_spill] sm:$0xff] %v8205_v26  ;;  %10331 = vst [vmem:[#allocation54_spill] sm:$0xff] %v8208_v50  ;;  %v9953_v32 = vmax.f32 %v8205_v26, 0.0  ;;  %v9948_v53 = vmax.f32 %v8208_v50, 0.0  ;;  %v2134_v23 = vadd.f32 %v2078_v43, %v1905_v12  ;;  %v2141_v45 = vadd.f32 %v2085_v4, %v1912_v57  ;;  %5468 = vrot.lane.b32.xlu0 %v5467_v9, %s6116_s23  ;;  %v10340_v4 = vld [vmem:[#allocation102_spill] sm:$0xff] }
 0x2ab   : > { %v1223_v12 = vadd.f32 %v10338_v28, %v1014_v39  ;;  %v1230_v57 = vadd.f32 %v10240_v3, %v1021_v2  ;;  %v5882_v8 = vld [vmem:[%s9780_s5 + $0x180] ss:$12 sps:$4 sm:$0xff]  }
 0x2ac   : > { %v8231_v25 = vadd.f32 %v8057_v19, %v2134_v23  ;;  %v8234_v48 = vadd.f32 %v8059_v24, %v2141_v45  ;;  %v1554_v5 = vpop.permute.xlu1 %1553  ;;  %v1570_v38 = vpop.permute.xlu0 %1569  ;;  %v5472_v6 = vpack.i.bf16 %v9948_v53, %v9953_v32  ;;  %v10355_v24 = vld [vmem:[#allocation117_spill] sm:$0xff] }
 0x2ad   : > { %v1610_v55 = vsel %vm1603_vm5, %v10252_v13, %v1554_v5  ;;  %v1617_v56 = vsel %vm1603_vm5, %v10254_v20, %v1570_v38  ;;  %v1432_v43 = vadd.f32 %v10339_v17, %v1223_v12  ;;  %v1439_v23 = vadd.f32 %v10340_v4, %v1230_v57  ;;  %v10341_v12 = vld [vmem:[#allocation16_spill] sm:$0xff] }
 0x2ae   : > { %10336 = vst [vmem:[#allocation49_spill] sm:$0xff] %v8231_v25  ;;  %10337 = vst [vmem:[#allocation53_spill] sm:$0xff] %v8234_v48  ;;  %v9952_v9 = vmax.f32 %v8231_v25, 0.0  ;;  %v9951_v59 = vmax.f32 %v8234_v48, 0.0  ;;  %5473 = vrot.lane.b32.xlu1 %v5472_v6, %s6116_s23  ;;  %v10348_v48 = vld [vmem:[#allocation108_spill] sm:$0xff] }
 0x2af   : > { %v1666_v41 = vadd.f32 %v1610_v55, %v1432_v43  ;;  %v1673_v2 = vadd.f32 %v1617_v56, %v1439_v23  ;;  %v5835_v55 = vld [vmem:[%s9780_s5 + $0x94] ss:$12 sps:$4 sm:$0xff]  }
 0x2b0   : > { %v1783_v45 = vpop.permute.xlu1 %1782  ;;  %v1799_v31 = vpop.permute.xlu0 %1798  ;;  %v5477_v3 = vpack.i.bf16 %v9951_v59, %v9952_v9  ;;  %v5894_v59 = vld [vmem:[%s9780_s5 + $0x2d0] ss:$12 sps:$4 sm:$0xff]  }
 0x2b1   : > { %v1839_v39 = vsel %vm1832_vm6, %v10258_v36, %v1783_v45  ;;  %v1846_v13 = vsel %vm1832_vm6, %v10260_v63, %v1799_v31  ;;  %v5832_v36 = vld [vmem:[%s9780_s5 + $0xac] ss:$12 sps:$4 sm:$0xff]   ;;  %v5834_v63 = vld [vmem:[%s9780_s5 + $0xa8] ss:$12 sps:$4 sm:$0xff]  }
 0x2b2   : > { %5478 = vrot.lane.b32.xlu0 %v5477_v3, %s6116_s23  ;;  %v1895_v20 = vadd.f32 %v1839_v39, %v1666_v41  ;;  %v1902_v5 = vadd.f32 %v1846_v13, %v1673_v2  ;;  %v5837_v45 = vld [vmem:[%s9780_s5 + $0x22c] ss:$12 sps:$4 sm:$0xff]   ;;  %v5840_v31 = vld [vmem:[%s9780_s5 + $0x228] ss:$12 sps:$4 sm:$0xff]   ;;  %3605 = vmatprep.subr.bf16.mxu0 %v5832_v36  ;;  %v5839_v39 = vld [vmem:[%s9780_s5 + $0x90] ss:$12 sps:$4 sm:$0xff]  }
 0x2b3   : > { %3606 = vmatpush1.bf16.msra.mxu0 %v5834_v63  ;;  %3658 = vmatprep.subr.bf16.mxu1 %v5837_v45  ;;  %v5841_v13 = vld [vmem:[%s9780_s5 + $0x7c] ss:$12 sps:$4 sm:$0xff]   ;;  %v5851_v36 = vld [vmem:[%s9780_s5 + $0x60] ss:$12 sps:$4 sm:$0xff]  }
 0x2b4   : > { %v2012_v38 = vpop.permute.xlu1 %2011  ;;  %v2028_v6 = vpop.permute.xlu0 %2027  ;;  %3607 = vmatprep.subr.bf16.mxu0 %v5835_v55  ;;  %3659 = vmatpush1.bf16.msra.mxu1 %v5840_v31  ;;  %v5846_v41 = vld [vmem:[%s9780_s5 + $0x210] ss:$12 sps:$4 sm:$0xff]   ;;  %v5853_v63 = vld [vmem:[%s9780_s5 + $0x4c] ss:$12 sps:$4 sm:$0xff]  }
 0x2b5   : > { %v2068_v28 = vsel %vm2061_vm7, %v10261_v51, %v2012_v38  ;;  %v2075_v57 = vsel %vm2061_vm7, %v10341_v12, %v2028_v6  ;;  %v5849_v38 = vld [vmem:[%s9780_s5 + $0x1fc] ss:$12 sps:$4 sm:$0xff]   ;;  %v5845_v6 = vld [vmem:[%s9780_s5 + $0x78] ss:$12 sps:$4 sm:$0xff]   ;;  %v5858_v55 = vld [vmem:[%s9780_s5 + $0x1e0] ss:$12 sps:$4 sm:$0xff]  }
 0x2b6   : > { %v2124_v17 = vadd.f32 %v2068_v28, %v1895_v20  ;;  %v2131_v4 = vadd.f32 %v2075_v57, %v1902_v5  ;;  %v5847_v28 = vld [vmem:[%s9780_s5 + $0x64] ss:$12 sps:$4 sm:$0xff]  }
 0x2b7   : > { %3608 = vmatpush1.bf16.msra.mxu0 %v5839_v39  ;;  %v5852_v12 = vld [vmem:[%s9780_s5 + $0x1f8] ss:$12 sps:$4 sm:$0xff]   ;;  %v5857_v39 = vld [vmem:[%s9780_s5 + $0x48] ss:$12 sps:$4 sm:$0xff]  }
 0x2b8   : > { %v8274_v56 = vadd.f32 %v10186_v61, %v2124_v17  ;;  %v8277_v51 = vadd.f32 %v10188_v37, %v2131_v4  ;;  %v8279_v43 = vpop.permute.xlu1 %511  ;;  %v8281_v23 = vpop.permute.xlu0 %525  ;;  %v5843_v61 = vld [vmem:[%s9780_s5 + $0x214] ss:$12 sps:$4 sm:$0xff]   ;;  %3609 = vmatprep.subr.bf16.mxu0 %v5841_v13  ;;  %v5855_v4 = vld [vmem:[%s9780_s5 + $0x1e4] ss:$12 sps:$4 sm:$0xff]  }
 0x2b9   : > { %3660 = vmatprep.subr.bf16.mxu1 %v5843_v61  ;;  %v5861_v61 = vld [vmem:[%s9780_s5 + $0x1cc] ss:$12 sps:$4 sm:$0xff]   ;;  %v5859_v13 = vld [vmem:[%s9780_s5 + $0x34] ss:$12 sps:$4 sm:$0xff]   ;;  %v551_v44 = vsel %vm537_vm0, %v8279_v43, %v10350_v27 }
 0x2ba   : > { %10342 = vst [vmem:[#allocation55_spill] sm:$0xff] %v8274_v56  ;;  %10343 = vst [vmem:[#allocation56_spill] sm:$0xff] %v8277_v51  ;;  %v9949_v37 = vmax.f32 %v8274_v56, 0.0  ;;  %v9950_v3 = vmax.f32 %v8277_v51, 0.0  ;;  %3661 = vmatpush1.bf16.msra.mxu1 %v5846_v41  ;;  %v5864_v41 = vld [vmem:[%s9780_s5 + $0x1c8] ss:$12 sps:$4 sm:$0xff]  }
 0x2bb   : > { %3662 = vmatprep.subr.bf16.mxu1 %v5849_v38  ;;  %3610 = vmatpush1.bf16.msra.mxu0 %v5845_v6  ;;  %v5867_v6 = vld [vmem:[%s9780_s5 + $0x1b4] ss:$12 sps:$4 sm:$0xff]  }
 0x2bc   : > { %v5482_v2 = vpack.i.bf16 %v9950_v3, %v9949_v37  ;;  %v8307_v20 = vpop.permute.xlu1 %509  ;;  %v8309_v5 = vpop.permute.xlu0 %523  ;;  %3611 = vmatprep.subr.bf16.mxu0 %v5847_v28  ;;  %v5863_v28 = vld [vmem:[%s9780_s5 + $0x30] ss:$12 sps:$4 sm:$0xff]   ;;  %v5888_v37 = vld [vmem:[%s9780_s5 + $0x2e8] ss:$12 sps:$4 sm:$0xff]  }
 0x2bd   : > { %v10347_v56 = vld [vmem:[#allocation98_spill] sm:$0xff] }
 0x2be   : > { %5483 = vrot.lane.b32.xlu1 %v5482_v2, %s6116_s23  ;;  %3663 = vmatpush1.bf16.msra.mxu1 %v5852_v12  ;;  %v5865_v12 = vld [vmem:[%s9780_s5 + $0x1c] ss:$12 sps:$4 sm:$0xff]  }
 0x2bf   : > { %3664 = vmatprep.subr.bf16.mxu1 %v5855_v4  ;;  %3612 = vmatpush1.bf16.msra.mxu0 %v5851_v36  ;;  %v5870_v4 = vld [vmem:[%s9780_s5 + $0x1b0] ss:$12 sps:$4 sm:$0xff]  }
 0x2c0   : > { %v8324_v57 = vpop.permute.xlu1 %720  ;;  %v8326_v17 = vpop.permute.xlu0 %734  ;;  %3613 = vmatprep.subr.bf16.mxu0 %v5853_v63 }
 0x2c2   : > { %3665 = vmatpush1.bf16.msra.mxu1 %v5858_v55  ;;  %v5873_v55 = vld [vmem:[%s9780_s5 + $0x19c] ss:$12 sps:$4 sm:$0xff]  }
 0x2c3   : > { %3666 = vmatprep.subr.bf16.mxu1 %v5861_v61  ;;  %3614 = vmatpush1.bf16.msra.mxu0 %v5857_v39  ;;  %v5869_v61 = vld [vmem:[%s9780_s5 + $0x18] ss:$12 sps:$4 sm:$0xff]  }
 0x2c4   : > { %v8340_v45 = vpop.permute.xlu1 %718  ;;  %v8342_v31 = vpop.permute.xlu0 %732  ;;  %3615 = vmatprep.subr.bf16.mxu0 %v5859_v13  ;;  %v5871_v39 = vld [vmem:[%s9780_s5 + $0x4] ss:$12 sps:$4 sm:$0xff]  }
 0x2c5   : > { %v5876_v13 = vld [vmem:[%s9780_s5 + $0x198] ss:$12 sps:$4 sm:$0xff]  }
 0x2c6   : > { %3667 = vmatpush1.bf16.msra.mxu1 %v5864_v41 }
 0x2c7   : > { %3668 = vmatprep.subr.bf16.mxu1 %v5867_v6  ;;  %3616 = vmatpush1.bf16.msra.mxu0 %v5863_v28  ;;  %v5879_v28 = vld [vmem:[%s9780_s5 + $0x184] ss:$12 sps:$4 sm:$0xff]  }
 0x2c8   : > { %v8356_v2 = vpop.permute.xlu1 %929  ;;  %v8358_v38 = vpop.permute.xlu0 %943  ;;  %3617 = vmatprep.subr.bf16.mxu0 %v5865_v12  ;;  %v5875_v12 = vld [vmem:[%s9780_s5] ss:$12 sps:$4 sm:$0xff]  }
 0x2ca   : > { %3669 = vmatpush1.bf16.msra.mxu1 %v5870_v4  ;;  %v5877_v4 = vld [vmem:[%s9780_s5 + $0x16c] ss:$12 sps:$4 sm:$0xff]  }
 0x2cb   : > { %3670 = vmatprep.subr.bf16.mxu1 %v5873_v55  ;;  %3618 = vmatpush1.bf16.msra.mxu0 %v5869_v61  ;;  %v5885_v61 = vld [vmem:[%s9780_s5 + $0x2ec] ss:$12 sps:$4 sm:$0xff]  }
 0x2cc   : > { %v8372_v36 = vpop.permute.xlu1 %927  ;;  %v8374_v63 = vpop.permute.xlu0 %941  ;;  %3619 = vmatprep.subr.bf16.mxu0 %v5871_v39  ;;  %v5881_v39 = vld [vmem:[%s9780_s5 + $0x168] ss:$12 sps:$4 sm:$0xff]  }
 0x2ce   : > { %3671 = vmatpush1.bf16.msra.mxu1 %v5876_v13  ;;  %v5883_v13 = vld [vmem:[%s9780_s5 + $0x154] ss:$12 sps:$4 sm:$0xff]  }
 0x2cf   : > { %3672 = vmatprep.subr.bf16.mxu1 %v5879_v28  ;;  %3620 = vmatpush1.bf16.msra.mxu0 %v5875_v12  ;;  %v5891_v12 = vld [vmem:[%s9780_s5 + $0x2d4] ss:$12 sps:$4 sm:$0xff]  }
 0x2d0   : > { %v8388_v41 = vpop.permute.xlu1 %1138  ;;  %v8390_v6 = vpop.permute.xlu0 %1152  ;;  %3621 = vmatprep.subr.bf16.mxu0 %v5877_v4  ;;  %v5889_v4 = vld [vmem:[%s9780_s5 + $0x13c] ss:$12 sps:$4 sm:$0xff]  }
 0x2d2   : > { %3673 = vmatpush1.bf16.msra.mxu1 %v5882_v8  ;;  %v5887_v8 = vld [vmem:[%s9780_s5 + $0x150] ss:$12 sps:$4 sm:$0xff]  }
 0x2d3   : > { %3674 = vmatprep.subr.bf16.mxu1 %v5885_v61  ;;  %3622 = vmatpush2.bf16.msra.mxu0 %v5881_v39  ;;  %v5893_v39 = vld [vmem:[%s9780_s5 + $0x138] ss:$12 sps:$4 sm:$0xff]  }
 0x2d4   : > { %v8404_v55 = vpop.permute.xlu1 %1136  ;;  %v8406_v53 = vpop.permute.xlu0 %1150  ;;  %3623 = vmatprep.subr.bf16.mxu0 %v5883_v13 }
 0x2d6   : > { %3675 = vmatpush2.bf16.msra.mxu1 %v5888_v37 }
 0x2d7   : > { %3676 = vmatprep.subr.bf16.mxu1 %v5891_v12  ;;  %3624 = vmatpush2.bf16.msra.mxu0 %v5887_v8  ;;  %v380_v12 = vmul.f32 %v10324_v11, %v10345_v60  ;;  %v10346_v8 = vld [vmem:[#allocation94_spill] sm:$0xff]  ;;  %v557_v11 = vsel %vm537_vm0, %v8281_v23, %v10351_v58  ;;  %v760_v58 = vsel %vm746_vm1, %v8324_v57, %v10355_v24 }
 0x2d8   : > { %v8420_v28 = vpop.permute.xlu1 %1347  ;;  %v8422_v3 = vpop.permute.xlu0 %1361  ;;  %3625 = vmatprep.subr.bf16.mxu0 %v5889_v4  ;;  %v610_v50 = vadd.f32 %v10346_v8, %v373_v33  ;;  %v10352_v33 = vld [vmem:[#allocation112_spill] sm:$0xff]  ;;  %v969_v24 = vsel %vm955_vm2, %v8356_v2, %v10299_v46  ;;  %v1178_v46 = vsel %vm1164_vm3, %v8388_v41, %v7528_v1 }
 0x2d9   : > { %v617_v51 = vadd.f32 %v10347_v56, %v380_v12  ;;  %v10353_v12 = vld [vmem:[#allocation11_spill] sm:$0xff]  ;;  %v1387_v1 = vsel %vm1373_vm4, %v8420_v28, %v10317_v34 }
 0x2da   : > { %3677 = vmatpush2.bf16.msra.mxu1 %v5894_v59  ;;  %v819_v25 = vadd.f32 %v10348_v48, %v610_v50  ;;  %v367_v30 = vmul.f32 %v10353_v12, %v10344_v14  ;;  %v550_v50 = vsel %vm537_vm0, %v8307_v20, %v8279_v43  ;;  %v10354_v48 = vld [vmem:[#allocation122_spill] sm:$0xff]  ;;  %v374_v27 = vmul.f32 %v10353_v12, %v10345_v60 }
 0x2db   : > { %3626 = vmatpush2.bf16.msra.mxu0 %v5893_v39  ;;  %v10349_v39 = vld [vmem:[#allocation8_spill] sm:$0xff]  ;;  %v826_v8 = vadd.f32 %v10352_v33, %v617_v51  ;;  %v10356_v51 = vld [vmem:[#allocation118_spill] sm:$0xff]  ;;  %v759_v43 = vsel %vm746_vm1, %v8340_v45, %v8324_v57  ;;  %v968_v45 = vsel %vm955_vm2, %v8372_v36, %v8356_v2 }
 0x2dc   : > { %v1346_v61 = vpop.permute.xlu1 %1345  ;;  %v8436_v9 = vpop.permute.xlu0 %1359  ;;  %v368_v26 = vmul.f32 %v10349_v39, %v10344_v14  ;;  %v375_v56 = vmul.f32 %v10349_v39, %v10345_v60  ;;  %v1028_v52 = vadd.f32 %v10354_v48, %v819_v25  ;;  %v766_v39 = vsel %vm746_vm1, %v8326_v17, %v10356_v51  ;;  %v10357_v51 = vld [vmem:[#allocation18_spill] sm:$0xff] }
 0x2dd   : > { %v1035_v33 = vadd.f32 %v10292_v42, %v826_v8  ;;  %v604_v12 = vadd.f32 %v550_v50, %v367_v30  ;;  %v975_v42 = vsel %vm955_vm2, %v8358_v38, %v10302_v7  ;;  %v1184_v7 = vsel %vm1164_vm3, %v8390_v6, %v10309_v21 }
 0x2de   : > { %v605_v14 = vadd.f32 %v551_v44, %v368_v26  ;;  %v612_v19 = vadd.f32 %v557_v11, %v375_v56  ;;  %v1237_v60 = vadd.f32 %v10304_v0, %v1028_v52  ;;  %v556_v44 = vsel %vm537_vm0, %v8309_v5, %v8281_v23 }
 0x2df   : > { %v1244_v52 = vadd.f32 %v10308_v29, %v1035_v33  ;;  %v813_v0 = vadd.f32 %v759_v43, %v604_v12  ;;  %v765_v30 = vsel %vm746_vm1, %v8342_v31, %v8326_v17  ;;  %v1177_v5 = vsel %vm1164_vm3, %v8404_v55, %v8388_v41 }
 0x2e0   : > { %v8441_v37 = vpop.permute.xlu1 %1573  ;;  %v8443_v13 = vpop.permute.xlu0 %1589  ;;  %v814_v26 = vadd.f32 %v760_v58, %v605_v14  ;;  %v821_v57 = vadd.f32 %v766_v39, %v612_v19  ;;  %v611_v36 = vadd.f32 %v556_v44, %v374_v27  ;;  %v1393_v21 = vsel %vm1373_vm4, %v8422_v3, %v10320_v16 }
 0x2e1   : > { %v1022_v11 = vadd.f32 %v968_v45, %v813_v0  ;;  %v974_v17 = vsel %vm955_vm2, %v8374_v63, %v8358_v38  ;;  %v1386_v41 = vsel %vm1373_vm4, %v1346_v61, %v8420_v28  ;;  %v1619_v50 = vsel %vm1603_vm5, %v8441_v37, %v7897_v22 }
 0x2e2   : > { %v1023_v19 = vadd.f32 %v969_v24, %v814_v26  ;;  %v1030_v23 = vadd.f32 %v975_v42, %v821_v57  ;;  %v820_v55 = vadd.f32 %v765_v30, %v611_v36  ;;  %v1626_v34 = vsel %vm1603_vm5, %v8443_v13, %v7899_v40  ;;  %v10359_v42 = vld [vmem:[#allocation37_spill] sm:$0xff] }
 0x2e3   : > { %v1231_v56 = vadd.f32 %v1177_v5, %v1022_v11  ;;  %v1183_v16 = vsel %vm1164_vm3, %v8406_v53, %v8390_v6  ;;  %v1446_v39 = vadd.f32 %v10357_v51, %v1237_v60  ;;  %v10358_v6 = vld [vmem:[#allocation34_spill] sm:$0xff]  ;;  %v1392_v43 = vsel %vm1373_vm4, %v8436_v9, %v8422_v3  ;;  %v5899_v9 = vld [vmem:[%s9780_s5 + $0x120] ss:$12 sps:$4 sm:$0xff]   ;;  %v10361_v5 = vld [vmem:[#allocation43_spill] sm:$0xff] }
 0x2e4   : > { %v1572_v32 = vpop.permute.xlu1 %1571  ;;  %v8445_v35 = vpop.permute.xlu0 %1585  ;;  %v1232_v31 = vadd.f32 %v1178_v46, %v1023_v19  ;;  %v1239_v8 = vadd.f32 %v1184_v7, %v1030_v23  ;;  %v1029_v27 = vadd.f32 %v974_v17, %v820_v55  ;;  %v10360_v19 = vld [vmem:[#allocation42_spill] sm:$0xff]  ;;  %vm4914_vm3 = vcmask 1047552  }
 0x2e5   : > { %v1618_v48 = vsel %vm1603_vm5, %v1572_v32, %v8441_v37  ;;  %v1440_v58 = vadd.f32 %v1386_v41, %v1231_v56  ;;  %v1624_v14 = vsel %vm1603_vm5, %v10358_v6, %v8445_v35  ;;  %v1453_v32 = vadd.f32 %v10316_v15, %v1244_v52  ;;  %v5895_v35 = vld [vmem:[%s9780_s5 + $0x124] ss:$12 sps:$4 sm:$0xff]   ;;  %v5897_v15 = vld [vmem:[%s9780_s5 + $0x2bc] ss:$12 sps:$4 sm:$0xff]   ;;  %v5906_v56 = vld [vmem:[%s9780_s5 + $0x2a0] ss:$12 sps:$4 sm:$0xff]  }
 0x2e6   : > { %v1441_v38 = vadd.f32 %v1387_v1, %v1232_v31  ;;  %v1448_v63 = vadd.f32 %v1393_v21, %v1239_v8  ;;  %v1238_v37 = vadd.f32 %v1183_v16, %v1029_v27  ;;  %v1680_v3 = vadd.f32 %v1624_v14, %v1446_v39  ;;  %v5900_v52 = vld [vmem:[%s9780_s5 + $0x2b8] ss:$12 sps:$4 sm:$0xff]   ;;  %3627 = vmatprep.subr.bf16.mxu0 %v5895_v35  ;;  %v5905_v17 = vld [vmem:[%s9780_s5 + $0x108] ss:$12 sps:$4 sm:$0xff]   ;;  %v5911_v51 = vld [vmem:[%s9780_s5 + $0xf0] ss:$12 sps:$4 sm:$0xff]  }
 0x2e7   : > { %3678 = vmatprep.subr.bf16.mxu1 %v5897_v15  ;;  %3628 = vmatpush2.bf16.msra.mxu0 %v5899_v9  ;;  %v10362_v1 = vld [vmem:[#allocation44_spill] sm:$0xff]  ;;  %v10363_v27 = vld [vmem:[#allocation51_spill] sm:$0xff]  ;;  %v5912_v14 = vld [vmem:[%s9780_s5 + $0x288] ss:$12 sps:$4 sm:$0xff]  }
 0x2e8   : > { %v8453_v4 = vpop.permute.xlu1 %1587  ;;  %v8455_v59 = vpop.permute.xlu0 %1601  ;;  %v1675_v33 = vadd.f32 %v1619_v50, %v1441_v38  ;;  %v1682_v53 = vadd.f32 %v1626_v34, %v1448_v63  ;;  %v1447_v30 = vadd.f32 %v1392_v43, %v1238_v37  ;;  %3679 = vmatpush2.bf16.msra.mxu1 %v5900_v52  ;;  %v5915_v35 = vld [vmem:[%s9780_s5 + $0x274] ss:$12 sps:$4 sm:$0xff]  }
 0x2e9   : > { %v1631_v0 = vsel %vm1603_vm5, %v7864_v62, %v8455_v59 }
 0x2ea   : > { %v1687_v36 = vadd.f32 %v1631_v0, %v1453_v32 }
 0x2ec   : > { %v1803_v25 = vpop.permute.xlu1 %1802  ;;  %v8487_v20 = vpop.permute.xlu0 %1818 }
 0x2ed   : > { %v1848_v22 = vsel %vm1832_vm6, %v1803_v25, %v8090_v54  ;;  %v1855_v40 = vsel %vm1832_vm6, %v8487_v20, %v8092_v49  ;;  %v1674_v54 = vadd.f32 %v1618_v48, %v1440_v58 }
 0x2ee   : > { %v1904_v12 = vadd.f32 %v1848_v22, %v1675_v33  ;;  %v1911_v24 = vadd.f32 %v1855_v40, %v1682_v53  ;;  %v5907_v22 = vld [vmem:[%s9780_s5 + $0xf4] ss:$12 sps:$4 sm:$0xff]   ;;  %v5909_v40 = vld [vmem:[%s9780_s5 + $0x28c] ss:$12 sps:$4 sm:$0xff]  }
 0x2f0   : > { %v1801_v29 = vpop.permute.xlu1 %1800  ;;  %v1815_v2 = vpop.permute.xlu0 %1814 }
 0x2f1   : > { %v1847_v49 = vsel %vm1832_vm6, %v1801_v29, %v1803_v25  ;;  %v1853_v60 = vsel %vm1832_vm6, %v10359_v42, %v1815_v2  ;;  %v1625_v25 = vsel %vm1603_vm5, %v8453_v4, %v8443_v13 }
 0x2f2   : > { %v1903_v13 = vadd.f32 %v1847_v49, %v1674_v54  ;;  %v1909_v4 = vadd.f32 %v1853_v60, %v1680_v3  ;;  %v1681_v2 = vadd.f32 %v1625_v25, %v1447_v30  ;;  %v5917_v3 = vld [vmem:[%s9780_s5 + $0xd8] ss:$12 sps:$4 sm:$0xff]   ;;  %v5918_v25 = vld [vmem:[%s9780_s5 + $0x270] ss:$12 sps:$4 sm:$0xff]  }
 0x2f4   : > { %v1817_v28 = vpop.permute.xlu1 %1816  ;;  %v1831_v61 = vpop.permute.xlu0 %1830 }
 0x2f8   : > { %v2032_v44 = vpop.permute.xlu1 %2031  ;;  %v2048_v26 = vpop.permute.xlu0 %2047 }
 0x2f9   : > { %v2077_v57 = vsel %vm2061_vm7, %v2032_v44, %v8210_v18  ;;  %v2084_v45 = vsel %vm2061_vm7, %v2048_v26, %v8212_v10  ;;  %v1854_v18 = vsel %vm1832_vm6, %v1817_v28, %v8487_v20  ;;  %v1860_v10 = vsel %vm1832_vm6, %v8025_v47, %v1831_v61  ;;  %v5901_v20 = vld [vmem:[%s9780_s5 + $0x10c] ss:$12 sps:$4 sm:$0xff]   ;;  %v5903_v47 = vld [vmem:[%s9780_s5 + $0x2a4] ss:$12 sps:$4 sm:$0xff]  }
 0x2fa   : > { %v2133_v46 = vadd.f32 %v2077_v57, %v1904_v12  ;;  %v2140_v7 = vadd.f32 %v2084_v45, %v1911_v24  ;;  %v1910_v50 = vadd.f32 %v1854_v18, %v1681_v2  ;;  %v1916_v34 = vadd.f32 %v1860_v10, %v1687_v36  ;;  %3629 = vmatprep.subr.bf16.mxu0 %v5901_v20  ;;  %v10364_v45 = vld [vmem:[#allocation29_spill] sm:$0xff]  ;;  %v5919_v2 = vld [vmem:[%s9780_s5 + $0xc4] ss:$12 sps:$4 sm:$0xff]  }
 0x2fb   : > { %3680 = vmatprep.subr.bf16.mxu1 %v5903_v47  ;;  %3630 = vmatpush2.bf16.msra.mxu0 %v5905_v17  ;;  %v10365_v52 = vmax.f32 %v10364_v45, 0.0  ;;  %v5921_v36 = vld [vmem:[%s9780_s5 + $0x25c] ss:$12 sps:$4 sm:$0xff]   ;;  %v5924_v17 = vld [vmem:[%s9780_s5 + $0x258] ss:$12 sps:$4 sm:$0xff]   ;;  %v10378_v45 = vld [vmem:[#allocation38_spill] sm:$0xff] }
 0x2fc   : > { %v8580_v23 = vadd.f32 %v10360_v19, %v2133_v46  ;;  %v8583_v62 = vadd.f32 %v10361_v5, %v2140_v7  ;;  %v2030_v59 = vpop.permute.xlu1 %2029  ;;  %v2044_v29 = vpop.permute.xlu0 %2043  ;;  %3681 = vmatpush2.bf16.msra.mxu1 %v5906_v56  ;;  %3631 = vmatprep.subr.bf16.mxu0 %v5907_v22  ;;  %v10366_v7 = vld [vmem:[#allocation22_spill] sm:$0xff] }
 0x2fd   : > { %v2076_v11 = vsel %vm2061_vm7, %v2030_v59, %v2032_v44  ;;  %v2082_v21 = vsel %vm2061_vm7, %v10362_v1, %v2044_v29  ;;  %3682 = vmatprep.subr.bf16.mxu1 %v5909_v40  ;;  %v10367_v30 = vmax.f32 %v10366_v7, 0.0 }
 0x2fe   : > { %v2213_v31 = vmax.f32 %v8580_v23, 0.0  ;;  %v2220_v8 = vmax.f32 %v8583_v62, 0.0  ;;  %v2132_v41 = vadd.f32 %v2076_v11, %v1903_v13  ;;  %v2138_v55 = vadd.f32 %v2082_v21, %v1909_v4  ;;  %v5923_v11 = vld [vmem:[%s9780_s5 + $0xc0] ss:$12 sps:$4 sm:$0xff]  }
 0x2ff   : > { %3632 = vmatpush2.bf16.msra.mxu0 %v5911_v51 }
 0x300   : > { %v5487_v16 = vpack.i.bf16 %v2220_v8, %v2213_v31  ;;  %v8607_v38 = vadd.f32 %v10360_v19, %v2132_v41  ;;  %v8610_v63 = vadd.f32 %v10360_v19, %v2138_v55  ;;  %v2046_v48 = vpop.permute.xlu1 %2045  ;;  %v2060_v28 = vpop.permute.xlu0 %2059  ;;  %3683 = vmatpush2.bf16.msra.mxu1 %v5912_v14  ;;  %v5925_v41 = vld [vmem:[%s9780_s5 + $0x244] ss:$12 sps:$4 sm:$0xff]  }
 0x301   : > { %v2083_v61 = vsel %vm2061_vm7, %v2046_v48, %v2048_v26  ;;  %v2089_v58 = vsel %vm2061_vm7, %v10363_v27, %v2060_v28  ;;  %v5913_v26 = vld [vmem:[%s9780_s5 + $0xdc] ss:$12 sps:$4 sm:$0xff]   ;;  %3684 = vmatprep.subr.bf16.mxu1 %v5915_v35  ;;  %v10368_v55 = vld [vmem:[#allocation24_spill] sm:$0xff] }
 0x302   : > { %v2212_v39 = vmax.f32 %v8607_v38, 0.0  ;;  %v2218_v33 = vmax.f32 %v8610_v63, 0.0  ;;  %v2139_v53 = vadd.f32 %v2083_v61, %v1910_v50  ;;  %v2145_v6 = vadd.f32 %v2089_v58, %v1916_v34  ;;  %5488 = vrot.lane.b32.xlu0 %v5487_v16, %s6116_s23  ;;  %3633 = vmatprep.subr.bf16.mxu0 %v5913_v26  ;;  %v10370_v34 = vld [vmem:[#allocation25_spill] sm:$0xff]  ;;  %v10374_v58 = vld [vmem:[#allocation31_spill] sm:$0xff]  ;;  %v10404_v38 = vld [vmem:[#allocation54_spill] sm:$0xff] }
 0x303   : > { %3634 = vmatpush2.bf16.msra.mxu0 %v5917_v3  ;;  %v10369_v56 = vmax.f32 %v10368_v55, 0.0  ;;  %v10371_v16 = vmax.f32 %v10370_v34, 0.0  ;;  %v10372_v28 = vld [vmem:[#allocation33_spill] sm:$0xff]  ;;  %v10375_v22 = vmax.f32 %v10374_v58, 0.0  ;;  %v10376_v3 = vld [vmem:[#allocation30_spill] sm:$0xff] }
 0x304   : > { %v5492_v32 = vpack.i.bf16 %v2218_v33, %v2212_v39  ;;  %v8635_v37 = vadd.f32 %v10361_v5, %v2139_v53  ;;  %v8638_v43 = vadd.f32 %v10361_v5, %v2145_v6  ;;  %v5434_v54 = vpop.permute.xlu1 %5433  ;;  %v5439_v12 = vpop.permute.xlu0 %5438  ;;  %3685 = vmatpush2.bf16.msra.mxu1 %v5918_v25  ;;  %v10373_v61 = vmax.f32 %v10372_v28, 0.0  ;;  %3635 = vmatprep.subr.bf16.mxu0 %v5919_v2 }
 0x305   : > { %v5436_v24 = vunpack.i.h.bf16 %v5434_v54  ;;  %v5435_v49 = vunpack.i.l.bf16 %v5434_v54  ;;  %v5440_v42 = vunpack.i.l.bf16 %v5439_v12  ;;  %v5441_v46 = vunpack.i.h.bf16 %v5439_v12  ;;  %3686 = vmatprep.subr.bf16.mxu1 %v5921_v36 }
 0x306   : > { %v2219_v60 = vmax.f32 %v8635_v37, 0.0  ;;  %v2225_v44 = vmax.f32 %v8638_v43, 0.0  ;;  %5493 = vrot.lane.b32.xlu1 %v5492_v32, %s6116_s23  ;;  %v10377_v25 = vmax.f32 %v10376_v3, 0.0 }
 0x307   : > { %v2311_v15 = vsel %vm537_vm0, %v5435_v49, %v5436_v24  ;;  %v2312_v9 = vsel %vm537_vm0, %v5436_v24, %v5440_v42  ;;  %3636 = vmatpush2.bf16.msra.mxu0 %v5923_v11 }
 0x308   : > { %v5497_v57 = vpack.i.bf16 %v2225_v44, %v2219_v60  ;;  %v8663_v0 = vmax.f32 %v10365_v52, %v2311_v15  ;;  %v8667_v13 = vmax.f32 %v10367_v30, %v2312_v9  ;;  %v5444_v4 = vpop.permute.xlu1 %5443  ;;  %v5449_v18 = vpop.permute.xlu0 %5448  ;;  %3687 = vmatpush2.bf16.msra.mxu1 %v5924_v17  ;;  %v10379_v52 = vmax.f32 %v10378_v45, 0.0 }
 0x309   : > { %v5446_v10 = vunpack.i.h.bf16 %v5444_v4  ;;  %v5445_v19 = vunpack.i.l.bf16 %v5444_v4  ;;  %v5451_v5 = vunpack.i.h.bf16 %v5449_v18  ;;  %v5450_v59 = vunpack.i.l.bf16 %v5449_v18  ;;  %3688 = vmatprep.subr.bf16.mxu1 %v5925_v41  ;;  %v10382_v4 = vld [vmem:[#allocation39_spill] sm:$0xff]  ;;  %v10386_v41 = vld [vmem:[#allocation46_spill] sm:$0xff] }
 0x30a   : > { %5498 = vrot.lane.b32.xlu0 %v5497_v57, %s6116_s23  ;;  %v5502_v29 = vpack.i.bf16 %v8667_v13, %v8663_v0  ;;  %v10383_v18 = vmax.f32 %v10382_v4, 0.0  ;;  %v10387_v55 = vmax.f32 %v10386_v41, 0.0  ;;  %v6124_v45 = vmov 65535   ;;  %v5939_v41 = vld [vmem:[%s9780_s5 + $0x3ac] ss:$12 sps:$4 sm:$0xff]  }
 0x30b   : > { %v2317_v1 = vsel %vm537_vm0, %v5441_v46, %v5445_v19  ;;  %v2318_v21 = vsel %vm537_vm0, %v5445_v19, %v5446_v10  ;;  %v2316_v20 = vsel %vm537_vm0, %v5451_v5, %v5441_v46  ;;  %v2310_v47 = vsel %vm537_vm0, %v5450_v59, %v5435_v49  ;;  %v5927_v49 = vld [vmem:[%s9780_s5 + $0x240] ss:$12 sps:$4 sm:$0xff]   ;;  %3711 = vmatprep.subr.bf16.mxu0 %v5939_v41 }
 0x30c   : > { %v8693_v50 = vmax.f32 %v10369_v56, %v2317_v1  ;;  %v8697_v48 = vmax.f32 %v10371_v16, %v2318_v21  ;;  %v8701_v27 = vmax.f32 %v10373_v61, %v2316_v20  ;;  %v8705_v40 = vmax.f32 %v10375_v22, %v2310_v47  ;;  %v8707_v51 = vpop.permute.xlu1 %5453  ;;  %5503 = vrot.lane.b32.xlu1 %v5502_v29, %s6118_s27  ;;  %v8710_v53 = vpop.permute.xlu0 %5458  ;;  %v10384_v20 = vld [vmem:[#allocation45_spill] sm:$0xff] }
 0x30d   : > { %v5456_v6 = vunpack.i.h.bf16 %v8707_v51  ;;  %v5455_v14 = vunpack.i.l.bf16 %v8707_v51  ;;  %v5461_v32 = vunpack.i.h.bf16 %v8710_v53  ;;  %v5460_v54 = vunpack.i.l.bf16 %v8710_v53  ;;  %3689 = vmatpush2.bf16.msra.mxu1 %v5927_v49  ;;  %v10402_v41 = vld [vmem:[#allocation41_spill] sm:$0xff] }
 0x30e   : > { %v5507_v12 = vpack.i.bf16 %v8697_v48, %v8693_v50  ;;  %v5512_v24 = vpack.i.bf16 %v8701_v27, %v8705_v40  ;;  %v10385_v47 = vmax.f32 %v10384_v20, 0.0 }
 0x30f   : > { %v2313_v26 = vsel %vm537_vm0, %v5440_v42, %v5455_v14  ;;  %v2314_v35 = vsel %vm537_vm0, %v5455_v14, %v5456_v6  ;;  %v2319_v15 = vsel %vm537_vm0, %v5446_v10, %v5460_v54  ;;  %v2320_v9 = vsel %vm537_vm0, %v5460_v54, %v5461_v32  ;;  %v10380_v42 = vld [vmem:[#allocation26_spill] sm:$0xff] }
 0x310   : > { %v8733_v57 = vmax.f32 %v10377_v25, %v2313_v26  ;;  %v8737_v46 = vmax.f32 %v10379_v52, %v2314_v35  ;;  %v10381_v7 = vmax.f32 %v10380_v42, 0.0  ;;  %v8745_v10 = vmax.f32 %v10383_v18, %v2320_v9  ;;  %5508 = vrot.lane.b32.xlu0 %v5507_v12, %s6118_s27  ;;  %5513 = vrot.lane.b32.xlu1 %v5512_v24, %s6118_s27  ;;  %v5930_v54 = vld [vmem:[%s9780_s5 + $0x4b4] ss:$12 sps:$4 sm:$0x1f]   ;;  %v10388_v12 = vld [vmem:[#allocation47_spill] sm:$0xff] }
 0x311   : > { %v10389_v24 = vmax.f32 %v10388_v12, 0.0  ;;  %v10390_v26 = vld [vmem:[#allocation52_spill] sm:$0xff]  ;;  %v3594_v52 = vsel %vm3592_vm8, 4294967295, %v6124_v45 }
 0x312   : > { %v8741_v30 = vmax.f32 %v10381_v7, %v2319_v15  ;;  %v5517_v19 = vpack.i.bf16 %v8737_v46, %v8733_v57  ;;  %v10391_v35 = vmax.f32 %v10390_v26, 0.0  ;;  %v8790_v7 = vsel %vm3593_vm9, %v3594_v52, 0 }
 0x314   : > { %v5522_v5 = vpack.i.bf16 %v8745_v10, %v8741_v30  ;;  %5518 = vrot.lane.b32.xlu0 %v5517_v19, %s6118_s27  ;;  %v3600_v19 = vand.u32 %v5930_v54, %v8790_v7 }
 0x316   : > { %5523 = vrot.lane.b32.xlu1 %v5522_v5, %s6118_s27  ;;  %v10392_v5 = vld [vmem:[#allocation49_spill] sm:$0xff]  ;;  %3774 = vmatprep.subr.bf16.mxu1 %v3600_v19 }
 0x318   : > { %v5464_v59 = vpop.permute.xlu1 %5463 }
 0x319   : > { %v5466_v29 = vunpack.i.h.bf16 %v5464_v59  ;;  %v5465_v2 = vunpack.i.l.bf16 %v5464_v59  ;;  %v10393_v59 = vmax.f32 %v10392_v5, 0.0 }
 0x31b   : > { %v2325_v11 = vsel %vm537_vm0, %v5465_v2, %v5466_v29 }
 0x31c   : > { %v8755_v36 = vpop.permute.xlu0 %5468  ;;  %v8764_v17 = vmax.f32 %v10385_v47, %v2325_v11  ;;  %v10394_v11 = vld [vmem:[#allocation53_spill] sm:$0xff] }
 0x31d   : > { %v5470_v1 = vunpack.i.l.bf16 %v8755_v36  ;;  %v5471_v16 = vunpack.i.h.bf16 %v8755_v36 }
 0x31f   : > { %v2326_v21 = vsel %vm537_vm0, %v5466_v29, %v5470_v1 }
 0x320   : > { %v8768_v56 = vmax.f32 %v10387_v55, %v2326_v21  ;;  %v5474_v34 = vpop.permute.xlu1 %5473  ;;  %v10395_v21 = vmax.f32 %v10394_v11, 0.0 }
 0x321   : > { %v5476_v28 = vunpack.i.h.bf16 %v5474_v34  ;;  %v5475_v61 = vunpack.i.l.bf16 %v5474_v34 }
 0x322   : > { %v5527_v58 = vpack.i.bf16 %v8768_v56, %v8764_v17 }
 0x323   : > { %v2331_v22 = vsel %vm537_vm0, %v5471_v16, %v5475_v61  ;;  %v2332_v14 = vsel %vm537_vm0, %v5475_v61, %v5476_v28 }
 0x324   : > { %v8780_v49 = vmax.f32 %v10389_v24, %v2331_v22  ;;  %v8784_v15 = vmax.f32 %v10391_v35, %v2332_v14  ;;  %v5479_v9 = vpop.permute.xlu0 %5478  ;;  %5528 = vrot.lane.b32.xlu0 %v5527_v58, %s6118_s27  ;;  %v10398_v22 = vld [vmem:[#allocation55_spill] sm:$0xff] }
 0x325   : > { %v5481_v3 = vunpack.i.h.bf16 %v5479_v9  ;;  %v5480_v25 = vunpack.i.l.bf16 %v5479_v9  ;;  %v10399_v14 = vmax.f32 %v10398_v22, 0.0 }
 0x326   : > { %v5532_v42 = vpack.i.bf16 %v8784_v15, %v8780_v49 }
 0x327   : > { %v2324_v4 = vsel %vm537_vm0, %v5480_v25, %v5465_v2  ;;  %v2330_v18 = vsel %vm537_vm0, %v5481_v3, %v5471_v16  ;;  %v10396_v16 = vld [vmem:[#allocation56_spill] sm:$0xff] }
 0x328   : > { %v8797_v29 = vmax.f32 %v10393_v59, %v2324_v4  ;;  %v8801_v20 = vmax.f32 %v10395_v21, %v2330_v18  ;;  %5533 = vrot.lane.b32.xlu1 %v5532_v42, %s6118_s27  ;;  %v10397_v61 = vmax.f32 %v10396_v16, 0.0 }
 0x32a   : > { %v5537_v47 = vpack.i.bf16 %v8801_v20, %v8797_v29 }
 0x32c   : > { %5538 = vrot.lane.b32.xlu0 %v5537_v47, %s6118_s27 }
 0x330   : > { %v5484_v2 = vpop.permute.xlu1 %5483 }
 0x331   : > { %v5486_v55 = vunpack.i.h.bf16 %v5484_v2  ;;  %v5485_v34 = vunpack.i.l.bf16 %v5484_v2 }
 0x333   : > { %v8812_v58 = vmax.f32 %v10397_v61, %v5486_v55  ;;  %v8816_v54 = vmax.f32 %v10399_v14, %v5485_v34  ;;  %v2315_v12 = vsel %vm537_vm0, %v5456_v6, %v5485_v34  ;;  %v2321_v24 = vsel %vm537_vm0, %v5461_v32, %v5486_v55 }
 0x334   : > { %v10403_v55 = vmax.f32 %v10402_v41, 0.0 }
 0x335   : > { %v5542_v26 = vpack.i.bf16 %v8812_v58, %v8816_v54 }
 0x336   : > { %v8868_v34 = vmax.f32 %v10403_v55, %v2321_v24 }
 0x337   : > { %5543 = vrot.lane.b32.xlu1 %v5542_v26, %s6118_s27 }
 0x374   : > { %v5489_v35 = vpop.permute.xlu0 %5488 }
 0x375   : > { %v5490_v9 = vunpack.i.l.bf16 %v5489_v35  ;;  %v5491_v52 = vunpack.i.h.bf16 %v5489_v35 }
 0x377   : > { %v2323_v42 = vsel %vm537_vm0, %v5490_v9, %v5480_v25  ;;  %v2329_v51 = vsel %vm537_vm0, %v5491_v52, %v5481_v3 }
 0x378   : > { %v5494_v4 = vpop.permute.xlu1 %5493  ;;  %v8831_v53 = vmax.f32 %v2213_v31, %v2323_v42  ;;  %v8842_v21 = vmax.f32 %v2220_v8, %v2329_v51 }
 0x379   : > { %v5496_v18 = vunpack.i.h.bf16 %v5494_v4  ;;  %v5495_v19 = vunpack.i.l.bf16 %v5494_v4 }
 0x37b   : > { %v8835_v6 = vmax.f32 %v2218_v33, %v5496_v18  ;;  %v2322_v5 = vsel %vm537_vm0, %v5495_v19, %v5490_v9  ;;  %v2327_v62 = vsel %vm537_vm0, %v5470_v1, %v5496_v18 }
 0x37c   : > { %v5499_v32 = vpop.permute.xlu0 %5498  ;;  %v8853_v47 = vmax.f32 %v2212_v39, %v2322_v5  ;;  %v10405_v39 = vmax.f32 %v10404_v38, 0.0 }
 0x37d   : > { %v5547_v59 = vpack.i.bf16 %v8835_v6, %v8831_v53  ;;  %v5501_v25 = vunpack.i.h.bf16 %v5499_v32  ;;  %v5500_v11 = vunpack.i.l.bf16 %v5499_v32 }
 0x37e   : > { %v5504_v3 = vpop.permute.xlu1 %5503 }
 0x37f   : > { %v2333_v23 = vsel %vm537_vm0, %v5476_v28, %v5501_v25  ;;  %v8847_v31 = vmax.f32 %v2225_v44, %v5501_v25  ;;  %v2328_v63 = vsel %vm537_vm0, %v5500_v11, %v5491_v52  ;;  %v5506_v33 = vunpack.i.h.bf16 %v5504_v3  ;;  %5548 = vrot.lane.b32.xlu0 %v5547_v59, %s6118_s27  ;;  %v10400_v44 = vld [vmem:[#allocation40_spill] sm:$0xff] }
 0x380   : > { %v8860_v8 = vmax.f32 %v2219_v60, %v2328_v63  ;;  %v5505_v43 = vunpack.i.l.bf16 %v5504_v3  ;;  %v10401_v28 = vmax.f32 %v10400_v44, 0.0  ;;  %v8872_v16 = vmax.f32 %v10405_v39, %v2333_v23  ;;  %v10406_v60 = vld [vmem:[#allocation48_spill] sm:$0xff] }
 0x381   : > { %v5552_v36 = vpack.i.bf16 %v8847_v31, %v8842_v21  ;;  %v10407_v61 = vmax.f32 %v10406_v60, 0.0 }
 0x382   : > { %v8864_v2 = vmax.f32 %v10401_v28, %v2315_v12  ;;  %v5509_v1 = vpop.permute.xlu0 %5508  ;;  %v5557_v37 = vpack.i.bf16 %v8860_v8, %v8853_v47  ;;  %v5514_v26 = vpop.permute.xlu1 %5513  ;;  %v2475_v24 = vsel %vm955_vm2, %v5505_v43, %v5506_v33  ;;  %v5942_v28 = vld [vmem:[%s9780_s5 + $0x394] ss:$12 sps:$4 sm:$0xff]  }
 0x383   : > { %v8880_v22 = vmax.f32 %v10407_v61, %v2327_v62  ;;  %v5511_v14 = vunpack.i.h.bf16 %v5509_v1  ;;  %v5510_v12 = vunpack.i.l.bf16 %v5509_v1  ;;  %5553 = vrot.lane.b32.xlu1 %v5552_v36, %s6118_s27  ;;  %v5516_v35 = vunpack.i.h.bf16 %v5514_v26  ;;  %v5940_v1 = vld [vmem:[%s9780_s5 + $0x390] ss:$12 sps:$4 sm:$0xff]  }
 0x384   : > { %v5515_v9 = vunpack.i.l.bf16 %v5514_v26  ;;  %5558 = vrot.lane.b32.xlu0 %v5557_v37, %s6118_s27  ;;  %v5562_v52 = vpack.i.bf16 %v8868_v34, %v8864_v2  ;;  %v2527_v32 = vmax.f32 %v8663_v0, %v2475_v24  ;;  %v5946_v26 = vld [vmem:[%s9780_s5 + $0x360] ss:$12 sps:$4 sm:$0xff]  }
 0x385   : > { %v5567_v42 = vpack.i.bf16 %v8872_v16, %v8880_v22  ;;  %v2481_v4 = vsel %vm955_vm2, %v5510_v12, %v5511_v14  ;;  %v2480_v18 = vsel %vm955_vm2, %v5516_v35, %v5510_v12  ;;  %v5936_v12 = vld [vmem:[%s9780_s5 + $0x484] ss:$12 sps:$4 sm:$0xff]   ;;  %v5934_v24 = vld [vmem:[%s9780_s5 + $0x480] ss:$12 sps:$4 sm:$0xff]  }
 0x386   : > { %v2474_v19 = vsel %vm955_vm2, %v5515_v9, %v5505_v43  ;;  %v8892_v51 = vpop.permute.xlu0 %5518  ;;  %v2534_v5 = vmax.f32 %v8693_v50, %v2481_v4  ;;  %v2533_v23 = vmax.f32 %v8701_v27, %v2480_v18  ;;  %v5937_v50 = vld [vmem:[%s9780_s5 + $0x3a8] ss:$12 sps:$4 sm:$0xff]   ;;  %v5951_v35 = vld [vmem:[%s9780_s5 + $0x34c] ss:$12 sps:$4 sm:$0xff]  }
 0x387   : > { %v5521_v59 = vunpack.i.h.bf16 %v8892_v51  ;;  %v5520_v25 = vunpack.i.l.bf16 %v8892_v51  ;;  %5563 = vrot.lane.b32.xlu1 %v5562_v52, %s6118_s27  ;;  %v2526_v3 = vmax.f32 %v8705_v40, %v2474_v19  ;;  %v5928_v40 = vld [vmem:[%s9780_s5 + $0x4b0] ss:$12 sps:$4 sm:$0x1f]   ;;  %v5949_v18 = vld [vmem:[%s9780_s5 + $0x348] ss:$12 sps:$4 sm:$0xff]  }
 0x388   : > { %v8898_v11 = vpop.permute.xlu1 %5523  ;;  %5568 = vrot.lane.b32.xlu0 %v5567_v42, %s6118_s27  ;;  %v8906_v0 = vpack.c.bf16 %v2534_v5, %v2527_v32  ;;  %v3597_v61 = vand.u32 %v5928_v40, %v8790_v7  ;;  %v5961_v52 = vld [vmem:[%s9780_s5 + $0x170] ss:$12 sps:$4 sm:$0xff]   ;;  %v5954_v19 = vld [vmem:[%s9780_s5 + $0x334] ss:$12 sps:$4 sm:$0xff]  }
 0x389   : > { %v5526_v63 = vunpack.i.h.bf16 %v8898_v11  ;;  %v5525_v62 = vunpack.i.l.bf16 %v8898_v11  ;;  %v2476_v43 = vsel %vm955_vm2, %v5506_v33, %v5520_v25  ;;  %v8912_v44 = vpack.c.bf16 %v2533_v23, %v2526_v3  ;;  %v5952_v23 = vld [vmem:[%s9780_s5 + $0x330] ss:$12 sps:$4 sm:$0xff]   ;;  %v6005_v11 = vld [vmem:[%s9780_s5 + $0x2d8] ss:$12 sps:$4 sm:$0xff]  }
 0x38a   : > { %v2477_v27 = vsel %vm955_vm2, %v5520_v25, %v5521_v59  ;;  %3637 = vmatprep.mubr.bf16.mxu0 %v8906_v0  ;;  %v2528_v38 = vmax.f32 %v8667_v13, %v2476_v43  ;;  %v5945_v13 = vld [vmem:[%s9780_s5 + $0x37c] ss:$12 sps:$4 sm:$0xff]  }
 0x38b   : > { %v2482_v41 = vsel %vm955_vm2, %v5511_v14, %v5525_v62  ;;  %v2483_v33 = vsel %vm955_vm2, %v5525_v62, %v5526_v63  ;;  %v2529_v55 = vmax.f32 %v8733_v57, %v2477_v27  ;;  %3638 = vmatmul.mubr.bf16.vlgmr.msra.gmra.mxu0 %v8912_v44  ;;  %v5943_v57 = vld [vmem:[%s9780_s5 + $0x378] ss:$12 sps:$4 sm:$0xff]  }
 0x38c   : > { %v2536_v39 = vmax.f32 %v8741_v30, %v2483_v33  ;;  %v2535_v36 = vmax.f32 %v8697_v48, %v2482_v41  ;;  %3712 = vmatpush1.bf16.msra.mxu0 %v5937_v50  ;;  %v5933_v48 = vld [vmem:[%s9780_s5 + $0x49c] ss:$12 sps:$4 sm:$0xff]   ;;  %v5931_v30 = vld [vmem:[%s9780_s5 + $0x498] ss:$12 sps:$4 sm:$0xff]  }
 0x38d   : > { %3713 = vmatprep.subr.bf16.mxu0 %v5942_v28  ;;  %v5948_v14 = vld [vmem:[%s9780_s5 + $0x364] ss:$12 sps:$4 sm:$0xff]   ;;  %v5957_v50 = vld [vmem:[%s9780_s5 + $0x31c] ss:$12 sps:$4 sm:$0xff]  }
 0x38e   : > { %v8936_v37 = vpack.c.bf16 %v2536_v39, %v2529_v55  ;;  %v8938_v60 = vpack.c.bf16 %v2535_v36, %v2528_v38  ;;  %v5955_v55 = vld [vmem:[%s9780_s5 + $0x318] ss:$12 sps:$4 sm:$0xff]  }
 0x390   : > { %3690 = vmatprep.mubr.bf16.mxu1 %v8936_v37  ;;  %3714 = vmatpush1.bf16.msra.mxu0 %v5940_v1 }
 0x391   : > { %3691 = vmatmul.mubr.bf16.vlgmr.msra.gmra.mxu1 %v8938_v60  ;;  %3715 = vmatprep.subr.bf16.mxu0 %v5945_v13  ;;  %v5965_v13 = vld [vmem:[%s9780_s5 + $0x46c] ss:$12 sps:$4 sm:$0xff]  }
 0x392   : > { %3775 = vmatpush1.bf16.msra.mxu1 %v3597_v61  ;;  %v5958_v61 = vld [vmem:[%s9780_s5 + $0x300] ss:$12 sps:$4 sm:$0xff]  }
 0x393   : > { %3776 = vmatprep.subr.bf16.mxu1 %v5933_v48  ;;  %v10408_v48 = vmov 0  }
 0x394   : > { %3716 = vmatpush1.bf16.msra.mxu0 %v5943_v57  ;;  %v5970_v57 = vld [vmem:[%s9780_s5 + $0x454] ss:$12 sps:$4 sm:$0xff]  }
 0x395   : > { %3717 = vmatprep.subr.bf16.mxu0 %v5948_v14 }
 0x396   : > { %3777 = vmatpush1.bf16.msra.mxu1 %v5931_v30  ;;  %v8970_v9 = vpop.permute.xlu0 %5528 }
 0x397   : > { %3778 = vmatprep.subr.bf16.mxu1 %v5936_v12  ;;  %v5531_v42 = vunpack.i.h.bf16 %v8970_v9  ;;  %v5530_v4 = vunpack.i.l.bf16 %v8970_v9  ;;  %v6008_v9 = vld [vmem:[%s9780_s5 + $0x398] ss:$12 sps:$4 sm:$0xff]  }
 0x398   : > { %3718 = vmatpush1.bf16.msra.mxu0 %v5946_v26 }
 0x399   : > { %3719 = vmatprep.subr.bf16.mxu0 %v5951_v35  ;;  %v2489_v5 = vsel %vm955_vm2, %v5530_v4, %v5531_v42  ;;  %v5962_v35 = vld [vmem:[%s9780_s5 + $0xb0] ss:$12 sps:$4 sm:$0xff]  }
 0x39a   : > { %3779 = vmatpush1.bf16.msra.mxu1 %v5934_v24  ;;  %v8983_v32 = vpop.permute.xlu1 %5533  ;;  %v2543_v27 = vmax.f32 %v8764_v17, %v2489_v5  ;;  %v5968_v24 = vld [vmem:[%s9780_s5 + $0x450] ss:$12 sps:$4 sm:$0xff]   ;;  %v5971_v5 = vld [vmem:[%s9780_s5 + $0x140] ss:$12 sps:$4 sm:$0xff]  }
 0x39b   : > { %5264 = vmatprep.subr.bf16.mxu1 %v5961_v52  ;;  %v5536_v25 = vunpack.i.h.bf16 %v8983_v32  ;;  %v5535_v3 = vunpack.i.l.bf16 %v8983_v32  ;;  %v5975_v52 = vld [vmem:[%s9780_s5 + $0x43c] ss:$12 sps:$4 sm:$0xff]   ;;  %v6011_v32 = vld [vmem:[%s9780_s5 + $0x440] ss:$12 sps:$4 sm:$0xff]  }
 0x39c   : > { %3720 = vmatpush1.bf16.msra.mxu0 %v5949_v18  ;;  %v5967_v18 = vld [vmem:[%s9780_s5 + $0x98] ss:$12 sps:$4 sm:$0xff]  }
 0x39d   : > { %v2495_v62 = vsel %vm955_vm2, %v5535_v3, %v5536_v25  ;;  %3721 = vmatprep.subr.bf16.mxu0 %v5954_v19  ;;  %v5980_v19 = vld [vmem:[%s9780_s5 + $0x424] ss:$12 sps:$4 sm:$0xff]  }
 0x39e   : > { %v8999_v43 = vpop.permute.xlu0 %5538  ;;  %v2550_v40 = vmax.f32 %v8780_v49, %v2495_v62  ;;  %v5960_v49 = vld [vmem:[%s9780_s5 + $0x304] ss:$12 sps:$4 sm:$0xff]   ;;  %v5985_v62 = vld [vmem:[%s9780_s5 + $0x40c] ss:$12 sps:$4 sm:$0xff]  }
 0x39f   : > { %v5541_v28 = vunpack.i.h.bf16 %v8999_v43  ;;  %v5540_v41 = vunpack.i.l.bf16 %v8999_v43 }
 0x3a0   : > { %v9005_v33 = vpack.c.bf16 %v2550_v40, %v2543_v27  ;;  %3722 = vmatpush1.bf16.msra.mxu0 %v5952_v23  ;;  %v5972_v23 = vld [vmem:[%s9780_s5 + $0x80] ss:$12 sps:$4 sm:$0xff]   ;;  %v5983_v27 = vld [vmem:[%s9780_s5 + $0x408] ss:$12 sps:$4 sm:$0xff]  }
 0x3a1   : > { %v2488_v38 = vsel %vm955_vm2, %v5540_v41, %v5530_v4  ;;  %v2494_v17 = vsel %vm955_vm2, %v5541_v28, %v5535_v3  ;;  %3723 = vmatprep.subr.bf16.mxu0 %v5957_v50  ;;  %v5973_v4 = vld [vmem:[%s9780_s5 + $0x438] ss:$12 sps:$4 sm:$0xff]   ;;  %v5978_v3 = vld [vmem:[%s9780_s5 + $0x420] ss:$12 sps:$4 sm:$0xff]   ;;  %v5976_v50 = vld [vmem:[%s9780_s5 + $0x128] ss:$12 sps:$4 sm:$0xff]  }
 0x3a2   : > { %3700 = vmatprep.mubr.bf16.mxu1 %v9005_v33  ;;  %v2542_v39 = vmax.f32 %v8797_v29, %v2488_v38  ;;  %v2549_v36 = vmax.f32 %v8801_v20, %v2494_v17  ;;  %v5963_v29 = vld [vmem:[%s9780_s5 + $0x468] ss:$12 sps:$4 sm:$0xff]   ;;  %v5981_v38 = vld [vmem:[%s9780_s5 + $0x110] ss:$12 sps:$4 sm:$0xff]  }
 0x3a3   : > { %v5977_v40 = vld [vmem:[%s9780_s5 + $0x68] ss:$12 sps:$4 sm:$0xff]   ;;  %v5988_v17 = vld [vmem:[%s9780_s5 + $0x3f0] ss:$12 sps:$4 sm:$0xff]  }
 0x3a4   : > { %v9022_v1 = vpack.c.bf16 %v2549_v36, %v2542_v39  ;;  %3724 = vmatpush1.bf16.msra.mxu0 %v5955_v55  ;;  %v5990_v55 = vld [vmem:[%s9780_s5 + $0x3f4] ss:$12 sps:$4 sm:$0xff]   ;;  %v5995_v39 = vld [vmem:[%s9780_s5 + $0x3dc] ss:$12 sps:$4 sm:$0xff]   ;;  %v5986_v36 = vld [vmem:[%s9780_s5 + $0xf8] ss:$12 sps:$4 sm:$0xff]  }
 0x3a5   : > { %3725 = vmatprep.subr.bf16.mxu0 %v5960_v49  ;;  %v5982_v49 = vld [vmem:[%s9780_s5 + $0x50] ss:$12 sps:$4 sm:$0xff]  }
 0x3a6   : > { %3701 = vmatmul.mubr.bf16.gmra.mxu1 %v9022_v1 }
 0x3a7   : > { %3796 = vmatprep.mubr.bf16.mxu1 %v10408_v48 }
 0x3a8   : > { %3726 = vmatpush1.bf16.msra.mxu0 %v5958_v61  ;;  %v5993_v61 = vld [vmem:[%s9780_s5 + $0x3d8] ss:$12 sps:$4 sm:$0xff]  }
 0x3a9   : > { %v9035_v20 = vpop.permute.xlu1 %5543  ;;  %3727 = vmatprep.subr.bf16.mxu0 %v5965_v13  ;;  %v5987_v13 = vld [vmem:[%s9780_s5 + $0x38] ss:$12 sps:$4 sm:$0xff]  }
 0x3aa   : > { %v5546_v30 = vunpack.i.h.bf16 %v9035_v20  ;;  %v5545_v14 = vunpack.i.l.bf16 %v9035_v20 }
 0x3ac   : > { %v2539_v12 = vmax.f32 %v8812_v58, %v5546_v30  ;;  %v2532_v26 = vmax.f32 %v8816_v54, %v5545_v14  ;;  %3728 = vmatpush2.bf16.msra.mxu0 %v5963_v29  ;;  %v5966_v54 = vld [vmem:[%s9780_s5 + $0x158] ss:$12 sps:$4 sm:$0xff]  }
 0x3ad   : > { %3729 = vmatprep.subr.bf16.mxu0 %v5970_v57  ;;  %v6000_v29 = vld [vmem:[%s9780_s5 + $0x3c4] ss:$12 sps:$4 sm:$0xff]   ;;  %v5991_v57 = vld [vmem:[%s9780_s5 + $0xe0] ss:$12 sps:$4 sm:$0xff]  }
 0x3ae   : > { %v9057_v58 = vpack.c.bf16 %v2539_v12, %v2532_v26  ;;  %v5998_v12 = vld [vmem:[%s9780_s5 + $0x3c0] ss:$12 sps:$4 sm:$0xff]  }
 0x3af   : > { %v5992_v26 = vld [vmem:[%s9780_s5 + $0x20] ss:$12 sps:$4 sm:$0xff]  }
 0x3b0   : > { %5224 = vmatmul.mubr.msk.bf16.vlgmr.msra.gmra.mxu1 %vm3585_vm10, %v9057_v58  ;;  %3730 = vmatpush2.bf16.msra.mxu0 %v5968_v24  ;;  %v6003_v24 = vld [vmem:[%s9780_s5 + $0x470] ss:$12 sps:$4 sm:$0xff]  }
 0x3b1   : > { %5265 = vmatpush3.bf16.msra.mxu1 %v5962_v35  ;;  %3731 = vmatprep.subr.bf16.mxu0 %v5975_v52  ;;  %v5996_v35 = vld [vmem:[%s9780_s5 + $0xc8] ss:$12 sps:$4 sm:$0xff]  }
 0x3b2   : > { %5266 = vmatprep.subr.bf16.mxu1 %v5966_v54  ;;  %3806 = vmatprep.mubr.bf16.mxu1 %v10408_v48  ;;  %v5997_v52 = vld [vmem:[%s9780_s5 + $0x8] ss:$12 sps:$4 sm:$0xff]   ;;  %v6001_v54 = vld [vmem:[%s9780_s5 + $0x2f0] ss:$12 sps:$4 sm:$0xff]  }
 0x3b4   : > { %3732 = vmatpush2.bf16.msra.mxu0 %v5973_v4 }
 0x3b5   : > { %5267 = vmatpush3.bf16.msra.mxu1 %v5967_v18  ;;  %3733 = vmatprep.subr.bf16.mxu0 %v5980_v19 }
 0x3b6   : > { %5268 = vmatprep.subr.bf16.mxu1 %v5971_v5 }
 0x3b8   : > { %3734 = vmatpush2.bf16.msra.mxu0 %v5978_v3 }
 0x3b9   : > { %5269 = vmatpush3.bf16.msra.mxu1 %v5972_v23  ;;  %3735 = vmatprep.subr.bf16.mxu0 %v5985_v62 }
 0x3ba   : > { %5270 = vmatprep.subr.bf16.mxu1 %v5976_v50 }
 0x3bc   : > { %3736 = vmatpush2.bf16.msra.mxu0 %v5983_v27 }
 0x3bd   : > { %5271 = vmatpush3.bf16.msra.mxu1 %v5977_v40  ;;  %3737 = vmatprep.subr.bf16.mxu0 %v5990_v55 }
 0x3be   : > { %5272 = vmatprep.subr.bf16.mxu1 %v5981_v38 }
 0x3c0   : > { %3738 = vmatpush2.bf16.msra.mxu0 %v5988_v17 }
 0x3c1   : > { %5273 = vmatpush3.bf16.msra.mxu1 %v5982_v49  ;;  %3739 = vmatprep.subr.bf16.mxu0 %v5995_v39 }
 0x3c2   : > { %5274 = vmatprep.subr.bf16.mxu1 %v5986_v36 }
 0x3c4   : > { %3740 = vmatpush2.bf16.msra.mxu0 %v5993_v61 }
 0x3c5   : > { %5275 = vmatpush3.bf16.msra.mxu1 %v5987_v13  ;;  %3741 = vmatprep.subr.bf16.mxu0 %v6000_v29 }
 0x3c6   : > { %5276 = vmatprep.subr.bf16.mxu1 %v5991_v57 }
 0x3c8   : > { %3742 = vmatpush2.bf16.msra.mxu0 %v5998_v12 }
 0x3c9   : > { %5277 = vmatpush3.bf16.msra.mxu1 %v5992_v26  ;;  %5320 = vmatprep.subr.bf16.mxu0 %v6003_v24 }
 0x3ca   : > { %5278 = vmatprep.subr.bf16.mxu1 %v5996_v35 }
 0x3cd   : > { %5279 = vmatpush3.bf16.msra.mxu1 %v5997_v52 }
 0x3ce   : > { %5292 = vmatprep.subr.bf16.mxu1 %v6001_v54 }
 0x3f1   : > { %v5549_v4 = vpop.permute.xlu0 %5548 }
 0x3f2   : > { %v5550_v18 = vunpack.i.l.bf16 %v5549_v4  ;;  %v5551_v19 = vunpack.i.h.bf16 %v5549_v4  ;;  %v6009_v4 = vld [vmem:[%s9780_s5 + $0x2c0] ss:$12 sps:$4 sm:$0xff]  }
 0x3f4   : > { %v2487_v3 = vsel %vm955_vm2, %v5550_v18, %v5540_v41  ;;  %v2546_v55 = vmax.f32 %v8835_v6, %v5551_v19 }
 0x3f5   : > { %v5554_v5 = vpop.permute.xlu1 %5553  ;;  %v2541_v41 = vmax.f32 %v8831_v53, %v2487_v3 }
 0x3f6   : > { %v5556_v23 = vunpack.i.h.bf16 %v5554_v5  ;;  %v5555_v62 = vunpack.i.l.bf16 %v5554_v5  ;;  %v5559_v50 = vpop.permute.xlu0 %5558  ;;  %v6012_v5 = vld [vmem:[%s9780_s5 + $0x380] ss:$12 sps:$4 sm:$0xff]  }
 0x3f7   : > { %v5561_v27 = vunpack.i.h.bf16 %v5559_v50  ;;  %v5560_v40 = vunpack.i.l.bf16 %v5559_v50  ;;  %v6019_v50 = vld [vmem:[%s9780_s5 + $0x410] ss:$12 sps:$4 sm:$0xff]  }
 0x3f8   : > { %v2553_v38 = vmax.f32 %v8847_v31, %v5556_v23  ;;  %v2493_v17 = vsel %vm955_vm2, %v5555_v62, %v5541_v28 }
 0x3f9   : > { %v2486_v49 = vsel %vm955_vm2, %v5560_v40, %v5550_v18  ;;  %v2492_v39 = vsel %vm955_vm2, %v5561_v27, %v5555_v62  ;;  %v5564_v36 = vpop.permute.xlu1 %5563  ;;  %v2548_v61 = vmax.f32 %v8842_v21, %v2493_v17  ;;  %v6018_v62 = vld [vmem:[%s9780_s5 + $0x1d0] ss:$12 sps:$4 sm:$0xff]   ;;  %v6021_v27 = vld [vmem:[%s9780_s5 + $0x278] ss:$12 sps:$4 sm:$0xff]   ;;  %v6025_v17 = vld [vmem:[%s9780_s5 + $0x260] ss:$12 sps:$4 sm:$0xff]  }
 0x3fa   : > { %v9155_v13 = vpack.c.bf16 %v2553_v38, %v2546_v55  ;;  %v5566_v29 = vunpack.i.h.bf16 %v5564_v36  ;;  %v5565_v57 = vunpack.i.l.bf16 %v5564_v36  ;;  %v5569_v6 = vpop.permute.xlu0 %5568  ;;  %v2540_v31 = vmax.f32 %v8853_v47, %v2486_v49  ;;  %v6020_v40 = vld [vmem:[%s9780_s5 + $0x350] ss:$12 sps:$4 sm:$0xff]   ;;  %v6022_v55 = vld [vmem:[%s9780_s5 + $0x1b8] ss:$12 sps:$4 sm:$0xff]   ;;  %v6027_v36 = vld [vmem:[%s9780_s5 + $0x3e0] ss:$12 sps:$4 sm:$0xff]  }
 0x3fb   : > { %v2562_v12 = vpack.c.bf16 %v2548_v61, %v2541_v41  ;;  %v2547_v43 = vmax.f32 %v8860_v8, %v2492_v39  ;;  %v5571_v26 = vunpack.i.h.bf16 %v5569_v6  ;;  %v5570_v21 = vunpack.i.l.bf16 %v5569_v6  ;;  %v6023_v38 = vld [vmem:[%s9780_s5 + $0x3f8] ss:$12 sps:$4 sm:$0xff]   ;;  %v6026_v39 = vld [vmem:[%s9780_s5 + $0x1a0] ss:$12 sps:$4 sm:$0xff]   ;;  %v6029_v41 = vld [vmem:[%s9780_s5 + $0x248] ss:$12 sps:$4 sm:$0xff]  }
 0x3fc   : > { %v2479_v28 = vsel %vm955_vm2, %v5565_v57, %v5545_v14  ;;  %v2485_v53 = vsel %vm955_vm2, %v5566_v29, %v5546_v30  ;;  %5225 = vmatmul.mubr.msk.bf16.gmra.mxu1 %vm3585_vm10, %v9155_v13  ;;  %v2478_v8 = vsel %vm955_vm2, %v5521_v59, %v5565_v57  ;;  %v2484_v20 = vsel %vm955_vm2, %v5526_v63, %v5566_v29  ;;  %v6024_v49 = vld [vmem:[%s9780_s5 + $0x338] ss:$12 sps:$4 sm:$0xff]   ;;  %v6028_v29 = vld [vmem:[%s9780_s5 + $0x320] ss:$12 sps:$4 sm:$0xff]   ;;  %v6030_v57 = vld [vmem:[%s9780_s5 + $0x188] ss:$12 sps:$4 sm:$0xff]  }
 0x3fd   : > { %3647 = vmatprep.mubr.bf16.mxu0 %v2562_v12  ;;  %3849 = vmatprep.mubr.bf16.mxu1 %v8906_v0  ;;  %v2561_v47 = vpack.c.bf16 %v2547_v43, %v2540_v31  ;;  %v2531_v24 = vmax.f32 %v8864_v2, %v2479_v28  ;;  %v2538_v30 = vmax.f32 %v8868_v34, %v2485_v53  ;;  %v6002_v2 = vld [vmem:[%s9780_s5 + $0x230] ss:$12 sps:$4 sm:$0xff]   ;;  %v6033_v61 = vld [vmem:[%s9780_s5 + $0x4b8] ss:$12 sps:$4 sm:$0x1f]  }
 0x3fe   : > { %v2491_v14 = vsel %vm955_vm2, %v5570_v21, %v5551_v19  ;;  %v2497_v35 = vsel %vm955_vm2, %v5571_v26, %v5556_v23  ;;  %v2530_v51 = vmax.f32 %v8737_v46, %v2478_v8  ;;  %v2537_v59 = vmax.f32 %v8745_v10, %v2484_v20  ;;  %v6004_v0 = vld [vmem:[%s9780_s5 + $0x3b0] ss:$12 sps:$4 sm:$0xff]   ;;  %v6006_v10 = vld [vmem:[%s9780_s5 + $0x218] ss:$12 sps:$4 sm:$0xff]   ;;  %v6013_v19 = vld [vmem:[%s9780_s5 + $0x2a8] ss:$12 sps:$4 sm:$0xff]  }
 0x3ff   : > { %3648 = vmatmul.mubr.bf16.gmra.mxu0 %v2561_v47  ;;  %v2559_v52 = vpack.c.bf16 %v2538_v30, %v2531_v24  ;;  %v2545_v34 = vmax.f32 %v8880_v22, %v2491_v14  ;;  %v2552_v63 = vmax.f32 %v8872_v16, %v2497_v35  ;;  %v6007_v22 = vld [vmem:[%s9780_s5 + $0x458] ss:$12 sps:$4 sm:$0xff]   ;;  %v2490_v16 = vsel %vm955_vm2, %v5531_v42, %v5570_v21  ;;  %v6010_v42 = vld [vmem:[%s9780_s5 + $0x200] ss:$12 sps:$4 sm:$0xff]   ;;  %v6016_v23 = vld [vmem:[%s9780_s5 + $0x368] ss:$12 sps:$4 sm:$0xff]  }
 0x400   : > { %v9192_v46 = vpack.c.bf16 %v2537_v59, %v2530_v51  ;;  %v6031_v6 = vld [vmem:[%s9780_s5 + $0x3c8] ss:$12 sps:$4 sm:$0xff]   ;;  %v3603_v31 = vand.u32 %v6033_v61, %v8790_v7  ;;  %v6034_v43 = vld [vmem:[%s9780_s5 + $0x4a0] ss:$12 sps:$4 sm:$0xff]  }
 0x401   : > { %3743 = vmatprep.mubr.bf16.mxu0 %v2559_v52  ;;  %v9206_v54 = vpack.c.bf16 %v2552_v63, %v2545_v34  ;;  %v6035_v7 = vld [vmem:[%s9780_s5 + $0x488] ss:$12 sps:$4 sm:$0xff]  }
 0x404   : > { %3850 = vmatmul.mubr.bf16.vlgmr.msra.gmra.mxu1 %v8912_v44  ;;  %v2496_v44 = vsel %vm955_vm2, %v5536_v25, %v5571_v26  ;;  %v2544_v25 = vmax.f32 %v8768_v56, %v2490_v16  ;;  %v6014_v56 = vld [vmem:[%s9780_s5 + $0x1e8] ss:$12 sps:$4 sm:$0xff]   ;;  %vm4913_vm2 = vcmask 1046528  }
 0x405   : > { %5293 = vmatpush3.bf16.msra.mxu1 %v6002_v2  ;;  %3857 = vmatprep.mubr.bf16.mxu1 %v2562_v12  ;;  %v2551_v18 = vmax.f32 %v8784_v15, %v2496_v44  ;;  %v6015_v15 = vld [vmem:[%s9780_s5 + $0x428] ss:$12 sps:$4 sm:$0xff]  }
 0x406   : > { %5294 = vmatprep.subr.bf16.mxu1 %v6005_v11  ;;  %v6032_v12 = vld [vmem:[%s9780_s5 + $0x308] ss:$12 sps:$4 sm:$0xff]  }
 0x407   : > { %3744 = vmatmul.mubr.bf16.vlgmr.msra.gmra.mxu0 %v9192_v46  ;;  %v2565_v3 = vpack.c.bf16 %v2551_v18, %v2544_v25 }
 0x408   : > { %5321 = vmatpush3.bf16.msra.mxu0 %v6004_v0  ;;  %3753 = vmatprep.mubr.bf16.mxu0 %v9206_v54 }
 0x409   : > { %5295 = vmatpush3.bf16.msra.mxu1 %v6006_v10  ;;  %5322 = vmatprep.subr.bf16.mxu0 %v6007_v22 }
 0x40a   : > { %5296 = vmatprep.subr.bf16.mxu1 %v6009_v4 }
 0x40c   : > { %3858 = vmatmul.mubr.bf16.gmra.mxu1 %v2561_v47  ;;  %5323 = vmatpush3.bf16.msra.mxu0 %v6008_v9 }
 0x40d   : > { %3898 = vmatprep.mubr.bf16.mxu1 %v8936_v37  ;;  %5297 = vmatpush3.bf16.msra.mxu1 %v6010_v42  ;;  %v6017_v37 = vld [vmem:[%s9780_s5 + $0x290] ss:$12 sps:$4 sm:$0xff]  }
 0x40e   : > { %5324 = vmatprep.subr.bf16.mxu0 %v6011_v32  ;;  %5298 = vmatprep.subr.bf16.mxu1 %v6013_v19 }
 0x40f   : > { %3754 = vmatmul.mubr.bf16.gmra.mxu0 %v2565_v3 }
 0x410   : > { %5325 = vmatpush3.bf16.msra.mxu0 %v6012_v5  ;;  %3947 = vmatprep.mubr.bf16.mxu0 %v2559_v52 }
 0x411   : > { %5299 = vmatpush3.bf16.msra.mxu1 %v6014_v56  ;;  %5326 = vmatprep.subr.bf16.mxu0 %v6015_v15 }
 0x412   : > { %5300 = vmatprep.subr.bf16.mxu1 %v6017_v37 }
 0x414   : > { %5327 = vmatpush3.bf16.msra.mxu0 %v6016_v23 }
 0x415   : > { %5301 = vmatpush3.bf16.msra.mxu1 %v6018_v62  ;;  %5328 = vmatprep.subr.bf16.mxu0 %v6019_v50 }
 0x416   : > { %5302 = vmatprep.subr.bf16.mxu1 %v6021_v27 }
 0x418   : > { %5329 = vmatpush3.bf16.msra.mxu0 %v6020_v40 }
 0x419   : > { %5303 = vmatpush3.bf16.msra.mxu1 %v6022_v55  ;;  %5330 = vmatprep.subr.bf16.mxu0 %v6023_v38 }
 0x41a   : > { %5304 = vmatprep.subr.bf16.mxu1 %v6025_v17 }
 0x41c   : > { %5331 = vmatpush3.bf16.msra.mxu0 %v6024_v49 }
 0x41d   : > { %5305 = vmatpush3.bf16.msra.mxu1 %v6026_v39  ;;  %5332 = vmatprep.subr.bf16.mxu0 %v6027_v36 }
 0x41e   : > { %5306 = vmatprep.subr.bf16.mxu1 %v6029_v41 }
 0x420   : > { %5333 = vmatpush3.bf16.msra.mxu0 %v6028_v29 }
 0x421   : > { %5307 = vmatpush3.bf16.msra.mxu1 %v6030_v57  ;;  %5334 = vmatprep.subr.bf16.mxu0 %v6031_v6 }
 0x422   : > { %5353 = vmatprep.subr.bf16.mxu1 %v3603_v31 }
 0x424   : > { %5335 = vmatpush3.bf16.msra.mxu0 %v6032_v12  ;;  %3899 = vmatmul.mubr.bf16.vlgmr.msra.gmra.mxu1 %v8938_v60 }
 0x425   : > { %3906 = vmatprep.mubr.bf16.mxu1 %v9005_v33  ;;  %5354 = vmatpush3.bf16.msra.mxu1 %v3603_v31 }
 0x426   : > { %5355 = vmatprep.subr.bf16.mxu1 %v6034_v43 }
 0x427   : > { %3948 = vmatmul.mubr.bf16.vlgmr.msra.gmra.mxu0 %v9192_v46 }
 0x428   : > { %3955 = vmatprep.mubr.bf16.mxu0 %v9206_v54 }
 0x429   : > { %5356 = vmatpush3.bf16.msra.mxu1 %v6034_v43 }
 0x42a   : > { %5357 = vmatprep.subr.bf16.mxu1 %v6035_v7 }
 0x42c   : > { %3907 = vmatmul.mubr.bf16.gmra.mxu1 %v9022_v1 }
 0x42d   : > { %5359 = vmatprep.mubr.msk.bf16.mxu1 %vm3585_vm10, %v9057_v58  ;;  %5358 = vmatpush3.bf16.msra.mxu1 %v6035_v7 }
 0x42f   : > { %3956 = vmatmul.mubr.bf16.gmra.mxu0 %v2565_v3 }
 0x434   : > { %5360 = vmatmul.mubr.msk.bf16.vlgmr.msra.gmra.mxu1 %vm3585_vm10, %v9155_v13 }
 0x435   : > { %4556 = vmatprep.mubr.bf16.mxu1 %v10408_v48 }
 0x44b   : > { %v3639_v1 = vpop.f32.mrf.mxu0 }
 0x44d   : > { %v3641_v30 = vpop.f32.mrf.mxu0 }
 0x44f   : > { %v3643_v14 = vpop.f32.mrf.mxu0 }
 0x451   : > { %v3692_v60 = vpop.f32.mrf.mxu1  ;;  %v3645_v2 = vpop.f32.mrf.mxu0 }
 0x452   : > { %v3693_v46 = vadd.f32 %v3692_v60, %v3639_v1 }
 0x453   : > { %v3694_v33 = vpop.f32.mrf.mxu1 }
 0x454   : > { %v3695_v16 = vadd.f32 %v3694_v33, %v3641_v30 }
 0x455   : > { %v3696_v28 = vpop.f32.mrf.mxu1 }
 0x456   : > { %v3697_v4 = vadd.f32 %v3696_v28, %v3643_v14 }
 0x457   : > { %v3698_v53 = vpop.f32.mrf.mxu1 }
 0x458   : > { %v3699_v25 = vadd.f32 %v3698_v53, %v3645_v2 }
 0x466   : > { %v3702_v26 = vpop.f32.mrf.mxu1 }
 0x468   : > { %v3704_v21 = vpop.f32.mrf.mxu1 }
 0x46a   : > { %v3706_v47 = vpop.f32.mrf.mxu1 }
 0x46c   : > { %v3708_v24 = vpop.f32.mrf.mxu1 }
 0x470   : > { %v3798_v8 = vpop.f32.mrf.mxu1 }
 0x472   : > { %v3800_v20 = vpop.f32.mrf.mxu1 }
 0x474   : > { %v3802_v58 = vpop.f32.mrf.mxu1 }
 0x476   : > { %v3804_v35 = vpop.f32.mrf.mxu1 }
 0x4bc   : > { %v3808_v52 = vpop.f32.mrf.mxu1 }
 0x4be   : > { %v3810_v13 = vpop.f32.mrf.mxu1 }
 0x4bf   : > { %v3649_v51 = vpop.f32.mrf.mxu0 }
 0x4c0   : > { %v3812_v59 = vpop.f32.mrf.mxu1  ;;  %v3703_v56 = vadd.f32 %v3702_v26, %v3649_v51 }
 0x4c1   : > { %v3651_v11 = vpop.f32.mrf.mxu0 }
 0x4c2   : > { %v3814_v34 = vpop.f32.mrf.mxu1  ;;  %v3705_v27 = vadd.f32 %v3704_v21, %v3651_v11 }
 0x4c3   : > { %v3653_v63 = vpop.f32.mrf.mxu0 }
 0x4c4   : > { %v9308_v10 = vpop.f32.mrf.mxu1  ;;  %v3707_v39 = vadd.f32 %v3706_v47, %v3653_v63 }
 0x4c5   : > { %v3655_v0 = vpop.f32.mrf.mxu0 }
 0x4c6   : > { %v9310_v9 = vpop.f32.mrf.mxu1  ;;  %v3709_v29 = vadd.f32 %v3708_v24, %v3655_v0 }
 0x4c7   : > { %v3745_v22 = vpop.f32.mrf.mxu0  ;;  %v5282_v63 = vadd.f32 %v9310_v9, %v9308_v10 }
 0x4c8   : > { %v3746_v44 = vadd.f32 %v3745_v22, %v3693_v46  ;;  %v9316_v15 = vpop.f32.mrf.mxu1 }
 0x4c9   : > { %v3747_v54 = vpop.f32.mrf.mxu0 }
 0x4ca   : > { %v3748_v42 = vadd.f32 %v3747_v54, %v3695_v16  ;;  %v9312_v18 = vadd.f32 %v3798_v8, %v3746_v44  ;;  %v5284_v36 = vpop.f32.mrf.mxu1 }
 0x4cb   : > { %v3749_v32 = vpop.f32.mrf.mxu0 }
 0x4cc   : > { %v9314_v19 = vadd.f32 %v3800_v20, %v3748_v42  ;;  %v3750_v5 = vadd.f32 %v3749_v32, %v3697_v4  ;;  %v5286_v60 = vpop.f32.mrf.mxu1  ;;  %v5285_v32 = vadd.f32 %v5284_v36, %v9316_v15 }
 0x4cd   : > { %v3751_v3 = vpop.f32.mrf.mxu0 }
 0x4ce   : > { %v9318_v37 = vadd.f32 %v3802_v58, %v3750_v5  ;;  %v3752_v23 = vadd.f32 %v3751_v3, %v3699_v25  ;;  %v9322_v62 = vpack.i.bf16 %v9314_v19, %v9312_v18  ;;  %v5287_v24 = vpop.f32.mrf.mxu1 }
 0x4cf   : > { %v3755_v50 = vpop.f32.mrf.mxu0  ;;  %v5288_v5 = vadd.f32 %v5287_v24, %v5286_v60 }
 0x4d0   : > { %v9324_v40 = vadd.f32 %v3804_v35, %v3752_v23  ;;  %v3756_v55 = vadd.f32 %v3755_v50, %v3703_v56  ;;  %5573 = vrot.lane.b32.xlu1 %v9322_v62, %s6125_s10  ;;  %v9330_v17 = vpack.i.bf16 %v9318_v37, %v9312_v18  ;;  %v4278_v49 = vpack.c.bf16 %v9318_v37, %v9312_v18  ;;  %v5289_v20 = vpop.f32.mrf.mxu1 }
 0x4d1   : > { %v3757_v38 = vpop.f32.mrf.mxu0 }
 0x4d2   : > { %v3758_v41 = vadd.f32 %v3757_v38, %v3705_v27  ;;  %v9336_v61 = vpack.i.bf16 %v9324_v40, %v9318_v37  ;;  %v9338_v57 = vadd.f32 %v3808_v52, %v3756_v55  ;;  %v4279_v43 = vpack.c.bf16 %v9324_v40, %v9314_v19  ;;  %v5290_v30 = vpop.f32.mrf.mxu1 }
 0x4d3   : > { %v3759_v6 = vpop.f32.mrf.mxu0  ;;  %v5291_v3 = vadd.f32 %v5290_v30, %v5289_v20 }
 0x4d4   : > { %v9340_v31 = vadd.f32 %v3810_v13, %v3758_v41  ;;  %v3760_v12 = vadd.f32 %v3759_v6, %v3707_v39  ;;  %5578 = vrot.lane.b32.xlu0 %v9336_v61, %s6125_s10 }
 0x4d5   : > { %v3761_v7 = vpop.f32.mrf.mxu0 }
 0x4d6   : > { %v9346_v33 = vadd.f32 %v3812_v59, %v3760_v12  ;;  %v3762_v28 = vadd.f32 %v3761_v7, %v3709_v29  ;;  %v9350_v53 = vpack.i.bf16 %v9340_v31, %v9338_v57 }
 0x4d8   : > { %v9352_v26 = vadd.f32 %v3814_v34, %v3762_v28  ;;  %5583 = vrot.lane.b32.xlu1 %v9350_v53, %s6125_s10  ;;  %v9358_v21 = vpack.i.bf16 %v9346_v33, %v9338_v57  ;;  %v4280_v47 = vpack.c.bf16 %v9346_v33, %v9338_v57 }
 0x4da   : > { %v9364_v8 = vpack.i.bf16 %v9352_v26, %v9346_v33  ;;  %v4281_v1 = vpack.c.bf16 %v9352_v26, %v9340_v31 }
 0x4dc   : > { %5588 = vrot.lane.b32.xlu1 %v9322_v62, %s6117_s26  ;;  %5598 = vrot.lane.b32.xlu0 %v9364_v8, %s6125_s10 }
 0x4e0   : > { %5593 = vrot.lane.b32.xlu1 %v9350_v53, %s6117_s26  ;;  %5603 = vrot.lane.b32.xlu0 %v9336_v61, %s6117_s26 }
 0x4e4   : > { %v5308_v58 = vpop.f32.mrf.mxu1  ;;  %5608 = vrot.lane.b32.xlu1 %v9350_v53, %s6116_s23  ;;  %5618 = vrot.lane.b32.xlu0 %v9364_v8, %s6117_s26  ;;  %s6127_s26 = smov 110  }
 0x4e6   : > { %v5309_v14 = vpop.f32.mrf.mxu1 }
 0x4e7   : > { %v5336_v35 = vpop.f32.mrf.mxu0  ;;  %v5310_v59 = vadd.f32 %v5309_v14, %v5308_v58 }
 0x4e8   : > { %v5311_v52 = vpop.f32.mrf.mxu1  ;;  %5613 = vrot.lane.b32.xlu1 %v9322_v62, %s6116_s23  ;;  %5623 = vrot.lane.b32.xlu0 %v9336_v61, %s6116_s23 }
 0x4e9   : > { %v5337_v2 = vpop.f32.mrf.mxu0  ;;  %v3901_v22 = vadd.f32 %v5310_v59, %v5282_v63 }
 0x4ea   : > { %v5312_v13 = vpop.f32.mrf.mxu1  ;;  %v5338_v16 = vadd.f32 %v5337_v2, %v5336_v35  ;;  %v6038_v2 = vld [vmem:[%s9778_s3 + $0x4] ss:$12 sps:$4 sm:$0xff]  }
 0x4eb   : > { %v5339_v51 = vpop.f32.mrf.mxu0  ;;  %v5313_v44 = vadd.f32 %v5312_v13, %v5311_v52  ;;  %4483 = vmatprep.mubr.bf16.mxu0 %v6038_v2  ;;  %v4337_v13 = vld [vmem:[%s9779_s4 + $0x38] sm:$0xff] }
 0x4ec   : > { %v5314_v11 = vpop.f32.mrf.mxu1  ;;  %5628 = vrot.lane.b32.xlu1 %v9358_v21, %s6126_s11  ;;  %5633 = vrot.lane.b32.xlu0 %v9364_v8, %s6116_s23  ;;  %v3950_v50 = vadd.f32 %v5338_v16, %v3901_v22 }
 0x4ed   : > { %v5340_v34 = vpop.f32.mrf.mxu0  ;;  %v3904_v56 = vadd.f32 %v5313_v44, %v5285_v32 }
 0x4ee   : > { %v5315_v0 = vpop.f32.mrf.mxu1  ;;  %v5341_v27 = vadd.f32 %v5340_v34, %v5339_v51  ;;  %v4336_v51 = vld [vmem:[%s9779_s4 + $0x30] sm:$0xff] }
 0x4ef   : > { %v5342_v46 = vpop.f32.mrf.mxu0  ;;  %v5316_v4 = vadd.f32 %v5315_v0, %v5314_v11 }
 0x4f0   : > { %v5317_v54 = vpop.f32.mrf.mxu1  ;;  %5643 = vrot.lane.b32.xlu1 %v9350_v53, %s6120_s29  ;;  %5638 = vrot.lane.b32.xlu0 %v9330_v17, %s6126_s11  ;;  %v3953_v28 = vadd.f32 %v5341_v27, %v3904_v56 }
 0x4f1   : > { %v5343_v42 = vpop.f32.mrf.mxu0  ;;  %v3909_v55 = vadd.f32 %v5316_v4, %v5288_v5 }
 0x4f2   : > { %v5318_v25 = vpop.f32.mrf.mxu1  ;;  %v5344_v38 = vadd.f32 %v5343_v42, %v5342_v46 }
 0x4f3   : > { %v5319_v10 = vadd.f32 %v5318_v25, %v5317_v54  ;;  %v5345_v9 = vpop.f32.mrf.mxu0 }
 0x4f4   : > { %v5361_v23 = vpop.f32.mrf.mxu1  ;;  %5648 = vrot.lane.b32.xlu0 %v9364_v8, %s6120_s29  ;;  %v3958_v7 = vadd.f32 %v5344_v38, %v3909_v55 }
 0x4f5   : > { %v3912_v39 = vadd.f32 %v5319_v10, %v5291_v3  ;;  %v5346_v41 = vpop.f32.mrf.mxu0 }
 0x4f6   : > { %v5347_v29 = vadd.f32 %v5346_v41, %v5345_v9  ;;  %v3998_v6 = vpop.f32.mrf.mxu1  ;;  %v4007_v58 = vadd.f32 %v5361_v23, %v3958_v7 }
 0x4f7   : > { %v3999_v12 = vadd.f32 %v3998_v6, %v3950_v50 }
 0x4f8   : > { %v3961_v15 = vadd.f32 %v5347_v29, %v3912_v39  ;;  %v5362_v36 = vpop.f32.mrf.mxu1  ;;  %v5662_v52 = vpack.i.bf16 %v4007_v58, %v9340_v31 }
 0x4f9   : > { %v5652_v60 = vpack.i.bf16 %v3999_v12, %v9314_v19 }
 0x4fa   : > { %v4010_v24 = vadd.f32 %v5362_v36, %v3961_v15  ;;  %v4001_v20 = vpop.f32.mrf.mxu1 }
 0x4fb   : > { %v4002_v30 = vadd.f32 %v4001_v20, %v3953_v28  ;;  %5653 = vrot.lane.b32.xlu0 %v5652_v60, %s6126_s11 }
 0x4fc   : > { %v5672_v14 = vpack.i.bf16 %v4010_v24, %v9352_v26 }
 0x4fd   : > { %v5657_v35 = vpack.i.bf16 %v4002_v30, %v9324_v40 }
 0x4ff   : > { %5658 = vrot.lane.b32.xlu1 %v5657_v35, %s6126_s11  ;;  %5673 = vrot.lane.b32.xlu0 %v5672_v14, %s6126_s11 }
 0x503   : > { %5663 = vrot.lane.b32.xlu1 %v5662_v52, %s6126_s11  ;;  %5678 = vrot.lane.b32.xlu0 %v9336_v61, %s6120_s29 }
 0x507   : > { %5668 = vrot.lane.b32.xlu1 %v9322_v62, %s6120_s29  ;;  %5688 = vrot.lane.b32.xlu0 %v9364_v8, %s6127_s26 }
 0x50b   : > { %5683 = vrot.lane.b32.xlu1 %v9350_v53, %s6127_s26  ;;  %5698 = vrot.lane.b32.xlu0 %v9336_v61, %s6127_s26 }
 0x50f   : > { %5693 = vrot.lane.b32.xlu1 %v9322_v62, %s6127_s26  ;;  %5708 = vrot.lane.b32.xlu0 %v9364_v8, %s6128_s12  ;;  %v4334_v8 = vld [vmem:[%s9779_s4 + $0x20] sm:$0xff] }
 0x513   : > { %5703 = vrot.lane.b32.xlu1 %v9350_v53, %s6128_s12  ;;  %5723 = vrot.lane.b32.xlu0 %v9322_v62, %s6128_s12  ;;  %v4331_v53 = vld [vmem:[%s9779_s4 + $0x8] sm:$0xff]  ;;  %v4330_v62 = vld [vmem:[%s9779_s4] sm:$0xff] }
 0x517   : > { %5713 = vrot.lane.b32.xlu1 %v5662_v52, %s6129_s13  ;;  %5733 = vrot.lane.b32.xlu0 %v5672_v14, %s6129_s13 }
 0x51b   : > { %5718 = vrot.lane.b32.xlu1 %v9358_v21, %s6129_s13  ;;  %5738 = vrot.lane.b32.xlu0 %v5652_v60, %s6129_s13  ;;  %v4333_v21 = vld [vmem:[%s9779_s4 + $0x18] sm:$0xff] }
 0x51f   : > { %5728 = vrot.lane.b32.xlu1 %v9336_v61, %s6128_s12  ;;  %5748 = vrot.lane.b32.xlu0 %v9330_v17, %s6129_s13  ;;  %v4332_v17 = vld [vmem:[%s9779_s4 + $0x10] sm:$0xff]  ;;  %v4335_v61 = vld [vmem:[%s9779_s4 + $0x28] sm:$0xff] }
 0x523   : > { %5743 = vrot.lane.b32.xlu1 %v5657_v35, %s6129_s13  ;;  %4345 = vperm.xlu0 %5431, %v4331_v53  }
 0x527   : > { %4340 = vperm.xlu1 %5430, %v4330_v62   ;;  %4355 = vperm.xlu0 %5431, %v4333_v21  }
 0x52b   : > { %4350 = vperm.xlu1 %5430, %v4332_v17   ;;  %4365 = vperm.xlu0 %5431, %v4335_v61  }
 0x52f   : > { %4360 = vperm.xlu1 %5430, %v4334_v8   ;;  %4375 = vperm.xlu0 %5431, %v4337_v13  }
 0x533   : > { %4370 = vperm.xlu1 %5430, %v4336_v51  }
 0x542   : > { %v5574_v59 = vpop.permute.xlu1 %5573 }
 0x543   : > { %v5576_v42 = vunpack.i.h.bf16 %v5574_v59  ;;  %v5575_v32 = vunpack.i.l.bf16 %v5574_v59 }
 0x545   : > { %v4094_v27 = vsel %vm4093_vm11, %v5575_v32, %v5576_v42 }
 0x546   : > { %v5579_v11 = vpop.permute.xlu0 %5578 }
 0x547   : > { %v5581_v16 = vunpack.i.h.bf16 %v5579_v11  ;;  %v5580_v44 = vunpack.i.l.bf16 %v5579_v11 }
 0x549   : > { %v4095_v23 = vsel %vm4093_vm11, %v5580_v44, %v5581_v16  ;;  %v4291_v50 = vpack.c.bf16 %v5581_v16, %v5576_v42 }
 0x54a   : > { %v5584_v34 = vpop.permute.xlu1 %5583  ;;  %v4290_v39 = vpack.c.bf16 %v4095_v23, %v4094_v27 }
 0x54b   : > { %v5586_v63 = vunpack.i.h.bf16 %v5584_v34  ;;  %v5585_v0 = vunpack.i.l.bf16 %v5584_v34 }
 0x54d   : > { %v4096_v25 = vsel %vm4093_vm11, %v5585_v0, %v5586_v63 }
 0x54e   : > { %v5589_v46 = vpop.permute.xlu1 %5588  ;;  %v5599_v22 = vpop.permute.xlu0 %5598 }
 0x54f   : > { %v5601_v54 = vunpack.i.h.bf16 %v5599_v22  ;;  %v5600_v4 = vunpack.i.l.bf16 %v5599_v22  ;;  %v5591_v7 = vunpack.i.h.bf16 %v5589_v46  ;;  %v5590_v60 = vunpack.i.l.bf16 %v5589_v46 }
 0x551   : > { %v4293_v5 = vpack.c.bf16 %v5601_v54, %v5586_v63  ;;  %v4097_v3 = vsel %vm4093_vm11, %v5600_v4, %v5601_v54  ;;  %v4065_v2 = vsel %vm746_vm1, %v5590_v60, %v5591_v7 }
 0x552   : > { %v4292_v10 = vpack.c.bf16 %v4097_v3, %v4096_v25  ;;  %v5594_v9 = vpop.permute.xlu1 %5593  ;;  %v5604_v56 = vpop.permute.xlu0 %5603 }
 0x553   : > { %4451 = vmatprep.subr.bf16.mxu0 %v4293_v5  ;;  %v5596_v55 = vunpack.i.h.bf16 %v5594_v9  ;;  %v5595_v38 = vunpack.i.l.bf16 %v5594_v9  ;;  %v5606_v6 = vunpack.i.h.bf16 %v5604_v56  ;;  %v5605_v12 = vunpack.i.l.bf16 %v5604_v56 }
 0x554   : > { %4452 = vmatpush1.bf16.msra.mxu0 %v4292_v10 }
 0x555   : > { %4453 = vmatprep.subr.bf16.mxu0 %v4291_v50  ;;  %v4067_v28 = vsel %vm746_vm1, %v5595_v38, %v5596_v55  ;;  %v4287_v14 = vpack.c.bf16 %v5606_v6, %v5591_v7  ;;  %v4066_v35 = vsel %vm746_vm1, %v5605_v12, %v5606_v6 }
 0x556   : > { %v5609_v41 = vpop.permute.xlu1 %5608  ;;  %v5619_v29 = vpop.permute.xlu0 %5618  ;;  %v4286_v21 = vpack.c.bf16 %v4066_v35, %v4065_v2 }
 0x557   : > { %v5621_v15 = vunpack.i.h.bf16 %v5619_v29  ;;  %v5620_v36 = vunpack.i.l.bf16 %v5619_v29  ;;  %v5611_v53 = vunpack.i.h.bf16 %v5609_v41  ;;  %v5610_v62 = vunpack.i.l.bf16 %v5609_v41 }
 0x558   : > { %4454 = vmatpush1.bf16.msra.mxu0 %v4290_v39 }
 0x559   : > { %v4289_v24 = vpack.c.bf16 %v5621_v15, %v5596_v55  ;;  %v4068_v20 = vsel %vm746_vm1, %v5620_v36, %v5621_v15  ;;  %v4039_v34 = vsel %vm537_vm0, %v5610_v62, %v5611_v53  ;;  %vm4438_vm1 = vcmask 261120  }
 0x55a   : > { %v4288_v30 = vpack.c.bf16 %v4068_v20, %v4067_v28  ;;  %v5624_v58 = vpop.permute.xlu0 %5623  ;;  %v5614_v52 = vpop.permute.xlu1 %5613 }
 0x55b   : > { %4455 = vmatprep.subr.bf16.mxu0 %v4289_v24  ;;  %v5616_v17 = vunpack.i.h.bf16 %v5614_v52  ;;  %v5615_v61 = vunpack.i.l.bf16 %v5614_v52  ;;  %v5626_v13 = vunpack.i.h.bf16 %v5624_v58  ;;  %v5625_v51 = vunpack.i.l.bf16 %v5624_v58 }
 0x55c   : > { %4456 = vmatpush1.bf16.msra.mxu0 %v4288_v30 }
 0x55d   : > { %4457 = vmatprep.subr.bf16.mxu0 %v4287_v14  ;;  %v4037_v22 = vsel %vm537_vm0, %v5615_v61, %v5616_v17  ;;  %v4283_v16 = vpack.c.bf16 %v5626_v13, %v5616_v17  ;;  %v4038_v44 = vsel %vm537_vm0, %v5625_v51, %v5626_v13 }
 0x55e   : > { %v5634_v8 = vpop.permute.xlu0 %5633  ;;  %v4282_v4 = vpack.c.bf16 %v4038_v44, %v4037_v22  ;;  %v5629_v42 = vpop.permute.xlu1 %5628 }
 0x55f   : > { %v5636_v59 = vunpack.i.h.bf16 %v5634_v8  ;;  %v5635_v11 = vunpack.i.l.bf16 %v5634_v8  ;;  %v5630_v23 = vunpack.i.l.bf16 %v5629_v42 }
 0x560   : > { %4458 = vmatpush1.bf16.msra.mxu0 %v4286_v21 }
 0x561   : > { %v4285_v63 = vpack.c.bf16 %v5636_v59, %v5611_v53  ;;  %v4040_v0 = vsel %vm537_vm0, %v5635_v11, %v5636_v59 }
 0x562   : > { %v4284_v46 = vpack.c.bf16 %v4040_v0, %v4039_v34  ;;  %v5639_v54 = vpop.permute.xlu0 %5638  ;;  %v5644_v25 = vpop.permute.xlu1 %5643 }
 0x563   : > { %4459 = vmatprep.subr.bf16.mxu0 %v4285_v63  ;;  %v5641_v55 = vunpack.i.h.bf16 %v5639_v54  ;;  %v5640_v6 = vunpack.i.l.bf16 %v5639_v54  ;;  %v5646_v28 = vunpack.i.h.bf16 %v5644_v25  ;;  %v5645_v24 = vunpack.i.l.bf16 %v5644_v25 }
 0x564   : > { %4460 = vmatpush1.bf16.msra.mxu0 %v4284_v46 }
 0x565   : > { %4461 = vmatprep.subr.bf16.mxu0 %v4283_v16  ;;  %v4182_v62 = vsel %vm1373_vm4, %v5645_v24, %v5646_v28 }
 0x566   : > { %v5649_v32 = vpop.permute.xlu0 %5648 }
 0x567   : > { %v5651_v15 = vunpack.i.h.bf16 %v5649_v32  ;;  %v5650_v36 = vunpack.i.l.bf16 %v5649_v32 }
 0x568   : > { %4462 = vmatpush1.bf16.msra.mxu0 %v4282_v4 }
 0x569   : > { %4463 = vmatprep.subr.bf16.mxu0 %v4281_v1  ;;  %v5631_v1 = vunpack.i.h.bf16 %v5629_v42  ;;  %v4305_v35 = vpack.c.bf16 %v5651_v15, %v5646_v28  ;;  %v4183_v52 = vsel %vm1373_vm4, %v5650_v36, %v5651_v15 }
 0x56a   : > { %v4304_v13 = vpack.c.bf16 %v4183_v52, %v4182_v62 }
 0x56c   : > { %4464 = vmatpush1.bf16.msra.mxu0 %v4280_v47 }
 0x56d   : > { %v5654_v5 = vpop.permute.xlu0 %5653  ;;  %4465 = vmatprep.subr.bf16.mxu0 %v4279_v43 }
 0x56e   : > { %v5656_v47 = vunpack.i.h.bf16 %v5654_v5  ;;  %v5655_v50 = vunpack.i.l.bf16 %v5654_v5 }
 0x570   : > { %4466 = vmatpush1.bf16.msra.mxu0 %v4278_v49  ;;  %v4222_v12 = vsel %vm4220_vm12, %v5655_v50, %v5656_v47  ;;  %v4221_v20 = vsel %vm4220_vm12, %v5640_v6, %v5655_v50 }
 0x571   : > { %v5659_v3 = vpop.permute.xlu1 %5658  ;;  %v5674_v10 = vpop.permute.xlu0 %5673 }
 0x572   : > { %v5675_v9 = vunpack.i.l.bf16 %v5674_v10  ;;  %v5661_v56 = vunpack.i.h.bf16 %v5659_v3  ;;  %v5660_v31 = vunpack.i.l.bf16 %v5659_v3  ;;  %v5676_v26 = vunpack.i.h.bf16 %v5674_v10 }
 0x574   : > { %v4227_v40 = vsel %vm4220_vm12, %v5631_v1, %v5675_v9  ;;  %v4228_v49 = vsel %vm4220_vm12, %v5675_v9, %v5676_v26  ;;  %v4224_v43 = vsel %vm4220_vm12, %v5660_v31, %v5661_v56  ;;  %v4223_v7 = vsel %vm4220_vm12, %v5641_v55, %v5660_v31 }
 0x575   : > { %v5664_v57 = vpop.permute.xlu1 %5663  ;;  %v5679_v33 = vpop.permute.xlu0 %5678  ;;  %v4307_v60 = vpack.c.bf16 %v4224_v43, %v4222_v12  ;;  %v4306_v14 = vpack.c.bf16 %v4223_v7, %v4221_v20 }
 0x576   : > { %v5666_v27 = vunpack.i.h.bf16 %v5664_v57  ;;  %v5665_v19 = vunpack.i.l.bf16 %v5664_v57  ;;  %v5681_v21 = vunpack.i.h.bf16 %v5679_v33  ;;  %v5680_v17 = vunpack.i.l.bf16 %v5679_v33 }
 0x578   : > { %v4225_v18 = vsel %vm4220_vm12, %v5630_v23, %v5665_v19  ;;  %v4226_v37 = vsel %vm4220_vm12, %v5665_v19, %v5666_v27  ;;  %v4181_v46 = vsel %vm1373_vm4, %v5680_v17, %v5681_v21 }
 0x579   : > { %v4308_v38 = vpack.c.bf16 %v4227_v40, %v4225_v18  ;;  %v5669_v39 = vpop.permute.xlu1 %5668  ;;  %v5689_v41 = vpop.permute.xlu0 %5688  ;;  %v4309_v29 = vpack.c.bf16 %v4228_v49, %v4226_v37 }
 0x57a   : > { %v5671_v2 = vunpack.i.h.bf16 %v5669_v39  ;;  %v5670_v53 = vunpack.i.l.bf16 %v5669_v39  ;;  %v5691_v63 = vunpack.i.h.bf16 %v5689_v41  ;;  %v5690_v0 = vunpack.i.l.bf16 %v5689_v41 }
 0x57b   : > { %4467 = vmatprep.subr.bf16.mxu0 %v4309_v29 }
 0x57c   : > { %4468 = vmatpush2.bf16.msra.mxu0 %v4308_v38  ;;  %v4180_v11 = vsel %vm1373_vm4, %v5670_v53, %v5671_v2  ;;  %v4303_v34 = vpack.c.bf16 %v5681_v21, %v5671_v2  ;;  %v4155_v25 = vsel %vm4151_vm13, %v5690_v0, %v5691_v63  ;;  %vm4985_vm4 = vcmask 400384  }
 0x57d   : > { %v5684_v30 = vpop.permute.xlu1 %5683  ;;  %v5699_v58 = vpop.permute.xlu0 %5698  ;;  %4469 = vmatprep.subr.bf16.mxu0 %v4307_v60  ;;  %v4302_v44 = vpack.c.bf16 %v4181_v46, %v4180_v11  ;;  %v6040_v46 = vld [vmem:[%s9778_s3 + $0x1c] ss:$12 sps:$4 sm:$0xff]  }
 0x57e   : > { %v5686_v51 = vunpack.i.h.bf16 %v5684_v30  ;;  %v5685_v59 = vunpack.i.l.bf16 %v5684_v30  ;;  %v5701_v3 = vunpack.i.h.bf16 %v5699_v58  ;;  %v5700_v10 = vunpack.i.l.bf16 %v5699_v58 }
 0x580   : > { %4470 = vmatpush2.bf16.msra.mxu0 %v4306_v14  ;;  %v4154_v54 = vsel %vm4151_vm13, %v5685_v59, %v5686_v51  ;;  %v4301_v4 = vpack.c.bf16 %v5691_v63, %v5686_v51  ;;  %v4153_v40 = vsel %vm4151_vm13, %v5700_v10, %v5701_v3  ;;  %v6036_v59 = vld [vmem:[%s9778_s3] ss:$12 sps:$4 sm:$0xff]   ;;  %v6051_v10 = vld [vmem:[%s9778_s3 + $0x50] ss:$12 sps:$4 sm:$0xff]  }
 0x581   : > { %v5694_v61 = vpop.permute.xlu1 %5693  ;;  %v5709_v8 = vpop.permute.xlu0 %5708  ;;  %4471 = vmatprep.subr.bf16.mxu0 %v4305_v35  ;;  %v4300_v5 = vpack.c.bf16 %v4155_v25, %v4154_v54  ;;  %v6042_v54 = vld [vmem:[%s9778_s3 + $0x18] ss:$12 sps:$4 sm:$0xff]  }
 0x582   : > { %v5696_v42 = vunpack.i.h.bf16 %v5694_v61  ;;  %v5695_v32 = vunpack.i.l.bf16 %v5694_v61  ;;  %v5711_v18 = vunpack.i.h.bf16 %v5709_v8  ;;  %v5710_v37 = vunpack.i.l.bf16 %v5709_v8  ;;  %v6048_v25 = vld [vmem:[%s9778_s3 + $0x4c] ss:$12 sps:$4 sm:$0xff]  }
 0x584   : > { %4472 = vmatpush2.bf16.msra.mxu0 %v4304_v13  ;;  %v4152_v57 = vsel %vm4151_vm13, %v5695_v32, %v5696_v42  ;;  %v4299_v33 = vpack.c.bf16 %v5701_v3, %v5696_v42  ;;  %v4126_v60 = vsel %vm4122_vm15, %v5710_v37, %v5711_v18  ;;  %v6043_v42 = vld [vmem:[%s9778_s3 + $0x20] ss:$12 sps:$4 sm:$0xff]   ;;  %v6046_v32 = vld [vmem:[%s9778_s3 + $0x30] ss:$12 sps:$4 sm:$0xff]   ;;  %v6050_v3 = vld [vmem:[%s9778_s3 + $0x48] ss:$12 sps:$4 sm:$0xff]  }
 0x585   : > { %v5704_v22 = vpop.permute.xlu1 %5703  ;;  %v5724_v16 = vpop.permute.xlu0 %5723  ;;  %4473 = vmatprep.subr.bf16.mxu0 %v4303_v34  ;;  %v4298_v38 = vpack.c.bf16 %v4153_v40, %v4152_v57 }
 0x586   : > { %v5706_v47 = vunpack.i.h.bf16 %v5704_v22  ;;  %v5705_v50 = vunpack.i.l.bf16 %v5704_v22  ;;  %v5726_v12 = vunpack.i.h.bf16 %v5724_v16  ;;  %v5725_v15 = vunpack.i.l.bf16 %v5724_v16 }
 0x588   : > { %4474 = vmatpush2.bf16.msra.mxu0 %v4302_v44  ;;  %v4125_v29 = vsel %vm4122_vm15, %v5705_v50, %v5706_v47  ;;  %v4297_v6 = vpack.c.bf16 %v5711_v18, %v5706_v47  ;;  %v4123_v35 = vsel %vm4122_vm15, %v5725_v15, %v5726_v12  ;;  %v6039_v44 = vld [vmem:[%s9778_s3 + $0x8] ss:$12 sps:$4 sm:$0xff]  }
 0x589   : > { %v5714_v9 = vpop.permute.xlu1 %5713  ;;  %v5734_v56 = vpop.permute.xlu0 %5733  ;;  %4475 = vmatprep.subr.bf16.mxu0 %v4301_v4  ;;  %v4296_v30 = vpack.c.bf16 %v4126_v60, %v4125_v29  ;;  %v6044_v4 = vld [vmem:[%s9778_s3 + $0x34] ss:$12 sps:$4 sm:$0xff]  }
 0x58a   : > { %v5716_v31 = vunpack.i.h.bf16 %v5714_v9  ;;  %v5715_v26 = vunpack.i.l.bf16 %v5714_v9  ;;  %v5736_v1 = vunpack.i.h.bf16 %v5734_v56  ;;  %v5735_v23 = vunpack.i.l.bf16 %v5734_v56 }
 0x58c   : > { %4476 = vmatpush2.bf16.msra.mxu0 %v4300_v5  ;;  %v4267_v27 = vsel %vm4261_vm14, %v5715_v26, %v5716_v31  ;;  %v4269_v19 = vsel %vm4261_vm14, %v5735_v23, %v5736_v1  ;;  %v6047_v5 = vld [vmem:[%s9778_s3 + $0x38] ss:$12 sps:$4 sm:$0xff]  }
 0x58d   : > { %v5719_v49 = vpop.permute.xlu1 %5718  ;;  %v5739_v43 = vpop.permute.xlu0 %5738  ;;  %4477 = vmatprep.subr.bf16.mxu0 %v4299_v33  ;;  %v4313_v55 = vpack.c.bf16 %v4269_v19, %v4267_v27 }
 0x58e   : > { %v5721_v39 = vunpack.i.h.bf16 %v5719_v49  ;;  %v5720_v41 = vunpack.i.l.bf16 %v5719_v49  ;;  %v5741_v52 = vunpack.i.h.bf16 %v5739_v43  ;;  %v5740_v2 = vunpack.i.l.bf16 %v5739_v43 }
 0x58f   : > { %4536 = vmatprep.subr.bf16.mxu1 %v4313_v55 }
 0x590   : > { %v4266_v36 = vsel %vm4261_vm14, %v5720_v41, %v5715_v26  ;;  %v4268_v7 = vsel %vm4261_vm14, %v5721_v39, %v5735_v23  ;;  %4478 = vmatpush2.bf16.msra.mxu0 %v4298_v38  ;;  %v4263_v63 = vsel %vm4261_vm14, %v5740_v2, %v5741_v52 }
 0x591   : > { %v4312_v28 = vpack.c.bf16 %v4268_v7, %v4266_v36  ;;  %v5729_v24 = vpop.permute.xlu1 %5728  ;;  %v5749_v20 = vpop.permute.xlu0 %5748  ;;  %4479 = vmatprep.subr.bf16.mxu0 %v4297_v6 }
 0x592   : > { %v5731_v58 = vunpack.i.h.bf16 %v5729_v24  ;;  %v5730_v14 = vunpack.i.l.bf16 %v5729_v24  ;;  %v5750_v21 = vunpack.i.l.bf16 %v5749_v20  ;;  %v5751_v8 = vunpack.i.h.bf16 %v5749_v20 }
 0x593   : > { %4537 = vmatpush1.bf16.msra.mxu1 %v4312_v28 }
 0x594   : > { %v4124_v53 = vsel %vm4122_vm15, %v5730_v14, %v5731_v58  ;;  %v4295_v62 = vpack.c.bf16 %v5731_v58, %v5726_v12  ;;  %4480 = vmatpush2.bf16.msra.mxu0 %v4296_v30  ;;  %v4262_v11 = vsel %vm4261_vm14, %v5750_v21, %v5740_v2 }
 0x595   : > { %v4294_v17 = vpack.c.bf16 %v4124_v53, %v4123_v35  ;;  %v5744_v61 = vpop.permute.xlu1 %5743 }
 0x596   : > { %v5746_v13 = vunpack.i.h.bf16 %v5744_v61  ;;  %v5745_v51 = vunpack.i.l.bf16 %v5744_v61  ;;  %4481 = vmatprep.subr.bf16.mxu0 %v4295_v62 }
 0x598   : > { %v4264_v34 = vsel %vm4261_vm14, %v5751_v8, %v5745_v51  ;;  %4482 = vmatpush2.bf16.msra.mxu0 %v4294_v17  ;;  %v4265_v0 = vsel %vm4261_vm14, %v5745_v51, %v5746_v13 }
 0x599   : > { %v4310_v22 = vpack.c.bf16 %v4264_v34, %v4262_v11  ;;  %v4311_v16 = vpack.c.bf16 %v4265_v0, %v4263_v63 }
 0x59b   : > { %4484 = vmatmul.mubr.bf16.vlgmr.msra.gmra.mxu0 %v6036_v59  ;;  %4538 = vmatprep.subr.bf16.mxu1 %v4311_v16 }
 0x59c   : > { %4539 = vmatpush1.bf16.msra.mxu1 %v4310_v22  ;;  %4493 = vmatprep.mubr.bf16.mxu0 %v6040_v46 }
 0x59d   : > { %4920 = vmatprep.subr.bf16.mxu1 %v10408_v48 }
 0x59e   : > { %v4346_v57 = vpop.permute.xlu0 %4345 }
 0x59f   : > { %5240 = vmatmul.mubr.msk.bf16.vlgmr.msra.gmra.mxu1 %vm4438_vm1, %v6039_v44 }
 0x5a0   : > { %4566 = vmatprep.mubr.bf16.mxu1 %v10408_v48 }
 0x5a2   : > { %v4341_v56 = vpop.permute.xlu1 %4340  ;;  %v4356_v60 = vpop.permute.xlu0 %4355 }
 0x5a3   : > { %4494 = vmatmul.mubr.bf16.gmra.mxu0 %v6042_v54 }
 0x5a4   : > { %4503 = vmatprep.mubr.bf16.mxu0 %v6044_v4 }
 0x5a6   : > { %v4351_v49 = vpop.permute.xlu1 %4350  ;;  %v4366_v22 = vpop.permute.xlu0 %4365 }
 0x5a7   : > { %5241 = vmatmul.mubr.msk.bf16.gmra.mxu1 %vm4438_vm1, %v6043_v42 }
 0x5a8   : > { %4576 = vmatprep.mubr.bf16.mxu1 %v10408_v48 }
 0x5aa   : > { %v4361_v21 = vpop.permute.xlu1 %4360 }
 0x5ab   : > { %4504 = vmatmul.mubr.bf16.gmra.mxu0 %v6046_v32 }
 0x5ac   : > { %4513 = vmatprep.mubr.bf16.mxu0 %v6048_v25 }
 0x5af   : > { %5242 = vmatmul.mubr.msk.bf16.gmra.mxu1 %vm4438_vm1, %v6047_v5 }
 0x5b0   : > { %4586 = vmatprep.mubr.bf16.mxu1 %v10408_v48 }
 0x5b3   : > { %4514 = vmatmul.mubr.bf16.gmra.mxu0 %v6050_v3 }
 0x5b7   : > { %5243 = vmatmul.mubr.msk.bf16.gmra.mxu1 %vm4438_vm1, %v6051_v10 }
 0x65b   : > { %v4485_v9 = vpop.f32.mrf.mxu0 }
 0x65c   : > { %v4486_v26 = vadd.f32 %v4485_v9, %v4341_v56 }
 0x65d   : > { %v4487_v31 = vpop.f32.mrf.mxu0 }
 0x65e   : > { %v4488_v33 = vadd.f32 %v4487_v31, %v4341_v56  ;;  %v4371_v56 = vpop.permute.xlu1 %4370 }
 0x65f   : > { %v4489_v1 = vpop.f32.mrf.mxu0  ;;  %v4558_v23 = vpop.f32.mrf.mxu1 }
 0x660   : > { %v9539_v47 = vadd.f32 %v4558_v23, %v4486_v26  ;;  %v4490_v19 = vadd.f32 %v4489_v1, %v4346_v57 }
 0x661   : > { %v4491_v50 = vpop.f32.mrf.mxu0  ;;  %v4560_v27 = vpop.f32.mrf.mxu1 }
 0x662   : > { %v9541_v40 = vadd.f32 %v4560_v27, %v4488_v33  ;;  %v4597_v43 = vmax.f32 %v9539_v47, 0.0  ;;  %v4492_v55 = vadd.f32 %v4491_v50, %v4346_v57 }
 0x663   : > { %v4495_v18 = vpop.f32.mrf.mxu0  ;;  %v4562_v37 = vpop.f32.mrf.mxu1 }
 0x664   : > { %v4598_v38 = vmax.f32 %v9541_v40, 0.0  ;;  %v9545_v39 = vadd.f32 %v4562_v37, %v4490_v19  ;;  %v4496_v12 = vadd.f32 %v4495_v18, %v4351_v49 }
 0x665   : > { %v4497_v41 = vpop.f32.mrf.mxu0  ;;  %v4564_v29 = vpop.f32.mrf.mxu1 }
 0x666   : > { %v5752_v6 = vpack.i.bf16 %v4598_v38, %v4597_v43  ;;  %v9551_v15 = vadd.f32 %v4564_v29, %v4492_v55  ;;  %v4599_v28 = vmax.f32 %v9545_v39, 0.0  ;;  %v4498_v24 = vadd.f32 %v4497_v41, %v4351_v49  ;;  %v4376_v49 = vpop.permute.xlu0 %4375 }
 0x667   : > { %v4499_v36 = vpop.f32.mrf.mxu0  ;;  %v4568_v7 = vpop.f32.mrf.mxu1 }
 0x668   : > { %v4600_v20 = vmax.f32 %v9551_v15, 0.0  ;;  %v9555_v30 = vadd.f32 %v4568_v7, %v4496_v12  ;;  %5753 = vrot.lane.b32.xlu1 %v5752_v6, %s6116_s23  ;;  %v4500_v52 = vadd.f32 %v4499_v36, %v4356_v60 }
 0x669   : > { %v4501_v58 = vpop.f32.mrf.mxu0  ;;  %v4570_v14 = vpop.f32.mrf.mxu1 }
 0x66a   : > { %v5757_v35 = vpack.i.bf16 %v4600_v20, %v4599_v28  ;;  %v9562_v2 = vadd.f32 %v4570_v14, %v4498_v24  ;;  %v4601_v17 = vmax.f32 %v9555_v30, 0.0  ;;  %v4502_v61 = vadd.f32 %v4501_v58, %v4356_v60 }
 0x66b   : > { %v4505_v53 = vpop.f32.mrf.mxu0  ;;  %v4572_v62 = vpop.f32.mrf.mxu1 }
 0x66c   : > { %v4602_v8 = vmax.f32 %v9562_v2, 0.0  ;;  %v9566_v13 = vadd.f32 %v4572_v62, %v4500_v52  ;;  %5758 = vrot.lane.b32.xlu0 %v5757_v35, %s6116_s23  ;;  %v4506_v34 = vadd.f32 %v4505_v53, %v4361_v21 }
 0x66d   : > { %v4507_v51 = vpop.f32.mrf.mxu0  ;;  %v4574_v59 = vpop.f32.mrf.mxu1 }
 0x66e   : > { %v5762_v11 = vpack.i.bf16 %v4602_v8, %v4601_v17  ;;  %v9573_v63 = vadd.f32 %v4574_v59, %v4502_v61  ;;  %v4603_v16 = vmax.f32 %v9566_v13, 0.0  ;;  %v4508_v44 = vadd.f32 %v4507_v51, %v4361_v21  ;;  %v6052_v51 = vld [vmem:[#allocation2 + $0x38] sm:$0xff]  }
 0x66f   : > { %v4509_v0 = vpop.f32.mrf.mxu0  ;;  %v4578_v46 = vpop.f32.mrf.mxu1  ;;  %4921 = vmatpush1.bf16.msra.mxu1 %v6052_v51 }
 0x670   : > { %v4604_v54 = vmax.f32 %v9573_v63, 0.0  ;;  %v9577_v4 = vadd.f32 %v4578_v46, %v4506_v34  ;;  %5763 = vrot.lane.b32.xlu1 %v5762_v11, %s6116_s23  ;;  %v4510_v5 = vadd.f32 %v4509_v0, %v4366_v22  ;;  %v6053_v34 = vld [vmem:[#allocation2 + $0x30] sm:$0xff]   ;;  %4922 = vmatprep.subr.bf16.mxu1 %v10408_v48  ;;  %v6054_v46 = vld [vmem:[#allocation2 + $0x28] sm:$0xff]  }
 0x671   : > { %v4511_v42 = vpop.f32.mrf.mxu0  ;;  %v4580_v32 = vpop.f32.mrf.mxu1 }
 0x672   : > { %v5767_v25 = vpack.i.bf16 %v4604_v54, %v4603_v16  ;;  %v9584_v3 = vadd.f32 %v4580_v32, %v4508_v44  ;;  %v4605_v31 = vmax.f32 %v9577_v4, 0.0  ;;  %v4512_v26 = vadd.f32 %v4511_v42, %v4366_v22  ;;  %v6055_v22 = vld [vmem:[#allocation2 + $0x20] sm:$0xff]   ;;  %v6056_v44 = vld [vmem:[#allocation2 + $0x18] sm:$0xff]   ;;  %v6057_v42 = vld [vmem:[#allocation2 + $0x10] sm:$0xff]  }
 0x673   : > { %v4515_v10 = vpop.f32.mrf.mxu0  ;;  %v4582_v9 = vpop.f32.mrf.mxu1  ;;  %4923 = vmatpush1.bf16.msra.mxu1 %v6053_v34  ;;  %v6058_v32 = vld [vmem:[#allocation2 + $0x8] sm:$0xff]  }
 0x674   : > { %v4606_v1 = vmax.f32 %v9584_v3, 0.0  ;;  %v9588_v23 = vadd.f32 %v4582_v9, %v4510_v5  ;;  %5768 = vrot.lane.b32.xlu0 %v5767_v25, %s6116_s23  ;;  %v4516_v27 = vadd.f32 %v4515_v10, %v4371_v56  ;;  %4924 = vmatprep.subr.bf16.mxu1 %v10408_v48  ;;  %v4915_v25 = vsel %vm4913_vm2, 4294967295, %v6124_v45  ;;  %v6059_v5 = vld [vmem:[#allocation2] sm:$0xff]  }
 0x675   : > { %v4517_v57 = vpop.f32.mrf.mxu0  ;;  %v4584_v33 = vpop.f32.mrf.mxu1  ;;  %v6060_v10 = vld [vmem:[#allocation2 + $0x60] sm:$0xff]   ;;  %v4916_v9 = vsel %vm4914_vm3, %v4915_v25, 0 }
 0x676   : > { %v5772_v50 = vpack.i.bf16 %v4606_v1, %v4605_v31  ;;  %v9595_v19 = vadd.f32 %v4584_v33, %v4512_v26  ;;  %v4607_v55 = vmax.f32 %v9588_v23, 0.0  ;;  %v4518_v41 = vadd.f32 %v4517_v57, %v4371_v56  ;;  %v6061_v26 = vld [vmem:[#allocation2 + $0x58] sm:$0xff]   ;;  %v6062_v57 = vld [vmem:[#allocation2 + $0x50] sm:$0xff]   ;;  %v6063_v33 = vld [vmem:[#allocation2 + $0x48] sm:$0xff]  }
 0x677   : > { %v4519_v18 = vpop.f32.mrf.mxu0  ;;  %v4588_v37 = vpop.f32.mrf.mxu1  ;;  %4925 = vmatpush1.bf16.msra.mxu1 %v6054_v46  ;;  %v4918_v56 = vand.u32 %v6060_v10, %v4916_v9 }
 0x678   : > { %v4608_v29 = vmax.f32 %v9595_v19, 0.0  ;;  %v9599_v6 = vadd.f32 %v4588_v37, %v4516_v27  ;;  %5773 = vrot.lane.b32.xlu1 %v5772_v50, %s6116_s23  ;;  %v4520_v60 = vadd.f32 %v4519_v18, %v4376_v49  ;;  %4926 = vmatprep.subr.bf16.mxu1 %v10408_v48 }
 0x679   : > { %v4521_v12 = vpop.f32.mrf.mxu0  ;;  %v4590_v36 = vpop.f32.mrf.mxu1 }
 0x67a   : > { %v5777_v7 = vpack.i.bf16 %v4608_v29, %v4607_v55  ;;  %v9606_v24 = vadd.f32 %v4590_v36, %v4518_v41  ;;  %v4609_v14 = vmax.f32 %v9599_v6, 0.0  ;;  %v4522_v35 = vadd.f32 %v4521_v12, %v4376_v49  ;;  %v6064_v12 = vld [vmem:[#allocation2 + $0x40] sm:$0xff]  }
 0x67b   : > { %v4592_v58 = vpop.f32.mrf.mxu1  ;;  %4927 = vmatpush1.bf16.msra.mxu1 %v6055_v22 }
 0x67c   : > { %v4610_v52 = vmax.f32 %v9606_v24, 0.0  ;;  %v9610_v53 = vadd.f32 %v4592_v58, %v4520_v60  ;;  %5778 = vrot.lane.b32.xlu0 %v5777_v7, %s6116_s23  ;;  %4928 = vmatprep.subr.bf16.mxu1 %v10408_v48 }
 0x67d   : > { %v4594_v62 = vpop.f32.mrf.mxu1 }
 0x67e   : > { %v5782_v21 = vpack.i.bf16 %v4610_v52, %v4609_v14  ;;  %v9617_v61 = vadd.f32 %v4594_v62, %v4522_v35  ;;  %v4611_v59 = vmax.f32 %v9610_v53, 0.0 }
 0x67f   : > { %4929 = vmatpush1.bf16.msra.mxu1 %v6056_v44 }
 0x680   : > { %v4612_v11 = vmax.f32 %v9617_v61, 0.0  ;;  %5783 = vrot.lane.b32.xlu1 %v5782_v21, %s6116_s23  ;;  %4930 = vmatprep.subr.bf16.mxu1 %v10408_v48 }
 0x682   : > { %v5787_v0 = vpack.i.bf16 %v4612_v11, %v4611_v59 }
 0x683   : > { %4931 = vmatpush1.bf16.msra.mxu1 %v6057_v42 }
 0x684   : > { %5788 = vrot.lane.b32.xlu0 %v5787_v0, %s6116_s23  ;;  %4932 = vmatprep.subr.bf16.mxu1 %v10408_v48  ;;  %s5263_s23 = sshll.u32 %s10410_s25, 6 }
 0x685   : > { %s290_s16 = scalar_lea.vmem %s9782_s7, %s5263_s23 }
 0x687   : > { %4933 = vmatpush1.bf16.msra.mxu1 %v6058_v32 }
 0x688   : > { %4934 = vmatprep.subr.bf16.mxu1 %v10408_v48 }
 0x68b   : > { %4935 = vmatpush1.bf16.msra.mxu1 %v6059_v5 }
 0x68c   : > { %4942 = vmatprep.subr.bf16.mxu1 %v10408_v48 }
 0x68f   : > { %4943 = vmatpush2.bf16.msra.mxu1 %v4918_v56 }
 0x690   : > { %4944 = vmatprep.subr.bf16.mxu1 %v10408_v48 }
 0x693   : > { %4945 = vmatpush2.bf16.msra.mxu1 %v6061_v26 }
 0x694   : > { %4946 = vmatprep.subr.bf16.mxu1 %v10408_v48 }
 0x697   : > { %4947 = vmatpush2.bf16.msra.mxu1 %v6062_v57 }
 0x698   : > { %4948 = vmatprep.subr.bf16.mxu1 %v10408_v48 }
 0x69b   : > { %4949 = vmatpush2.bf16.msra.mxu1 %v6063_v33 }
 0x69c   : > { %4950 = vmatprep.subr.bf16.mxu1 %v10408_v48 }
 0x69f   : > { %4951 = vmatpush2.bf16.msra.mxu1 %v6064_v12 }
 0x6da   : > { %v5754_v45 = vpop.permute.xlu1 %5753 }
 0x6db   : > { %v5756_v50 = vunpack.i.h.bf16 %v5754_v45  ;;  %v5755_v27 = vunpack.i.l.bf16 %v5754_v45 }
 0x6dd   : > { %v9641_v18 = vmax.f32 %v4598_v38, %v5756_v50  ;;  %v4661_v37 = vsel %vm537_vm0, %v5755_v27, %v5756_v50 }
 0x6de   : > { %v9647_v49 = vmax.f32 %v4597_v43, %v4661_v37  ;;  %v5759_v41 = vpop.permute.xlu0 %5758 }
 0x6df   : > { %v5761_v36 = vunpack.i.h.bf16 %v5759_v41  ;;  %v5760_v7 = vunpack.i.l.bf16 %v5759_v41 }
 0x6e0   : > { %v5792_v60 = vpack.i.bf16 %v9641_v18, %v9647_v49 }
 0x6e1   : > { %v4688_v40 = vmax.f32 %v4600_v20, %v5761_v36  ;;  %v4662_v38 = vsel %vm537_vm0, %v5760_v7, %v5761_v36 }
 0x6e2   : > { %v9656_v48 = vmax.f32 %v4599_v28, %v4662_v38  ;;  %v5764_v47 = vpop.permute.xlu1 %5763  ;;  %5793 = vrot.lane.b32.xlu1 %v5792_v60, %s6125_s10 }
 0x6e3   : > { %v5766_v43 = vunpack.i.h.bf16 %v5764_v47  ;;  %v5765_v58 = vunpack.i.l.bf16 %v5764_v47 }
 0x6e4   : > { %v5797_v35 = vpack.i.bf16 %v4688_v40, %v9656_v48 }
 0x6e5   : > { %v9662_v62 = vmax.f32 %v4602_v8, %v5766_v43  ;;  %v4663_v15 = vsel %vm537_vm0, %v5765_v58, %v5766_v43 }
 0x6e6   : > { %v9667_v20 = vmax.f32 %v4601_v17, %v4663_v15  ;;  %v5769_v39 = vpop.permute.xlu0 %5768  ;;  %5798 = vrot.lane.b32.xlu0 %v5797_v35, %s6125_s10 }
 0x6e7   : > { %v5771_v28 = vunpack.i.h.bf16 %v5769_v39  ;;  %v5770_v21 = vunpack.i.l.bf16 %v5769_v39 }
 0x6e8   : > { %v5802_v51 = vpack.i.bf16 %v9662_v62, %v9667_v20 }
 0x6e9   : > { %v9674_v34 = vmax.f32 %v4604_v54, %v5771_v28  ;;  %v4664_v2 = vsel %vm537_vm0, %v5770_v21, %v5771_v28 }
 0x6ea   : > { %v9679_v8 = vmax.f32 %v4603_v16, %v4664_v2  ;;  %v5774_v30 = vpop.permute.xlu1 %5773  ;;  %5803 = vrot.lane.b32.xlu1 %v5802_v51, %s6125_s10 }
 0x6eb   : > { %v5776_v17 = vunpack.i.h.bf16 %v5774_v30  ;;  %v5775_v0 = vunpack.i.l.bf16 %v5774_v30 }
 0x6ec   : > { %v5807_v46 = vpack.i.bf16 %v9674_v34, %v9679_v8 }
 0x6ed   : > { %v9686_v22 = vmax.f32 %v4606_v1, %v5776_v17  ;;  %v4665_v63 = vsel %vm537_vm0, %v5775_v0, %v5776_v17 }
 0x6ee   : > { %v9691_v54 = vmax.f32 %v4605_v31, %v4665_v63  ;;  %v5779_v13 = vpop.permute.xlu0 %5778  ;;  %5808 = vrot.lane.b32.xlu0 %v5807_v46, %s6125_s10 }
 0x6ef   : > { %v5781_v16 = vunpack.i.h.bf16 %v5779_v13  ;;  %v5780_v44 = vunpack.i.l.bf16 %v5779_v13 }
 0x6f0   : > { %v5812_v42 = vpack.i.bf16 %v9686_v22, %v9691_v54 }
 0x6f1   : > { %v9698_v32 = vmax.f32 %v4608_v29, %v5781_v16  ;;  %v4666_v3 = vsel %vm537_vm0, %v5780_v44, %v5781_v16 }
 0x6f2   : > { %v9703_v1 = vmax.f32 %v4607_v55, %v4666_v3  ;;  %v5784_v4 = vpop.permute.xlu1 %5783  ;;  %5813 = vrot.lane.b32.xlu1 %v5812_v42, %s6125_s10 }
 0x6f3   : > { %v5786_v31 = vunpack.i.h.bf16 %v5784_v4  ;;  %v5785_v25 = vunpack.i.l.bf16 %v5784_v4 }
 0x6f4   : > { %v5817_v5 = vpack.i.bf16 %v9698_v32, %v9703_v1 }
 0x6f5   : > { %v9710_v10 = vmax.f32 %v4610_v52, %v5786_v31  ;;  %v4667_v19 = vsel %vm537_vm0, %v5785_v25, %v5786_v31 }
 0x6f6   : > { %v9715_v29 = vmax.f32 %v4609_v14, %v4667_v19  ;;  %v5789_v23 = vpop.permute.xlu0 %5788  ;;  %5818 = vrot.lane.b32.xlu0 %v5817_v5, %s6125_s10 }
 0x6f7   : > { %v5791_v55 = vunpack.i.h.bf16 %v5789_v23  ;;  %v5790_v9 = vunpack.i.l.bf16 %v5789_v23 }
 0x6f8   : > { %v5822_v56 = vpack.i.bf16 %v9710_v10, %v9715_v29 }
 0x6f9   : > { %v9722_v26 = vmax.f32 %v4612_v11, %v5791_v55  ;;  %v4668_v24 = vsel %vm537_vm0, %v5790_v9, %v5791_v55  ;;  %vm4900_vm0 = vcmask 646144  }
 0x6fa   : > { %v9727_v52 = vmax.f32 %v4611_v59, %v4668_v24  ;;  %5823 = vrot.lane.b32.xlu1 %v5822_v56, %s6125_s10 }
 0x6fc   : > { %v5827_v6 = vpack.i.bf16 %v9722_v26, %v9727_v52 }
 0x6fe   : > { %5828 = vrot.lane.b32.xlu0 %v5827_v6, %s6125_s10 }
 0x754   : > { %v5794_v14 = vpop.permute.xlu1 %5793 }
 0x755   : > { %v5796_v57 = vunpack.i.h.bf16 %v5794_v14  ;;  %v5795_v45 = vunpack.i.l.bf16 %v5794_v14 }
 0x757   : > { %v4749_v61 = vsel %vm4093_vm11, %v5795_v45, %v5796_v57  ;;  %v4774_v27 = vmax.f32 %v9641_v18, %v5796_v57 }
 0x758   : > { %v5799_v33 = vpop.permute.xlu0 %5798  ;;  %v4773_v37 = vmax.f32 %v9647_v49, %v4749_v61 }
 0x759   : > { %v5801_v11 = vunpack.i.h.bf16 %v5799_v33  ;;  %v5800_v50 = vunpack.i.l.bf16 %v5799_v33 }
 0x75b   : > { %v4776_v53 = vmax.f32 %v4688_v40, %v5801_v11  ;;  %v4750_v59 = vsel %vm4093_vm11, %v5800_v50, %v5801_v11 }
 0x75c   : > { %v4775_v41 = vmax.f32 %v9656_v48, %v4750_v59  ;;  %v5804_v12 = vpop.permute.xlu1 %5803 }
 0x75d   : > { %v4790_v36 = vpack.c.bf16 %v4776_v53, %v4774_v27  ;;  %v5806_v7 = vunpack.i.h.bf16 %v5804_v12  ;;  %v5805_v60 = vunpack.i.l.bf16 %v5804_v12 }
 0x75e   : > { %v4789_v38 = vpack.c.bf16 %v4775_v41, %v4773_v37 }
 0x75f   : > { %5257 = vmatprep.mubr.msk.bf16.mxu1 %vm4900_vm0, %v4790_v36  ;;  %v4751_v43 = vsel %vm4093_vm11, %v5805_v60, %v5806_v7  ;;  %v4778_v58 = vmax.f32 %v9662_v62, %v5806_v7 }
 0x760   : > { %v5809_v47 = vpop.permute.xlu0 %5808  ;;  %4953 = vmatmul.mubr.bf16.vlgmr.msra.gmra.mxu1 %v4789_v38  ;;  %v4777_v15 = vmax.f32 %v9667_v20, %v4751_v43 }
 0x761   : > { %v5811_v18 = vunpack.i.h.bf16 %v5809_v47  ;;  %v5810_v40 = vunpack.i.l.bf16 %v5809_v47 }
 0x763   : > { %v4780_v49 = vmax.f32 %v9674_v34, %v5811_v18  ;;  %v4752_v48 = vsel %vm4093_vm11, %v5810_v40, %v5811_v18 }
 0x764   : > { %v5814_v35 = vpop.permute.xlu1 %5813  ;;  %v4779_v39 = vmax.f32 %v9679_v8, %v4752_v48 }
 0x765   : > { %v4792_v28 = vpack.c.bf16 %v4780_v49, %v4778_v58  ;;  %v5816_v21 = vunpack.i.h.bf16 %v5814_v35  ;;  %v5815_v51 = vunpack.i.l.bf16 %v5814_v35 }
 0x766   : > { %v4791_v2 = vpack.c.bf16 %v4779_v39, %v4777_v15 }
 0x767   : > { %5258 = vmatprep.mubr.msk.bf16.mxu1 %vm4900_vm0, %v4792_v28  ;;  %v4753_v17 = vsel %vm4093_vm11, %v5815_v51, %v5816_v21  ;;  %v4782_v34 = vmax.f32 %v9686_v22, %v5816_v21 }
 0x768   : > { %v5819_v30 = vpop.permute.xlu0 %5818  ;;  %4961 = vmatmul.mubr.bf16.gmra.mxu1 %v4791_v2  ;;  %v4781_v8 = vmax.f32 %v9691_v54, %v4753_v17 }
 0x769   : > { %v5821_v62 = vunpack.i.h.bf16 %v5819_v30  ;;  %v5820_v0 = vunpack.i.l.bf16 %v5819_v30 }
 0x76b   : > { %v4784_v46 = vmax.f32 %v9698_v32, %v5821_v62  ;;  %v4754_v20 = vsel %vm4093_vm11, %v5820_v0, %v5821_v62 }
 0x76c   : > { %v5824_v63 = vpop.permute.xlu1 %5823  ;;  %v4783_v13 = vmax.f32 %v9703_v1, %v4754_v20 }
 0x76d   : > { %v4794_v16 = vpack.c.bf16 %v4784_v46, %v4782_v34  ;;  %v5826_v44 = vunpack.i.h.bf16 %v5824_v63  ;;  %v5825_v42 = vunpack.i.l.bf16 %v5824_v63 }
 0x76e   : > { %v4793_v3 = vpack.c.bf16 %v4783_v13, %v4781_v8 }
 0x76f   : > { %5259 = vmatprep.mubr.msk.bf16.mxu1 %vm4900_vm0, %v4794_v16  ;;  %v4755_v22 = vsel %vm4093_vm11, %v5825_v42, %v5826_v44  ;;  %v4786_v25 = vmax.f32 %v9710_v10, %v5826_v44 }
 0x770   : > { %v5829_v4 = vpop.permute.xlu0 %5828  ;;  %4969 = vmatmul.mubr.bf16.gmra.mxu1 %v4793_v3  ;;  %v4785_v1 = vmax.f32 %v9715_v29, %v4755_v22 }
 0x771   : > { %v5831_v31 = vunpack.i.h.bf16 %v5829_v4  ;;  %v5830_v32 = vunpack.i.l.bf16 %v5829_v4 }
 0x773   : > { %v4788_v5 = vmax.f32 %v9722_v26, %v5831_v31  ;;  %v4756_v54 = vsel %vm4093_vm11, %v5830_v32, %v5831_v31 }
 0x774   : > { %v4787_v19 = vmax.f32 %v9727_v52, %v4756_v54 }
 0x775   : > { %v4796_v23 = vpack.c.bf16 %v4788_v5, %v4786_v25 }
 0x776   : > { %v4795_v55 = vpack.c.bf16 %v4787_v19, %v4785_v1 }
 0x777   : > { %5260 = vmatprep.mubr.msk.bf16.mxu1 %vm4900_vm0, %v4796_v23 }
 0x778   : > { %4977 = vmatmul.mubr.bf16.gmra.mxu1 %v4795_v55 }
 0x820   : > { %v4954_v10 = vpop.f32.mrf.mxu1 }
 0x821   : > { %4986 = vst.msk [vmem:[%s290_s16] sm:$0xff] %vm4985_vm4, %v4954_v10 }
 0x822   : > { %v4956_v9 = vpop.f32.mrf.mxu1 }
 0x824   : > { %v4957_v56 = vpop.f32.mrf.mxu1 }
 0x825   : > { %4987 = vst.msk [vmem:[%s290_s16 + $0x8] sm:$0xff] %vm4985_vm4, %v4957_v56 }
 0x826   : > { %v4959_v29 = vpop.f32.mrf.mxu1 }
 0x828   : > { %v4962_v26 = vpop.f32.mrf.mxu1 }
 0x829   : > { %4988 = vst.msk [vmem:[%s290_s16 + $0x10] sm:$0xff] %vm4985_vm4, %v4962_v26 }
 0x82a   : > { %v4964_v24 = vpop.f32.mrf.mxu1 }
 0x82c   : > { %v4965_v52 = vpop.f32.mrf.mxu1 }
 0x82d   : > { %4989 = vst.msk [vmem:[%s290_s16 + $0x18] sm:$0xff] %vm4985_vm4, %v4965_v52 }
 0x82e   : > { %v4967_v6 = vpop.f32.mrf.mxu1 }
 0x830   : > { %v4970_v14 = vpop.f32.mrf.mxu1 }
 0x831   : > { %4990 = vst.msk [vmem:[%s290_s16 + $0x20] sm:$0xff] %vm4985_vm4, %v4970_v14 }
 0x832   : > { %v4972_v57 = vpop.f32.mrf.mxu1 }
 0x834   : > { %v4973_v45 = vpop.f32.mrf.mxu1 }
 0x835   : > { %4991 = vst.msk [vmem:[%s290_s16 + $0x28] sm:$0xff] %vm4985_vm4, %v4973_v45 }
 0x836   : > { %v4975_v33 = vpop.f32.mrf.mxu1 }
 0x838   : > { %v4978_v61 = vpop.f32.mrf.mxu1 }
 0x839   : > { %4992 = vst.msk [vmem:[%s290_s16 + $0x30] sm:$0xff] %vm4985_vm4, %v4978_v61 }
 0x83a   : > { %v4980_v11 = vpop.f32.mrf.mxu1 }
 0x83c   : > { %v4981_v50 = vpop.f32.mrf.mxu1 }
 0x83d   : > { %4993 = vst.msk [vmem:[%s290_s16 + $0x38] sm:$0xff] %vm4985_vm4, %v4981_v50 }
 0x83e   : > { %v4983_v27 = vpop.f32.mrf.mxu1 }
 0x83f PF: > { %s18_s24 = sadd.s32 1, %s6102_s24  }
 0x840   : > { %p15_p1 = scmp.ge.s32.totalorder %s18_s24, 4  }
 0x842   :  { %17 = sbr.rel (!%p15_p1) target bundleno = 1 (0x1), region = 83 }
 0x847   :  { %5015 = vsyncpa [#allocation3], 1 }
 0x848   :  { %5017 = vsyncpa [#allocation3 + $0x1], 1 }

</bundles_post_ra>
